<compile_context>
chip_gen: v7x
topology: tpu7x:2x2x1
jax: 0.10.0
libtpu: 0.0.40
codegen_flags: <defaults>
</compile_context>

<pallas_src>
import jax
import jax.numpy as jnp
from jax.experimental import pallas as pl
from jax.experimental.pallas import tpu as pltpu

CHANNELS = (512, 256, 128, 64, 32, 1)


def _round_up(a, b):
    return (a + b - 1) // b * b


def _block_diag_reps(w_mat, reps):
    r, c = w_mat.shape
    out = jnp.zeros((reps * r, reps * c), w_mat.dtype)
    for i in range(reps):
        out = out.at[i * r:(i + 1) * r, i * c:(i + 1) * c].set(w_mat)
    return out


def prepare_params(params):
    """One-time preprocessing of the 5 ConvTranspose2d (weight, bias) pairs."""
    assert len(params) == 5
    w_mats, b_vecs = [], []
    for i, (wgt, bse) in enumerate(params):
        cin, cout = CHANNELS[i], CHANNELS[i + 1]
        assert wgt.shape == (cin, cout, 2, 1), wgt.shape
        assert bse.shape == (cout,), bse.shape
        # (Cin, Cout, 2) -> (Cin, 2, Cout) -> (Cin, 2*Cout); column = kh*Cout + oc
        w_mat = jnp.transpose(wgt[:, :, :, 0], (0, 2, 1)).reshape(cin, 2 * cout)
        w_mats.append(w_mat.astype(jnp.float32))
        b_vecs.append(bse.astype(jnp.float32))

    # ---- channel-major weights for the real-column chain (activations are (C, S)) ----
    # Layer 1: dense 512->512.  Layers 2-4: both 256-wide halves of the 512-wide state
    # use the SAME compact (256,256) matrix (dense for L2, block-diag of 2x128 / 4x64
    # for L3/L4) -> no avoidable structural zeros are fed to the MXU.
    w1t = w_mats[0].T.astype(jnp.bfloat16)                                 # (512, 512)
    wmid_t = jnp.stack([
        w_mats[1].T,                                                       # L2 dense
        _block_diag_reps(w_mats[2], 2).T,                                  # L3: 2x(128,128)
        _block_diag_reps(w_mats[3], 4).T,                                  # L4: 4x(64,64)
    ]).astype(jnp.bfloat16)                                                # (3, 256, 256)
    w5t = _block_diag_reps(w_mats[4], 16).T.astype(jnp.bfloat16)           # (32, 512)

    # Biases as column vectors (broadcast along the lane/pixel axis inside the kernel).
    b1 = jnp.tile(b_vecs[0], 2).reshape(512, 1).astype(jnp.float32)
    bmid = jnp.stack([jnp.tile(b_vecs[1], 2),
                      jnp.tile(b_vecs[2], 4),
                      jnp.tile(b_vecs[3], 8)]).reshape(3, 256, 1).astype(jnp.float32)
    b5 = jnp.tile(b_vecs[4], 32).reshape(32, 1).astype(jnp.float32)

    # Constant-column cascade: pattern produced in the final output by a bias-only
    # (odd) column introduced at layer k; period 2**(5-k) over output rows.
    pats = {}
    hi = jax.lax.Precision.HIGHEST
    for k in range(1, 6):
        v = jnp.tanh(b_vecs[k - 1])[None, :]
        for m in range(k, 5):
            v = jnp.tanh(jnp.matmul(v, w_mats[m], precision=hi)
                         + jnp.tile(b_vecs[m], 2)[None, :])
            v = v.reshape(v.shape[0] * 2, -1)
        pats[k] = v[:, 0]                                                  # (2**(5-k),)

    # (32, 32) background tile: bg[r, c] = final-output value at row r (mod 32) of any
    # column with ow % 32 == c != 0.  Column 0 (data columns) comes from the kernel.
    bg = jnp.zeros((32, 32), jnp.float32)
    for c in range(1, 32):
        t = (c & -c).bit_length() - 1                                      # trailing zeros
        bg = bg.at[:, c].set(jnp.tile(pats[5 - t], 32 // (2 ** t)))

    return dict(w1t=w1t, wmid_t=wmid_t, w5t=w5t, b1=b1, bmid=bmid, b5=b5, bg32=bg)


def _fused_deconv_kernel(x_ref, w1_ref, wmid_ref, w5_ref, b1_ref, bmid_ref, b5_ref, o_ref):
    # x_ref   : (512, TS) f32   input pixels, channel-major (lanes = spatial)
    # w1_ref  : (512, 512) bf16 | wmid_ref: (3, 256, 256) bf16 | w5_ref: (32, 512) bf16
    # b1_ref  : (512, 1) f32    | bmid_ref: (3, 256, 1) f32    | b5_ref: (32, 1) f32
    # o_ref   : (32, TS) f32
    x = x_ref[...].astype(jnp.bfloat16)                                    # cast in VMEM
    # Layer 1: dense 512 -> 512 (kh tap folded into the channel axis).
    z = jnp.dot(w1_ref[...], x, preferred_element_type=jnp.float32)       # (512, TS)
    a = jnp.tanh(z + b1_ref[...])                                         # f32 epilogue
    al = a[0:256, :].astype(jnp.bfloat16)
    ar = a[256:512, :].astype(jnp.bfloat16)
    # Layers 2..4: two 256-wide halves share one compact (256,256) weight per layer.
    for k in range(3):
        w = wmid_ref[k]                                                    # (256, 256)
        b = bmid_ref[k]                                                    # (256, 1)
        zl = jnp.dot(w, al, preferred_element_type=jnp.float32)
        zr = jnp.dot(w, ar, preferred_element_type=jnp.float32)
        al = jnp.tanh(zl + b).astype(jnp.bfloat16)
        ar = jnp.tanh(zr + b).astype(jnp.bfloat16)
    # Layer 5: (32, 512) split over the two halves, f32 accumulate.
    z = (jnp.dot(w5_ref[:, 0:256], al, preferred_element_type=jnp.float32)
         + jnp.dot(w5_ref[:, 256:512], ar, preferred_element_type=jnp.float32))
    o_ref[...] = jnp.tanh(z + b5_ref[...])                                 # (32, TS)


def _real_columns_chain(x3, prep, ts_desired=1024):
    """(N, 512, H*W) f32 -> (N, 32, H*W) f32: the data-dependent output columns."""
    n, cin, hw = x3.shape
    assert cin == 512
    # Spatial tile: biggest tile <= ts_desired; keep >=2 grid steps when possible so
    # the parallel axes actually shard across v7x's two TensorCores.
    ts = min(ts_desired, hw)
    if ts == hw and n == 1 and hw > 128:
        ts2 = _round_up(pl.cdiv(hw, 2), 128)          # partial-tile blocks are masked
        if ts2 < hw:
            ts = ts2
    grid = (n, pl.cdiv(hw, ts))
    return pl.pallas_call(
        _fused_deconv_kernel,
        out_shape=jax.ShapeDtypeStruct((n, 32, hw), jnp.float32),
        grid=grid,
        in_specs=[
            pl.BlockSpec((None, 512, ts), lambda b, s: (b, 0, s)),     # input pixels
            pl.BlockSpec((512, 512), lambda b, s: (0, 0)),             # resident W1^T
            pl.BlockSpec((3, 256, 256), lambda b, s: (0, 0, 0)),       # resident W2-4^T
            pl.BlockSpec((32, 512), lambda b, s: (0, 0)),              # resident W5^T
            pl.BlockSpec((512, 1), lambda b, s: (0, 0)),               # b1 (f32 column)
            pl.BlockSpec((3, 256, 1), lambda b, s: (0, 0, 0)),         # b2-4
            pl.BlockSpec((32, 1), lambda b, s: (0, 0)),                # b5
        ],
        out_specs=pl.BlockSpec((None, 32, ts), lambda b, s: (b, 0, s)),
        compiler_params=pltpu.CompilerParams(
            dimension_semantics=("parallel", "parallel"),
            vmem_limit_bytes=32 * 1024 * 1024,
        ),
    )(x3, prep["w1t"], prep["wmid_t"], prep["w5t"], prep["b1"], prep["bmid"], prep["b5"])


def deconv_embedding_forward(x_nchw, prep):
    """Forward pass of deconvEmbedding: (N, 512, H, W) -> (N, 1, 32H, 32W-31)."""
    n, cin, h, w = x_nchw.shape
    assert cin == 512
    x3 = x_nchw.reshape(n, cin, h * w)                     # free reshape (no transpose)
    out_k = _real_columns_chain(x3, prep)                  # (N, 32, H*W)
    # out_k[b, j, ih*W + iw] == out[b, 0, 32*ih + j, 32*iw]
    real = out_k.reshape(n, 32, h, w).transpose(0, 2, 1, 3)          # (n, h, 32, w), small
    ho, wo = 32 * h, 32 * w - 31
    # TODO(synk): background interleave + final width slice are pure layout glue on the
    # already-computed output; built lane-dense in XLA (concat on a minor 32-axis).
    bg_cols = jnp.broadcast_to(prep["bg32"][None, None, :, None, 1:], (n, h, 32, w, 31))
    full = jnp.concatenate([real[..., None], bg_cols], axis=-1)      # (n, h, 32, w, 32)
    out = full.reshape(n, ho, 32 * w)[:, :, :wo]
    return out[:, None, :, :]


# ---------------- pure-JAX reference (correctness check only) ----------------
def _deconv_tanh_reference(x_nchw, weight, bias):
    kh, kw = weight.shape[2], weight.shape[3]
    w_flip = jnp.flip(weight, axis=(2, 3)).transpose(1, 0, 2, 3)     # (Cout, Cin, kh, kw)
    out = jax.lax.conv_general_dilated(
        x_nchw, w_flip,
        window_strides=(1, 1),
        padding=[(kh - 1, kh - 1), (kw - 1, kw - 1)],
        lhs_dilation=(2, 2),
        dimension_numbers=("NCHW", "OIHW", "NCHW"),
        precision=jax.lax.Precision.HIGHEST,
    )
    return jnp.tanh(out + bias[None, :, None, None])


if __name__ == "__main__":
    key = jax.random.PRNGKey(0)

    # Deterministic synthetic parameters (same shapes as the PyTorch module __init__).
    params = []
    for i in range(5):
        cin, cout = CHANNELS[i], CHANNELS[i + 1]
        key, kw_, kb_ = jax.random.split(key, 3)
        bound = 1.0 / (cin * 2.0) ** 0.5                  # ~ PyTorch default uniform bound
        wgt = jax.random.uniform(kw_, (cin, cout, 2, 1), jnp.float32, -bound, bound)
        bse = jax.random.uniform(kb_, (cout,), jnp.float32, -bound, bound)
        params.append((wgt, bse))

    prep = prepare_params(params)

    # Small input consistent with the module: 512 input channels.
    key, kx = jax.random.split(key)
    x = jax.random.normal(kx, (2, 512, 4, 3), jnp.float32)            # NCHW

    fwd = jax.jit(deconv_embedding_forward)
    out = jax.block_until_ready(fwd(x, prep))
    assert out.shape == (2, 1, 128, 65), out.shape

    ref = x
    for wgt, bse in params:
        ref = _deconv_tanh_reference(ref, wgt, bse)
    ref = jax.block_until_ready(ref)
    max_err = float(jnp.max(jnp.abs(out - ref)))
    # bf16 matmul operands (f32 accumulate / bias / tanh) -> relaxed tolerance.
    assert max_err < 5e-2, f"max abs err {max_err}"

    print("KERNEL_OK")
</pallas_src>

<mosaic_0001>
module attributes {stable_mosaic.version = 11 : i64} {
  func.func @_fused_deconv_kernel(%arg0: i32, %arg1: i32, %arg2: memref<1x512x12xf32, #tpu.memory_space<vmem>>, %arg3: memref<512x512xbf16, #tpu.memory_space<vmem>>, %arg4: memref<3x256x256xbf16, #tpu.memory_space<vmem>>, %arg5: memref<32x512xbf16, #tpu.memory_space<vmem>>, %arg6: memref<512x1xf32, #tpu.memory_space<vmem>>, %arg7: memref<3x256x1xf32, #tpu.memory_space<vmem>>, %arg8: memref<32x1xf32, #tpu.memory_space<vmem>>, %arg9: memref<1x32x12xf32, #tpu.memory_space<vmem>>) attributes {dimension_semantics = [#tpu.dimension_semantics<parallel>, #tpu.dimension_semantics<parallel>], iteration_bounds = array<i64: 2, 1>, scalar_prefetch = 0 : i64, scratch_operands = 0 : i64, tpu.core_type = #tpu.core_type<tc>, window_params = [{transform_indices = @transform_0, window_bounds = array<i64: 1, 512, 12>}, {pipeline_mode = #tpu.pipeline_mode<synchronous>, transform_indices = @transform_1, window_bounds = array<i64: 512, 512>}, {pipeline_mode = #tpu.pipeline_mode<synchronous>, transform_indices = @transform_2, window_bounds = array<i64: 3, 256, 256>}, {pipeline_mode = #tpu.pipeline_mode<synchronous>, transform_indices = @transform_3, window_bounds = array<i64: 32, 512>}, {pipeline_mode = #tpu.pipeline_mode<synchronous>, transform_indices = @transform_4, window_bounds = array<i64: 512, 1>}, {pipeline_mode = #tpu.pipeline_mode<synchronous>, transform_indices = @transform_5, window_bounds = array<i64: 3, 256, 1>}, {pipeline_mode = #tpu.pipeline_mode<synchronous>, transform_indices = @transform_6, window_bounds = array<i64: 32, 1>}, {transform_indices = @transform_7, window_bounds = array<i64: 1, 32, 12>}]} {
    %c0 = arith.constant 0 : index
    %c0_0 = arith.constant 0 : index
    %c0_1 = arith.constant 0 : index
    %0 = vector.load %arg2[%c0, %c0_0, %c0_1] : memref<1x512x12xf32, #tpu.memory_space<vmem>>, vector<1x512x12xf32>
    %1 = vector.shape_cast %0 : vector<1x512x12xf32> to vector<512x12xf32>
    %2 = arith.truncf %1 : vector<512x12xf32> to vector<512x12xbf16>
    %c0_2 = arith.constant 0 : index
    %c0_3 = arith.constant 0 : index
    %3 = vector.load %arg3[%c0_2, %c0_3] : memref<512x512xbf16, #tpu.memory_space<vmem>>, vector<512x512xbf16>
    %cst = arith.constant dense<0.000000e+00> : vector<512x12xf32>
    %4 = tpu.matmul %3, %2, %cst {dimension_numbers = #tpu.dot_dimension_numbers<[1], [0], [0], [1], [0, 0, 1, 1], [], []>} : vector<512x512xbf16>, vector<512x12xbf16>, vector<512x12xf32> -> vector<512x12xf32>
    %c0_4 = arith.constant 0 : index
    %c0_5 = arith.constant 0 : index
    %5 = vector.load %arg6[%c0_4, %c0_5] : memref<512x1xf32, #tpu.memory_space<vmem>>, vector<512x1xf32>
    %6 = vector.broadcast %5 : vector<512x1xf32> to vector<512x12xf32>
    %7 = arith.addf %4, %6 : vector<512x12xf32>
    %8 = math.tanh %7 : vector<512x12xf32>
    %9 = vector.extract_strided_slice %8 {offsets = [0, 0], sizes = [256, 12], strides = [1, 1]} : vector<512x12xf32> to vector<256x12xf32>
    %10 = arith.truncf %9 : vector<256x12xf32> to vector<256x12xbf16>
    %11 = vector.extract_strided_slice %8 {offsets = [256, 0], sizes = [256, 12], strides = [1, 1]} : vector<512x12xf32> to vector<256x12xf32>
    %12 = arith.truncf %11 : vector<256x12xf32> to vector<256x12xbf16>
    %c0_6 = arith.constant 0 : index
    %c0_7 = arith.constant 0 : index
    %c0_8 = arith.constant 0 : index
    %13 = vector.load %arg4[%c0_6, %c0_7, %c0_8] : memref<3x256x256xbf16, #tpu.memory_space<vmem>>, vector<1x256x256xbf16>
    %14 = vector.shape_cast %13 : vector<1x256x256xbf16> to vector<256x256xbf16>
    %c0_9 = arith.constant 0 : index
    %c0_10 = arith.constant 0 : index
    %c0_11 = arith.constant 0 : index
    %15 = vector.load %arg7[%c0_9, %c0_10, %c0_11] : memref<3x256x1xf32, #tpu.memory_space<vmem>>, vector<1x256x1xf32>
    %16 = vector.shape_cast %15 : vector<1x256x1xf32> to vector<256x1xf32>
    %cst_12 = arith.constant dense<0.000000e+00> : vector<256x12xf32>
    %17 = tpu.matmul %14, %10, %cst_12 {dimension_numbers = #tpu.dot_dimension_numbers<[1], [0], [0], [1], [0, 0, 1, 1], [], []>} : vector<256x256xbf16>, vector<256x12xbf16>, vector<256x12xf32> -> vector<256x12xf32>
    %cst_13 = arith.constant dense<0.000000e+00> : vector<256x12xf32>
    %18 = tpu.matmul %14, %12, %cst_13 {dimension_numbers = #tpu.dot_dimension_numbers<[1], [0], [0], [1], [0, 0, 1, 1], [], []>} : vector<256x256xbf16>, vector<256x12xbf16>, vector<256x12xf32> -> vector<256x12xf32>
    %19 = vector.broadcast %16 : vector<256x1xf32> to vector<256x12xf32>
    %20 = arith.addf %17, %19 : vector<256x12xf32>
    %21 = math.tanh %20 : vector<256x12xf32>
    %22 = arith.truncf %21 : vector<256x12xf32> to vector<256x12xbf16>
    %23 = vector.broadcast %16 : vector<256x1xf32> to vector<256x12xf32>
    %24 = arith.addf %18, %23 : vector<256x12xf32>
    %25 = math.tanh %24 : vector<256x12xf32>
    %26 = arith.truncf %25 : vector<256x12xf32> to vector<256x12xbf16>
    %c1 = arith.constant 1 : index
    %c0_14 = arith.constant 0 : index
    %c0_15 = arith.constant 0 : index
    %27 = vector.load %arg4[%c1, %c0_14, %c0_15] : memref<3x256x256xbf16, #tpu.memory_space<vmem>>, vector<1x256x256xbf16>
    %28 = vector.shape_cast %27 : vector<1x256x256xbf16> to vector<256x256xbf16>
    %c1_16 = arith.constant 1 : index
    %c0_17 = arith.constant 0 : index
    %c0_18 = arith.constant 0 : index
    %29 = vector.load %arg7[%c1_16, %c0_17, %c0_18] : memref<3x256x1xf32, #tpu.memory_space<vmem>>, vector<1x256x1xf32>
    %30 = vector.shape_cast %29 : vector<1x256x1xf32> to vector<256x1xf32>
    %cst_19 = arith.constant dense<0.000000e+00> : vector<256x12xf32>
    %31 = tpu.matmul %28, %22, %cst_19 {dimension_numbers = #tpu.dot_dimension_numbers<[1], [0], [0], [1], [0, 0, 1, 1], [], []>} : vector<256x256xbf16>, vector<256x12xbf16>, vector<256x12xf32> -> vector<256x12xf32>
    %cst_20 = arith.constant dense<0.000000e+00> : vector<256x12xf32>
    %32 = tpu.matmul %28, %26, %cst_20 {dimension_numbers = #tpu.dot_dimension_numbers<[1], [0], [0], [1], [0, 0, 1, 1], [], []>} : vector<256x256xbf16>, vector<256x12xbf16>, vector<256x12xf32> -> vector<256x12xf32>
    %33 = vector.broadcast %30 : vector<256x1xf32> to vector<256x12xf32>
    %34 = arith.addf %31, %33 : vector<256x12xf32>
    %35 = math.tanh %34 : vector<256x12xf32>
    %36 = arith.truncf %35 : vector<256x12xf32> to vector<256x12xbf16>
    %37 = vector.broadcast %30 : vector<256x1xf32> to vector<256x12xf32>
    %38 = arith.addf %32, %37 : vector<256x12xf32>
    %39 = math.tanh %38 : vector<256x12xf32>
    %40 = arith.truncf %39 : vector<256x12xf32> to vector<256x12xbf16>
    %c2 = arith.constant 2 : index
    %c0_21 = arith.constant 0 : index
    %c0_22 = arith.constant 0 : index
    %41 = vector.load %arg4[%c2, %c0_21, %c0_22] : memref<3x256x256xbf16, #tpu.memory_space<vmem>>, vector<1x256x256xbf16>
    %42 = vector.shape_cast %41 : vector<1x256x256xbf16> to vector<256x256xbf16>
    %c2_23 = arith.constant 2 : index
    %c0_24 = arith.constant 0 : index
    %c0_25 = arith.constant 0 : index
    %43 = vector.load %arg7[%c2_23, %c0_24, %c0_25] : memref<3x256x1xf32, #tpu.memory_space<vmem>>, vector<1x256x1xf32>
    %44 = vector.shape_cast %43 : vector<1x256x1xf32> to vector<256x1xf32>
    %cst_26 = arith.constant dense<0.000000e+00> : vector<256x12xf32>
    %45 = tpu.matmul %42, %36, %cst_26 {dimension_numbers = #tpu.dot_dimension_numbers<[1], [0], [0], [1], [0, 0, 1, 1], [], []>} : vector<256x256xbf16>, vector<256x12xbf16>, vector<256x12xf32> -> vector<256x12xf32>
    %cst_27 = arith.constant dense<0.000000e+00> : vector<256x12xf32>
    %46 = tpu.matmul %42, %40, %cst_27 {dimension_numbers = #tpu.dot_dimension_numbers<[1], [0], [0], [1], [0, 0, 1, 1], [], []>} : vector<256x256xbf16>, vector<256x12xbf16>, vector<256x12xf32> -> vector<256x12xf32>
    %47 = vector.broadcast %44 : vector<256x1xf32> to vector<256x12xf32>
    %48 = arith.addf %45, %47 : vector<256x12xf32>
    %49 = math.tanh %48 : vector<256x12xf32>
    %50 = arith.truncf %49 : vector<256x12xf32> to vector<256x12xbf16>
    %51 = vector.broadcast %44 : vector<256x1xf32> to vector<256x12xf32>
    %52 = arith.addf %46, %51 : vector<256x12xf32>
    %53 = math.tanh %52 : vector<256x12xf32>
    %54 = arith.truncf %53 : vector<256x12xf32> to vector<256x12xbf16>
    %c0_28 = arith.constant 0 : index
    %c0_29 = arith.constant 0 : index
    %55 = vector.load %arg5[%c0_28, %c0_29] : memref<32x512xbf16, #tpu.memory_space<vmem>>, vector<32x256xbf16>
    %cst_30 = arith.constant dense<0.000000e+00> : vector<32x12xf32>
    %56 = tpu.matmul %55, %50, %cst_30 {dimension_numbers = #tpu.dot_dimension_numbers<[1], [0], [0], [1], [0, 0, 1, 1], [], []>} : vector<32x256xbf16>, vector<256x12xbf16>, vector<32x12xf32> -> vector<32x12xf32>
    %c0_31 = arith.constant 0 : index
    %c256 = arith.constant 256 : index
    %57 = vector.load %arg5[%c0_31, %c256] : memref<32x512xbf16, #tpu.memory_space<vmem>>, vector<32x256xbf16>
    %cst_32 = arith.constant dense<0.000000e+00> : vector<32x12xf32>
    %58 = tpu.matmul %57, %54, %cst_32 {dimension_numbers = #tpu.dot_dimension_numbers<[1], [0], [0], [1], [0, 0, 1, 1], [], []>} : vector<32x256xbf16>, vector<256x12xbf16>, vector<32x12xf32> -> vector<32x12xf32>
    %59 = arith.addf %56, %58 : vector<32x12xf32>
    %c0_33 = arith.constant 0 : index
    %c0_34 = arith.constant 0 : index
    %60 = vector.load %arg8[%c0_33, %c0_34] : memref<32x1xf32, #tpu.memory_space<vmem>>, vector<32x1xf32>
    %61 = vector.broadcast %60 : vector<32x1xf32> to vector<32x12xf32>
    %62 = arith.addf %59, %61 : vector<32x12xf32>
    %63 = math.tanh %62 : vector<32x12xf32>
    %c0_35 = arith.constant 0 : index
    %c0_36 = arith.constant 0 : index
    %c0_37 = arith.constant 0 : index
    %64 = vector.load %arg9[%c0_35, %c0_36, %c0_37] : memref<1x32x12xf32, #tpu.memory_space<vmem>>, vector<1x32x12xf32>
    %65 = vector.shape_cast %64 : vector<1x32x12xf32> to vector<32x12xf32>
    %66 = vector.shape_cast %63 : vector<32x12xf32> to vector<1x32x12xf32>
    tpu.vector_store %arg9[%c0_35, %c0_36, %c0_37], %66 {strides = array<i32>} : memref<1x32x12xf32, #tpu.memory_space<vmem>>, vector<1x32x12xf32>,
    return
  }
  func.func @transform_0(%arg0: i32, %arg1: i32) -> (i32, i32, i32) {
    %c0_i32 = arith.constant 0 : i32
    %c0_i32_0 = arith.constant 0 : i32
    return %arg0, %c0_i32, %arg1 : i32, i32, i32
  }
  func.func @transform_1(%arg0: i32, %arg1: i32) -> (i32, i32) {
    %c0_i32 = arith.constant 0 : i32
    %c0_i32_0 = arith.constant 0 : i32
    %c0_i32_1 = arith.constant 0 : i32
    return %c0_i32, %c0_i32_0 : i32, i32
  }
  func.func @transform_2(%arg0: i32, %arg1: i32) -> (i32, i32, i32) {
    %c0_i32 = arith.constant 0 : i32
    %c0_i32_0 = arith.constant 0 : i32
    %c0_i32_1 = arith.constant 0 : i32
    %c0_i32_2 = arith.constant 0 : i32
    return %c0_i32, %c0_i32_0, %c0_i32_1 : i32, i32, i32
  }
  func.func @transform_3(%arg0: i32, %arg1: i32) -> (i32, i32) {
    %c0_i32 = arith.constant 0 : i32
    %c0_i32_0 = arith.constant 0 : i32
    %c0_i32_1 = arith.constant 0 : i32
    return %c0_i32, %c0_i32_0 : i32, i32
  }
  func.func @transform_4(%arg0: i32, %arg1: i32) -> (i32, i32) {
    %c0_i32 = arith.constant 0 : i32
    %c0_i32_0 = arith.constant 0 : i32
    %c0_i32_1 = arith.constant 0 : i32
    return %c0_i32, %c0_i32_0 : i32, i32
  }
  func.func @transform_5(%arg0: i32, %arg1: i32) -> (i32, i32, i32) {
    %c0_i32 = arith.constant 0 : i32
    %c0_i32_0 = arith.constant 0 : i32
    %c0_i32_1 = arith.constant 0 : i32
    %c0_i32_2 = arith.constant 0 : i32
    return %c0_i32, %c0_i32_0, %c0_i32_1 : i32, i32, i32
  }
  func.func @transform_6(%arg0: i32, %arg1: i32) -> (i32, i32) {
    %c0_i32 = arith.constant 0 : i32
    %c0_i32_0 = arith.constant 0 : i32
    %c0_i32_1 = arith.constant 0 : i32
    return %c0_i32, %c0_i32_0 : i32, i32
  }
  func.func @transform_7(%arg0: i32, %arg1: i32) -> (i32, i32, i32) {
    %c0_i32 = arith.constant 0 : i32
    %c0_i32_0 = arith.constant 0 : i32
    return %arg0, %c0_i32, %arg1 : i32, i32, i32
  }
}

</mosaic_0001>

<bundles_post_ra>
// kernel: deconv_embedding_forward.1
= control target key start
LH: loop header
LB: loop body
LE: loop exit
PB: predicated region body
PF: predicated region fallthrough
CT: control target
= control target key end

     0   :  { %s7178_s24 = smov 0   ;;  %s7180_s25 = smov 0   ;;  %s10031_s0 = inlined_call_operand.vmem [shape: f32[2,512,12], index: 0, kind: input, shape index: {}]   ;;  %s10032_s1 = inlined_call_operand.vmem [shape: bf16[512,512], index: 1, kind: input, shape index: {}]   ;;  %s10033_s2 = inlined_call_operand.vmem [shape: bf16[3,256,256], index: 2, kind: input, shape index: {}]   ;;  %s10034_s3 = inlined_call_operand.vmem [shape: bf16[32,512], index: 3, kind: input, shape index: {}]   ;;  %s10035_s4 = inlined_call_operand.vmem [shape: f32[512,1], index: 4, kind: input, shape index: {}]   ;;  %s10036_s5 = inlined_call_operand.vmem [shape: f32[3,256,1], index: 5, kind: input, shape index: {}]   ;;  %s10037_s6 = inlined_call_operand.vmem [shape: f32[32,1], index: 6, kind: input, shape index: {}]   ;;  %s10038_s7 = inlined_call_operand.vmem [shape: f32[2,32,12], index: 7, kind: output, shape index: {}]  }
   0x1   :  { %s7182_s26 = smov 0  }
   0x2 LB: > { %s29_s27 = sadd.s32 1, %s7131_s25  ;;  %p4913_p0 = scmp.ge.s32.totalorder %s7135_s26, 1  ;;  %s7135_s26 = sphi %s7182_s26, %s17_s26   ;;  %s7131_s25 = sphi %s7180_s25, %s10117_s25   ;;  %s7127_s24 = sphi %s7178_s24, %s10116_s24  }
   0x3   : > { %p31_p1 = scmp.ge.s32.totalorder %s29_s27, 2  ;;  %p256_p2 = scmp.lt.s32.totalorder %s7135_s26, 3 }
   0x5   : > { %s10119_s27 = smov (%p31_p1, %s29_s27), 0  ;;  %p257_p3 = pnand %p4913_p0, %p256_p2 }
   0x7   : > { %260 = sbr.rel (%p257_p3) target bundleno = 2155 (0x86b), region = 48 }
   0xe   : > { %p294_p4 = scmp.lt.s32.totalorder %s7127_s24, 1  ;;  %v7137_v0 = vmov 0   ;;  %v6247_v1 = vld [vmem:[%s10032_s1 + $0x4] ss:$16 sps:$4 sm:$0xff]   ;;  %v552_v24 = vld [vmem:[%s10035_s4 + $0x88] sm:$0xff]  ;;  %v554_v30 = vld [vmem:[%s10035_s4 + $0x98] sm:$0xff] }
   0xf   : > { %1559 = vmatprep.subr.bf16.mxu0 %v7137_v0  ;;  %6244 = vset.pattern.permute.xlu1 %v7137_v0  ;;  %v551_v19 = vld [vmem:[%s10035_s4 + $0x80] sm:$0xff]  ;;  %v536_v25 = vld [vmem:[%s10035_s4 + $0x8] sm:$0xff]  ;;  %v553_v28 = vld [vmem:[%s10035_s4 + $0x90] sm:$0xff]  ;;  %vm4821_vm0 = vcmask 97280  }
  0x10   : > { %s10121_s24 = smov (!%p294_p4, %s7127_s24), 1  ;;  %6243 = vset.pattern.permute.xlu0 %v7137_v0  ;;  %1591 = vmatprep.mubr.bf16.mxu0 %v6247_v1  ;;  %v535_v20 = vld [vmem:[%s10035_s4] sm:$0xff]  ;;  %v537_v34 = vld [vmem:[%s10035_s4 + $0x10] sm:$0xff]  ;;  %v538_v35 = vld [vmem:[%s10035_s4 + $0x18] sm:$0xff] }
  0x11   : > { %s5280_s30 = sshll.u32 %s10121_s24, 9  ;;  %681 = vperm.xlu0 %6243, %v551_v19   ;;  %601 = vperm.xlu1 %6244, %v535_v20   ;;  %v555_v38 = vld [vmem:[%s10035_s4 + $0xa0] sm:$0xff]  ;;  %v556_v40 = vld [vmem:[%s10035_s4 + $0xa8] sm:$0xff]  ;;  %v557_v48 = vld [vmem:[%s10035_s4 + $0xb0] sm:$0xff]  ;;  %s5281_s16 = sshll.u32 %s10121_s24, 5 }
  0x12   : > { %s7208_s10 = scalar_lea.vmem %s10031_s0, %s5280_s30  ;;  %v539_v44 = vld [vmem:[%s10035_s4 + $0x20] sm:$0xff]  ;;  %v540_v45 = vld [vmem:[%s10035_s4 + $0x28] sm:$0xff]  ;;  %v558_v50 = vld [vmem:[%s10035_s4 + $0xb8] sm:$0xff] }
  0x13   : > { %v311_v2 = vld [vmem:[%s7208_s10] sm:$0xff]  ;;  %v312_v3 = vld [vmem:[%s7208_s10 + $0x8] sm:$0xff]  ;;  %v313_v4 = vld [vmem:[%s7208_s10 + $0x10] sm:$0xff] }
  0x14   : > { %v375_v5 = vpack.c.bf16 %v312_v3, %v311_v2  ;;  %v314_v6 = vld [vmem:[%s7208_s10 + $0x18] sm:$0xff]  ;;  %v315_v8 = vld [vmem:[%s7208_s10 + $0x20] sm:$0xff]  ;;  %v316_v9 = vld [vmem:[%s7208_s10 + $0x28] sm:$0xff] }
  0x15   : > { %v376_v7 = vpack.c.bf16 %v314_v6, %v313_v4  ;;  %v377_v10 = vpack.c.bf16 %v316_v9, %v315_v8  ;;  %v317_v11 = vld [vmem:[%s7208_s10 + $0x30] sm:$0xff]  ;;  %v318_v12 = vld [vmem:[%s7208_s10 + $0x38] sm:$0xff]  ;;  %v319_v14 = vld [vmem:[%s7208_s10 + $0x40] sm:$0xff]  ;;  %686 = vperm.xlu0 %6243, %v552_v24   ;;  %606 = vperm.xlu1 %6244, %v536_v25  }
  0x16   : > { %1560 = vmatpush1.bf16.msra.mxu0 %v375_v5  ;;  %v378_v13 = vpack.c.bf16 %v318_v12, %v317_v11  ;;  %v320_v15 = vld [vmem:[%s7208_s10 + $0x48] sm:$0xff]  ;;  %v321_v17 = vld [vmem:[%s7208_s10 + $0x50] sm:$0xff]  ;;  %v322_v18 = vld [vmem:[%s7208_s10 + $0x58] sm:$0xff] }
  0x17   : > { %1561 = vmatprep.subr.bf16.mxu0 %v7137_v0  ;;  %v379_v16 = vpack.c.bf16 %v320_v15, %v319_v14  ;;  %v380_v21 = vpack.c.bf16 %v322_v18, %v321_v17  ;;  %v323_v22 = vld [vmem:[%s7208_s10 + $0x60] sm:$0xff]  ;;  %v324_v23 = vld [vmem:[%s7208_s10 + $0x68] sm:$0xff]  ;;  %v325_v26 = vld [vmem:[%s7208_s10 + $0x70] sm:$0xff] }
  0x18   : > { %v326_v27 = vld [vmem:[%s7208_s10 + $0x78] sm:$0xff]  ;;  %v381_v29 = vpack.c.bf16 %v324_v23, %v323_v22  ;;  %v327_v31 = vld [vmem:[%s7208_s10 + $0x80] sm:$0xff]  ;;  %v328_v33 = vld [vmem:[%s7208_s10 + $0x88] sm:$0xff] }
  0x19   : > { %v382_v32 = vpack.c.bf16 %v326_v27, %v325_v26  ;;  %691 = vperm.xlu0 %6243, %v553_v28   ;;  %696 = vperm.xlu1 %6244, %v554_v30   ;;  %v329_v36 = vld [vmem:[%s7208_s10 + $0x90] sm:$0xff]  ;;  %v330_v37 = vld [vmem:[%s7208_s10 + $0x98] sm:$0xff]  ;;  %v383_v39 = vpack.c.bf16 %v328_v33, %v327_v31  ;;  %v331_v41 = vld [vmem:[%s7208_s10 + $0xa0] sm:$0xff] }
  0x1a   : > { %1562 = vmatpush1.bf16.msra.mxu0 %v376_v7  ;;  %v384_v42 = vpack.c.bf16 %v330_v37, %v329_v36  ;;  %v332_v43 = vld [vmem:[%s7208_s10 + $0xa8] sm:$0xff]  ;;  %v333_v46 = vld [vmem:[%s7208_s10 + $0xb0] sm:$0xff]  ;;  %v334_v47 = vld [vmem:[%s7208_s10 + $0xb8] sm:$0xff] }
  0x1b   : > { %1563 = vmatprep.subr.bf16.mxu0 %v7137_v0  ;;  %v385_v49 = vpack.c.bf16 %v332_v43, %v331_v41  ;;  %v335_v51 = vld [vmem:[%s7208_s10 + $0xc0] sm:$0xff]  ;;  %v386_v52 = vpack.c.bf16 %v334_v47, %v333_v46  ;;  %v336_v53 = vld [vmem:[%s7208_s10 + $0xc8] sm:$0xff]  ;;  %v541_v54 = vld [vmem:[%s10035_s4 + $0x30] sm:$0xff] }
  0x1c   : > { %v542_v55 = vld [vmem:[%s10035_s4 + $0x38] sm:$0xff]  ;;  %v337_v56 = vld [vmem:[%s7208_s10 + $0xd0] sm:$0xff]  ;;  %v559_v58 = vld [vmem:[%s10035_s4 + $0xc0] sm:$0xff]  ;;  %v387_v59 = vpack.c.bf16 %v336_v53, %v335_v51 }
  0x1d   : > { %611 = vperm.xlu0 %6243, %v537_v34   ;;  %616 = vperm.xlu1 %6244, %v538_v35   ;;  %v338_v57 = vld [vmem:[%s7208_s10 + $0xd8] sm:$0xff]  ;;  %v560_v60 = vld [vmem:[%s10035_s4 + $0xc8] sm:$0xff]  ;;  %v339_v61 = vld [vmem:[%s7208_s10 + $0xe0] sm:$0xff] }
  0x1e   : > { %1564 = vmatpush1.bf16.msra.mxu0 %v377_v10  ;;  %v388_v62 = vpack.c.bf16 %v338_v57, %v337_v56  ;;  %v340_v63 = vld [vmem:[%s7208_s10 + $0xe8] sm:$0xff]  ;;  %v543_v1 = vld [vmem:[%s10035_s4 + $0x40] sm:$0xff]  ;;  %v341_v3 = vld [vmem:[%s7208_s10 + $0xf0] sm:$0xff] }
  0x1f   : > { %1565 = vmatprep.subr.bf16.mxu0 %v7137_v0  ;;  %v544_v2 = vld [vmem:[%s10035_s4 + $0x48] sm:$0xff]  ;;  %v342_v4 = vld [vmem:[%s7208_s10 + $0xf8] sm:$0xff]  ;;  %v561_v5 = vld [vmem:[%s10035_s4 + $0xd0] sm:$0xff]  ;;  %v389_v6 = vpack.c.bf16 %v340_v63, %v339_v61 }
  0x20   : > { %v562_v7 = vld [vmem:[%s10035_s4 + $0xd8] sm:$0xff]  ;;  %v390_v8 = vpack.c.bf16 %v342_v4, %v341_v3  ;;  %v545_v9 = vld [vmem:[%s10035_s4 + $0x50] sm:$0xff]  ;;  %v564_v14 = vld [vmem:[%s10035_s4 + $0xe8] sm:$0xff] }
  0x21   : > { %701 = vperm.xlu0 %6243, %v555_v38   ;;  %706 = vperm.xlu1 %6244, %v556_v40   ;;  %v546_v10 = vld [vmem:[%s10035_s4 + $0x58] sm:$0xff]  ;;  %v6245_v11 = vld [vmem:[%s10032_s1] ss:$16 sps:$4 sm:$0xff]   ;;  %v6248_v12 = vld [vmem:[%s10032_s1 + $0x24] ss:$16 sps:$4 sm:$0xff]  }
  0x22   : > { %1566 = vmatpush1.bf16.msra.mxu0 %v378_v13  ;;  %v563_v13 = vld [vmem:[%s10035_s4 + $0xe0] sm:$0xff]  ;;  %v565_v19 = vld [vmem:[%s10035_s4 + $0xf0] sm:$0xff]  ;;  %v566_v20 = vld [vmem:[%s10035_s4 + $0xf8] sm:$0xff] }
  0x23   : > { %1567 = vmatprep.subr.bf16.mxu0 %v7137_v0  ;;  %v547_v15 = vld [vmem:[%s10035_s4 + $0x60] sm:$0xff]  ;;  %v550_v22 = vld [vmem:[%s10035_s4 + $0x78] sm:$0xff]  ;;  %v584_v26 = vld [vmem:[%s10035_s4 + $0x188] sm:$0xff] }
  0x24   : > { %v6250_v17 = vld [vmem:[%s10032_s1 + $0x20] ss:$16 sps:$4 sm:$0xff]   ;;  %v6251_v18 = vld [vmem:[%s10032_s1 + $0x44] ss:$16 sps:$4 sm:$0xff]   ;;  %v568_v28 = vld [vmem:[%s10035_s4 + $0x108] sm:$0xff] }
  0x25   : > { %621 = vperm.xlu0 %6243, %v539_v44   ;;  %626 = vperm.xlu1 %6244, %v540_v45   ;;  %v6253_v23 = vld [vmem:[%s10032_s1 + $0x40] ss:$16 sps:$4 sm:$0xff]   ;;  %v6254_v24 = vld [vmem:[%s10032_s1 + $0x64] ss:$16 sps:$4 sm:$0xff]   ;;  %v570_v34 = vld [vmem:[%s10035_s4 + $0x118] sm:$0xff] }
  0x26   : > { %1568 = vmatpush1.bf16.msra.mxu0 %v379_v16  ;;  %v548_v16 = vld [vmem:[%s10035_s4 + $0x68] sm:$0xff]  ;;  %v583_v25 = vld [vmem:[%s10035_s4 + $0x180] sm:$0xff]  ;;  %v585_v31 = vld [vmem:[%s10035_s4 + $0x190] sm:$0xff] }
  0x27   : > { %1569 = vmatprep.subr.bf16.mxu0 %v7137_v0  ;;  %v567_v27 = vld [vmem:[%s10035_s4 + $0x100] sm:$0xff]  ;;  %v569_v33 = vld [vmem:[%s10035_s4 + $0x110] sm:$0xff]  ;;  %v588_v38 = vld [vmem:[%s10035_s4 + $0x1a8] sm:$0xff] }
  0x28   : > { %v6257_v30 = vld [vmem:[%s10032_s1 + $0x84] ss:$16 sps:$4 sm:$0xff]   ;;  %v6259_v35 = vld [vmem:[%s10032_s1 + $0x80] ss:$16 sps:$4 sm:$0xff]   ;;  %v572_v40 = vld [vmem:[%s10035_s4 + $0x128] sm:$0xff] }
  0x29   : > { %711 = vperm.xlu0 %6243, %v557_v48   ;;  %716 = vperm.xlu1 %6244, %v558_v50   ;;  %v6260_v36 = vld [vmem:[%s10032_s1 + $0xa4] ss:$16 sps:$4 sm:$0xff]   ;;  %v6262_v41 = vld [vmem:[%s10032_s1 + $0xa0] ss:$16 sps:$4 sm:$0xff]   ;;  %v590_v44 = vld [vmem:[%s10035_s4 + $0x1b8] sm:$0xff] }
  0x2a   : > { %1570 = vmatpush1.bf16.msra.mxu0 %v380_v21  ;;  %v549_v21 = vld [vmem:[%s10035_s4 + $0x70] sm:$0xff]  ;;  %v587_v37 = vld [vmem:[%s10035_s4 + $0x1a0] sm:$0xff]  ;;  %v574_v46 = vld [vmem:[%s10035_s4 + $0x138] sm:$0xff] }
  0x2b   : > { %1571 = vmatprep.subr.bf16.mxu0 %v7137_v0  ;;  %v589_v43 = vld [vmem:[%s10035_s4 + $0x1b0] sm:$0xff]  ;;  %v592_v50 = vld [vmem:[%s10035_s4 + $0x1c8] sm:$0xff]  ;;  %v575_v51 = vld [vmem:[%s10035_s4 + $0x140] sm:$0xff] }
  0x2c   : > { %v573_v45 = vld [vmem:[%s10035_s4 + $0x130] sm:$0xff]  ;;  %v594_v56 = vld [vmem:[%s10035_s4 + $0x1d8] sm:$0xff]  ;;  %v595_v61 = vld [vmem:[%s10035_s4 + $0x1e0] sm:$0xff] }
  0x2d   : > { %631 = vperm.xlu0 %6243, %v541_v54   ;;  %636 = vperm.xlu1 %6244, %v542_v55   ;;  %v6265_v47 = vld [vmem:[%s10032_s1 + $0xc0] ss:$16 sps:$4 sm:$0xff]   ;;  %v6266_v48 = vld [vmem:[%s10032_s1 + $0xe4] ss:$16 sps:$4 sm:$0xff]   ;;  %v344_v63 = vld [vmem:[%s7208_s10 + $0x108] sm:$0xff] }
  0x2e   : > { %1572 = vmatpush1.bf16.msra.mxu0 %v381_v29  ;;  %v6256_v29 = vld [vmem:[%s10032_s1 + $0x60] ss:$16 sps:$4 sm:$0xff]   ;;  %v6269_v54 = vld [vmem:[%s10032_s1 + $0x104] ss:$16 sps:$4 sm:$0xff]   ;;  %v346_v4 = vld [vmem:[%s7208_s10 + $0x118] sm:$0xff] }
  0x2f   : > { %1573 = vmatprep.subr.bf16.mxu0 %v7137_v0  ;;  %v6268_v53 = vld [vmem:[%s10032_s1 + $0xe0] ss:$16 sps:$4 sm:$0xff]  }
  0x30   : > { %v593_v55 = vld [vmem:[%s10035_s4 + $0x1d0] sm:$0xff] }
  0x31   : > { %721 = vperm.xlu0 %6243, %v559_v58   ;;  %726 = vperm.xlu1 %6244, %v560_v60   ;;  %v577_v57 = vld [vmem:[%s10035_s4 + $0x150] sm:$0xff]  ;;  %v578_v58 = vld [vmem:[%s10035_s4 + $0x158] sm:$0xff] }
  0x32   : > { %1574 = vmatpush1.bf16.msra.mxu0 %v382_v32  ;;  %v586_v32 = vld [vmem:[%s10035_s4 + $0x198] sm:$0xff]  ;;  %v6272_v60 = vld [vmem:[%s10032_s1 + $0x124] ss:$16 sps:$4 sm:$0xff]  }
  0x33   : > { %1575 = vmatprep.subr.bf16.mxu0 %v7137_v0  ;;  %v345_v3 = vld [vmem:[%s7208_s10 + $0x110] sm:$0xff] }
  0x35   : > { %641 = vperm.xlu0 %6243, %v543_v1   ;;  %646 = vperm.xlu1 %6244, %v544_v2   ;;  %v596_v1 = vld [vmem:[%s10035_s4 + $0x1e8] sm:$0xff] }
  0x36   : > { %1576 = vmatpush1.bf16.msra.mxu0 %v383_v39  ;;  %v571_v39 = vld [vmem:[%s10035_s4 + $0x120] sm:$0xff] }
  0x37   : > { %1577 = vmatprep.subr.bf16.mxu0 %v7137_v0 }
  0x39   : > { %731 = vperm.xlu0 %6243, %v561_v5   ;;  %736 = vperm.xlu1 %6244, %v562_v7   ;;  %v579_v5 = vld [vmem:[%s10035_s4 + $0x160] sm:$0xff]  ;;  %v580_v7 = vld [vmem:[%s10035_s4 + $0x168] sm:$0xff] }
  0x3a   : > { %1578 = vmatpush1.bf16.msra.mxu0 %v384_v42  ;;  %v6263_v42 = vld [vmem:[%s10032_s1 + $0xc4] ss:$16 sps:$4 sm:$0xff]  }
  0x3b   : > { %1579 = vmatprep.subr.bf16.mxu0 %v7137_v0 }
  0x3d   : > { %651 = vperm.xlu0 %6243, %v545_v9   ;;  %656 = vperm.xlu1 %6244, %v546_v10   ;;  %v6275_v9 = vld [vmem:[%s10032_s1 + $0x144] ss:$16 sps:$4 sm:$0xff]  }
  0x3e   : > { %1580 = vmatpush1.bf16.msra.mxu0 %v385_v49  ;;  %v591_v49 = vld [vmem:[%s10035_s4 + $0x1c0] sm:$0xff]  ;;  %v597_v10 = vld [vmem:[%s10035_s4 + $0x1f0] sm:$0xff] }
  0x3f   : > { %1581 = vmatprep.subr.bf16.mxu0 %v7137_v0 }
  0x41   : > { %741 = vperm.xlu0 %6243, %v563_v13   ;;  %746 = vperm.xlu1 %6244, %v564_v14   ;;  %v598_v13 = vld [vmem:[%s10035_s4 + $0x1f8] sm:$0xff] }
  0x42   : > { %1582 = vmatpush1.bf16.msra.mxu0 %v386_v52  ;;  %v576_v52 = vld [vmem:[%s10035_s4 + $0x148] sm:$0xff] }
  0x43   : > { %1583 = vmatprep.subr.bf16.mxu0 %v7137_v0 }
  0x45   : > { %661 = vperm.xlu0 %6243, %v547_v15   ;;  %666 = vperm.xlu1 %6244, %v548_v16   ;;  %v349_v15 = vld [vmem:[%s7208_s10 + $0x130] sm:$0xff]  ;;  %v350_v16 = vld [vmem:[%s7208_s10 + $0x138] sm:$0xff] }
  0x46   : > { %1584 = vmatpush1.bf16.msra.mxu0 %v387_v59  ;;  %v6271_v59 = vld [vmem:[%s10032_s1 + $0x100] ss:$16 sps:$4 sm:$0xff]  }
  0x47   : > { %1585 = vmatprep.subr.bf16.mxu0 %v7137_v0 }
  0x49   : > { %751 = vperm.xlu0 %6243, %v565_v19   ;;  %756 = vperm.xlu1 %6244, %v566_v20   ;;  %v582_v19 = vld [vmem:[%s10035_s4 + $0x178] sm:$0xff]  ;;  %v6277_v20 = vld [vmem:[%s10032_s1 + $0x140] ss:$16 sps:$4 sm:$0xff]  }
  0x4a   : > { %1586 = vmatpush1.bf16.msra.mxu0 %v388_v62  ;;  %v343_v62 = vld [vmem:[%s7208_s10 + $0x100] sm:$0xff] }
  0x4b   : > { %1587 = vmatprep.subr.bf16.mxu0 %v7137_v0  ;;  %v391_v2 = vpack.c.bf16 %v344_v63, %v343_v62  ;;  %v6286_v62 = vld [vmem:[%s10032_s1 + $0x1a0] ss:$16 sps:$4 sm:$0xff]   ;;  %v6287_v63 = vld [vmem:[%s10032_s1 + $0x1c4] ss:$16 sps:$4 sm:$0xff]  }
  0x4d   : > { %671 = vperm.xlu0 %6243, %v549_v21   ;;  %676 = vperm.xlu1 %6244, %v550_v22   ;;  %v6278_v21 = vld [vmem:[%s10032_s1 + $0x164] ss:$16 sps:$4 sm:$0xff]  }
  0x4e   : > { %1588 = vmatpush1.bf16.msra.mxu0 %v389_v6  ;;  %v392_v6 = vpack.c.bf16 %v346_v4, %v345_v3  ;;  %v2281_v22 = vld [vmem:[%s10036_s5 + $0x80] sm:$0xff]  ;;  %v364_v3 = vld [vmem:[%s7208_s10 + $0x1a8] sm:$0xff] }
  0x4f   : > { %1589 = vmatprep.subr.bf16.mxu0 %v7137_v0 }
  0x51   : > { %841 = vperm.xlu0 %6243, %v583_v25   ;;  %846 = vperm.xlu1 %6244, %v584_v26   ;;  %v2282_v25 = vld [vmem:[%s10036_s5 + $0x88] sm:$0xff] }
  0x52   : > { %1590 = vmatpush1.bf16.msra.mxu0 %v390_v8  ;;  %v6274_v8 = vld [vmem:[%s10032_s1 + $0x120] ss:$16 sps:$4 sm:$0xff]  }
  0x53   : > { %1848 = vmatprep.subr.bf16.mxu0 %v7137_v0 }
  0x55   : > { %1592 = vmatmul.mubr.bf16.vlgmr.msra.gmra.mrb[0].mxu0 %v6245_v11  ;;  %761 = vperm.xlu0 %6243, %v567_v27   ;;  %v347_v11 = vld [vmem:[%s7208_s10 + $0x120] sm:$0xff]  ;;  %v353_v27 = vld [vmem:[%s7208_s10 + $0x150] sm:$0xff] }
  0x56   : > { %1599 = vmatprep.mubr.bf16.mxu0 %v6248_v12  ;;  %766 = vperm.xlu1 %6244, %v568_v28   ;;  %v348_v12 = vld [vmem:[%s7208_s10 + $0x128] sm:$0xff]  ;;  %v354_v28 = vld [vmem:[%s7208_s10 + $0x158] sm:$0xff] }
  0x57   : > { %1849 = vmatpush1.bf16.msra.mxu0 %v391_v2  ;;  %v393_v14 = vpack.c.bf16 %v348_v12, %v347_v11  ;;  %v363_v2 = vld [vmem:[%s7208_s10 + $0x1a0] sm:$0xff]  ;;  %v2272_v12 = vld [vmem:[%s10036_s5 + $0x38] sm:$0xff] }
  0x58   : > { %1850 = vmatprep.subr.bf16.mxu0 %v7137_v0 }
  0x59   : > { %851 = vperm.xlu0 %6243, %v585_v31   ;;  %v2266_v31 = vld [vmem:[%s10036_s5 + $0x8] sm:$0xff] }
  0x5a   : > { %856 = vperm.xlu1 %6244, %v586_v32   ;;  %v6280_v32 = vld [vmem:[%s10032_s1 + $0x160] ss:$16 sps:$4 sm:$0xff]  }
  0x5b   : > { %1851 = vmatpush1.bf16.msra.mxu0 %v392_v6  ;;  %v401_v6 = vpack.c.bf16 %v364_v3, %v363_v2  ;;  %v6301_v2 = vld [vmem:[%s10032_s1 + $0x240] ss:$16 sps:$4 sm:$0xff]  }
  0x5c   : > { %1852 = vmatprep.subr.bf16.mxu0 %v7137_v0 }
  0x5d   : > { %1600 = vmatmul.mubr.bf16.gmra.mrb[4].mxu0 %v6250_v17  ;;  %771 = vperm.xlu0 %6243, %v569_v33   ;;  %v581_v17 = vld [vmem:[%s10035_s4 + $0x170] sm:$0xff] }
  0x5e   : > { %1607 = vmatprep.mubr.bf16.mxu0 %v6251_v18  ;;  %776 = vperm.xlu1 %6244, %v570_v34   ;;  %v394_v18 = vpack.c.bf16 %v350_v16, %v349_v15  ;;  %v6281_v33 = vld [vmem:[%s10032_s1 + $0x184] ss:$16 sps:$4 sm:$0xff]  }
  0x5f   : > { %1853 = vmatpush1.bf16.msra.mxu0 %v393_v14  ;;  %v6290_v14 = vld [vmem:[%s10032_s1 + $0x1e4] ss:$16 sps:$4 sm:$0xff]  }
  0x60   : > { %1854 = vmatprep.subr.bf16.mxu0 %v7137_v0 }
  0x61   : > { %861 = vperm.xlu0 %6243, %v587_v37   ;;  %v355_v37 = vld [vmem:[%s7208_s10 + $0x160] sm:$0xff] }
  0x62   : > { %866 = vperm.xlu1 %6244, %v588_v38   ;;  %v356_v38 = vld [vmem:[%s7208_s10 + $0x168] sm:$0xff] }
  0x63   : > { %1855 = vmatpush1.bf16.msra.mxu0 %v394_v18  ;;  %v367_v18 = vld [vmem:[%s7208_s10 + $0x1c0] sm:$0xff] }
  0x64   : > { %1856 = vmatprep.subr.bf16.mxu0 %v7137_v0 }
  0x65   : > { %1608 = vmatmul.mubr.bf16.gmra.mrb[8].mxu0 %v6253_v23  ;;  %781 = vperm.xlu0 %6243, %v571_v39   ;;  %v351_v23 = vld [vmem:[%s7208_s10 + $0x140] sm:$0xff]  ;;  %v2284_v39 = vld [vmem:[%s10036_s5 + $0x98] sm:$0xff] }
  0x66   : > { %1615 = vmatprep.mubr.bf16.mxu0 %v6254_v24  ;;  %786 = vperm.xlu1 %6244, %v572_v40   ;;  %v352_v24 = vld [vmem:[%s7208_s10 + $0x148] sm:$0xff]  ;;  %v397_v40 = vpack.c.bf16 %v356_v38, %v355_v37  ;;  %v373_v38 = vld [vmem:[%s7208_s10 + $0x1f0] sm:$0xff] }
  0x67   : > { %v395_v26 = vpack.c.bf16 %v352_v24, %v351_v23  ;;  %v370_v23 = vld [vmem:[%s7208_s10 + $0x1d8] sm:$0xff]  ;;  %v2273_v24 = vld [vmem:[%s10036_s5 + $0x40] sm:$0xff] }
  0x69   : > { %871 = vperm.xlu0 %6243, %v589_v43   ;;  %1857 = vmatpush1.bf16.msra.mxu0 %v395_v26  ;;  %v2267_v43 = vld [vmem:[%s10036_s5 + $0x10] sm:$0xff] }
  0x6a   : > { %876 = vperm.xlu1 %6244, %v590_v44   ;;  %1858 = vmatprep.subr.bf16.mxu0 %v7137_v0 }
  0x6d   : > { %1616 = vmatmul.mubr.bf16.gmra.mrb[12].mxu0 %v6256_v29  ;;  %791 = vperm.xlu0 %6243, %v573_v45   ;;  %v2265_v29 = vld [vmem:[%s10036_s5] sm:$0xff] }
  0x6e   : > { %1623 = vmatprep.mubr.bf16.mxu0 %v6257_v30  ;;  %796 = vperm.xlu1 %6244, %v574_v46   ;;  %v396_v30 = vpack.c.bf16 %v354_v28, %v353_v27  ;;  %v2268_v46 = vld [vmem:[%s10036_s5 + $0x18] sm:$0xff]  ;;  %v2274_v27 = vld [vmem:[%s10036_s5 + $0x48] sm:$0xff]  ;;  %v6292_v28 = vld [vmem:[%s10032_s1 + $0x1e0] ss:$16 sps:$4 sm:$0xff]  }
  0x70   : > { %1859 = vmatpush1.bf16.msra.mxu0 %v396_v30  ;;  %v6293_v30 = vld [vmem:[%s10032_s1 + $0x204] ss:$16 sps:$4 sm:$0xff]  }
  0x71   : > { %881 = vperm.xlu0 %6243, %v591_v49   ;;  %1860 = vmatprep.subr.bf16.mxu0 %v7137_v0  ;;  %v6284_v49 = vld [vmem:[%s10032_s1 + $0x1a4] ss:$16 sps:$4 sm:$0xff]  }
  0x72   : > { %886 = vperm.xlu1 %6244, %v592_v50   ;;  %v2285_v50 = vld [vmem:[%s10036_s5 + $0xa0] sm:$0xff] }
  0x74   : > { %1861 = vmatpush1.bf16.msra.mxu0 %v397_v40  ;;  %v374_v40 = vld [vmem:[%s7208_s10 + $0x1f8] sm:$0xff] }
  0x75   : > { %1624 = vmatmul.mubr.bf16.gmra.mrb[16].mxu0 %v6259_v35  ;;  %801 = vperm.xlu0 %6243, %v575_v51   ;;  %v359_v51 = vld [vmem:[%s7208_s10 + $0x180] sm:$0xff] }
  0x76   : > { %1631 = vmatprep.mubr.bf16.mxu0 %v6260_v36  ;;  %806 = vperm.xlu1 %6244, %v576_v52   ;;  %v2283_v36 = vld [vmem:[%s10036_s5 + $0x90] sm:$0xff]  ;;  %v360_v52 = vld [vmem:[%s7208_s10 + $0x188] sm:$0xff] }
  0x77   : > { %1862 = vmatprep.subr.bf16.mxu0 %v7137_v0 }
  0x79   : > { %891 = vperm.xlu0 %6243, %v593_v55   ;;  %v361_v55 = vld [vmem:[%s7208_s10 + $0x190] sm:$0xff] }
  0x7a   : > { %896 = vperm.xlu1 %6244, %v594_v56  }
  0x7d   : > { %1632 = vmatmul.mubr.bf16.gmra.mrb[20].mxu0 %v6262_v41  ;;  %811 = vperm.xlu0 %6243, %v577_v57   ;;  %v357_v41 = vld [vmem:[%s7208_s10 + $0x170] sm:$0xff]  ;;  %v362_v57 = vld [vmem:[%s7208_s10 + $0x198] sm:$0xff] }
  0x7e   : > { %1639 = vmatprep.mubr.bf16.mxu0 %v6263_v42  ;;  %816 = vperm.xlu1 %6244, %v578_v58   ;;  %v358_v42 = vld [vmem:[%s7208_s10 + $0x178] sm:$0xff] }
  0x7f   : > { %v398_v44 = vpack.c.bf16 %v358_v42, %v357_v41  ;;  %v2275_v42 = vld [vmem:[%s10036_s5 + $0x50] sm:$0xff] }
  0x81   : > { %901 = vperm.xlu0 %6243, %v595_v61   ;;  %1863 = vmatpush1.bf16.msra.mxu0 %v398_v44  ;;  %v2270_v61 = vld [vmem:[%s10036_s5 + $0x28] sm:$0xff]  ;;  %v2276_v44 = vld [vmem:[%s10036_s5 + $0x58] sm:$0xff] }
  0x82   : > { %906 = vperm.xlu1 %6244, %v596_v1   ;;  %1864 = vmatprep.subr.bf16.mxu0 %v7137_v0  ;;  %v2287_v1 = vld [vmem:[%s10036_s5 + $0xb0] sm:$0xff] }
  0x85   : > { %1640 = vmatmul.mubr.bf16.gmra.mrb[24].mxu0 %v6265_v47  ;;  %821 = vperm.xlu0 %6243, %v579_v5   ;;  %v6283_v47 = vld [vmem:[%s10032_s1 + $0x180] ss:$16 sps:$4 sm:$0xff]   ;;  %v2288_v5 = vld [vmem:[%s10036_s5 + $0xb8] sm:$0xff] }
  0x86   : > { %1647 = vmatprep.mubr.bf16.mxu0 %v6266_v48  ;;  %826 = vperm.xlu1 %6244, %v580_v7  }
  0x89   : > { %911 = vperm.xlu0 %6243, %v597_v10   ;;  %v2271_v10 = vld [vmem:[%s10036_s5 + $0x30] sm:$0xff] }
  0x8a   : > { %916 = vperm.xlu1 %6244, %v598_v13   ;;  %v6289_v13 = vld [vmem:[%s10032_s1 + $0x1c0] ss:$16 sps:$4 sm:$0xff]  }
  0x8d   : > { %1648 = vmatmul.mubr.bf16.gmra.mrb[28].mxu0 %v6268_v53  ;;  %831 = vperm.xlu0 %6243, %v581_v17   ;;  %v2286_v53 = vld [vmem:[%s10036_s5 + $0xa8] sm:$0xff]  ;;  %v2289_v17 = vld [vmem:[%s10036_s5 + $0xc0] sm:$0xff] }
  0x8e   : > { %1655 = vmatprep.mubr.bf16.mxu0 %v6269_v54  ;;  %836 = vperm.xlu1 %6244, %v582_v19   ;;  %v399_v54 = vpack.c.bf16 %v360_v52, %v359_v51  ;;  %v368_v19 = vld [vmem:[%s7208_s10 + $0x1c8] sm:$0xff]  ;;  %v2277_v52 = vld [vmem:[%s10036_s5 + $0x60] sm:$0xff] }
  0x90   : > { %v7551_v34 = vpop.permute.xlu0 %681  ;;  %v7553_v35 = vpop.permute.xlu1 %601  ;;  %1865 = vmatpush1.bf16.msra.mxu0 %v399_v54  ;;  %v6298_v54 = vld [vmem:[%s10032_s1 + $0x220] ss:$16 sps:$4 sm:$0xff]  }
  0x91   : > { %2379 = vperm.xlu0 %6243, %v2281_v22   ;;  %1866 = vmatprep.subr.bf16.mxu0 %v7137_v0  ;;  %v369_v22 = vld [vmem:[%s7208_s10 + $0x1d0] sm:$0xff] }
  0x92   : > { %2384 = vperm.xlu1 %6244, %v2282_v25   ;;  %v404_v25 = vpack.c.bf16 %v370_v23, %v369_v22  ;;  %v5113_v22 = vld [vmem:[%s10036_s5 + $0x118] sm:$0xff]  ;;  %v6307_v23 = vld [vmem:[%s10032_s1 + $0x280] ss:$16 sps:$4 sm:$0xff]  }
  0x94   : > { %v7569_v45 = vpop.permute.xlu0 %686  ;;  %v7578_v48 = vpop.permute.xlu1 %606 }
  0x95   : > { %1656 = vmatmul.mubr.bf16.gmra.mrb[32].mxu0 %v6271_v59  ;;  %2299 = vperm.xlu0 %6243, %v2265_v29   ;;  %v2269_v59 = vld [vmem:[%s10036_s5 + $0x20] sm:$0xff] }
  0x96   : > { %1663 = vmatprep.mubr.bf16.mxu0 %v6272_v60  ;;  %2304 = vperm.xlu1 %6244, %v2266_v31   ;;  %v400_v60 = vpack.c.bf16 %v362_v57, %v361_v55  ;;  %v2291_v31 = vld [vmem:[%s10036_s5 + $0xd0] sm:$0xff] }
  0x97   : > { %v6299_v55 = vld [vmem:[%s10032_s1 + $0x244] ss:$16 sps:$4 sm:$0xff]  }
  0x98   : > { %v7593_v56 = vpop.permute.xlu0 %691  ;;  %v7596_v58 = vpop.permute.xlu1 %696  ;;  %1867 = vmatpush1.bf16.msra.mxu0 %v400_v60  ;;  %v2295_v60 = vld [vmem:[%s10036_s5 + $0xf0] sm:$0xff] }
  0x99   : > { %2389 = vperm.xlu0 %6243, %v2283_v36   ;;  %1868 = vmatprep.subr.bf16.mxu0 %v7137_v0  ;;  %v2292_v36 = vld [vmem:[%s10036_s5 + $0xd8] sm:$0xff] }
  0x9a   : > { %2394 = vperm.xlu1 %6244, %v2284_v39  }
  0x9c   : > { %v7616_v4 = vpop.permute.xlu0 %611  ;;  %v7622_v7 = vpop.permute.xlu1 %616  ;;  %1869 = vmatpush1.bf16.msra.mxu0 %v401_v6  ;;  %v5126_v6 = vld [vmem:[%s10036_s5 + $0x180] sm:$0xff] }
  0x9d   : > { %1664 = vmatmul.mubr.bf16.gmra.mrb[36].mxu0 %v6274_v8  ;;  %2309 = vperm.xlu0 %6243, %v2267_v43   ;;  %v365_v8 = vld [vmem:[%s7208_s10 + $0x1b0] sm:$0xff]  ;;  %v406_v43 = vpack.c.bf16 %v374_v40, %v373_v38 }
  0x9e   : > { %1671 = vmatprep.mubr.bf16.mxu0 %v6275_v9  ;;  %2314 = vperm.xlu1 %6244, %v2268_v46   ;;  %v366_v9 = vld [vmem:[%s7208_s10 + $0x1b8] sm:$0xff]  ;;  %v6295_v46 = vld [vmem:[%s10032_s1 + $0x200] ss:$16 sps:$4 sm:$0xff]   ;;  %v6311_v38 = vld [vmem:[%s10032_s1 + $0x2c4] ss:$16 sps:$4 sm:$0xff]  }
  0x9f   : > { %v402_v11 = vpack.c.bf16 %v366_v9, %v365_v8  ;;  %1870 = vmatprep.subr.bf16.mxu0 %v7137_v0  ;;  %v5127_v8 = vld [vmem:[%s10036_s5 + $0x188] sm:$0xff]  ;;  %v5132_v40 = vld [vmem:[%s10036_s5 + $0x1b0] sm:$0xff] }
  0xa0   : > { %v7639_v15 = vpop.permute.xlu0 %701  ;;  %v7641_v16 = vpop.permute.xlu1 %706 }
  0xa1   : > { %2399 = vperm.xlu0 %6243, %v2285_v50   ;;  %1871 = vmatpush1.bf16.msra.mxu0 %v402_v11  ;;  %v5110_v11 = vld [vmem:[%s10036_s5 + $0x100] sm:$0xff] }
  0xa2   : > { %2404 = vperm.xlu1 %6244, %v2286_v53   ;;  %1872 = vmatprep.subr.bf16.mxu0 %v7137_v0  ;;  %v2278_v53 = vld [vmem:[%s10036_s5 + $0x68] sm:$0xff] }
  0xa4   : > { %v7657_v26 = vpop.permute.xlu0 %621  ;;  %v7666_v29 = vpop.permute.xlu1 %626 }
  0xa5   : > { %1672 = vmatmul.mubr.bf16.gmra.mrb[40].mxu0 %v6277_v20  ;;  %2319 = vperm.xlu0 %6243, %v2269_v59   ;;  %v2290_v20 = vld [vmem:[%s10036_s5 + $0xc8] sm:$0xff] }
  0xa6   : > { %1679 = vmatprep.mubr.bf16.mxu0 %v6278_v21  ;;  %2324 = vperm.xlu1 %6244, %v2270_v61   ;;  %v403_v21 = vpack.c.bf16 %v368_v19, %v367_v18  ;;  %v2296_v61 = vld [vmem:[%s10036_s5 + $0xf8] sm:$0xff] }
  0xa7   : > { %v5129_v19 = vld [vmem:[%s10036_s5 + $0x198] sm:$0xff] }
  0xa8   : > { %1873 = vmatpush1.bf16.msra.mxu0 %v403_v21  ;;  %v7681_v39 = vpop.permute.xlu0 %711  ;;  %v7684_v41 = vpop.permute.xlu1 %716  ;;  %v5112_v21 = vld [vmem:[%s10036_s5 + $0x110] sm:$0xff] }
  0xa9   : > { %2409 = vperm.xlu0 %6243, %v2287_v1   ;;  %1874 = vmatprep.subr.bf16.mxu0 %v7137_v0  ;;  %v2280_v1 = vld [vmem:[%s10036_s5 + $0x78] sm:$0xff] }
  0xaa   : > { %2414 = vperm.xlu1 %6244, %v2288_v5   ;;  %v6302_v5 = vld [vmem:[%s10032_s1 + $0x264] ss:$16 sps:$4 sm:$0xff]  }
  0xac   : > { %1875 = vmatpush1.bf16.msra.mxu0 %v404_v25  ;;  %v7702_v50 = vpop.permute.xlu0 %631  ;;  %v7707_v51 = vpop.permute.xlu1 %636 }
  0xad   : > { %1680 = vmatmul.mubr.bf16.gmra.mrb[44].mxu0 %v6280_v32  ;;  %2329 = vperm.xlu0 %6243, %v2271_v10   ;;  %v371_v32 = vld [vmem:[%s7208_s10 + $0x1e0] sm:$0xff] }
  0xae   : > { %1687 = vmatprep.mubr.bf16.mxu0 %v6281_v33  ;;  %2334 = vperm.xlu1 %6244, %v2272_v12   ;;  %v372_v33 = vld [vmem:[%s7208_s10 + $0x1e8] sm:$0xff]  ;;  %s309_s10 = scalar_lea.vmem %s10038_s7, %s5281_s16 }
  0xaf   : > { %1876 = vmatprep.subr.bf16.mxu0 %v7137_v0  ;;  %v405_v37 = vpack.c.bf16 %v372_v33, %v371_v32  ;;  %v5111_v12 = vld [vmem:[%s10036_s5 + $0x108] sm:$0xff] }
  0xb0   : > { %v7721_v57 = vpop.permute.xlu0 %721  ;;  %v7723_v59 = vpop.permute.xlu1 %726  ;;  %v5115_v33 = vld [vmem:[%s10036_s5 + $0x128] sm:$0xff] }
  0xb1   : > { %2419 = vperm.xlu0 %6243, %v2289_v17   ;;  %1877 = vmatpush1.bf16.msra.mxu0 %v405_v37  ;;  %v5128_v17 = vld [vmem:[%s10036_s5 + $0x190] sm:$0xff] }
  0xb2   : > { %2424 = vperm.xlu1 %6244, %v2290_v20   ;;  %1878 = vmatprep.subr.bf16.mxu0 %v7137_v0  ;;  %v2294_v0 = vld [vmem:[%s10036_s5 + $0xe8] sm:$0xff] }
  0xb4   : > { %v7742_v3 = vpop.permute.xlu1 %646 }
  0xb5   : > { %1688 = vmatmul.mubr.bf16.gmra.mrb[48].mxu0 %v6283_v47  ;;  %2339 = vperm.xlu0 %6243, %v2273_v24   ;;  %v6296_v47 = vld [vmem:[%s10032_s1 + $0x224] ss:$16 sps:$4 sm:$0xff]  }
  0xb6   : > { %1695 = vmatprep.mubr.bf16.mxu0 %v6284_v49  ;;  %2344 = vperm.xlu1 %6244, %v2274_v27   ;;  %v2293_v49 = vld [vmem:[%s10036_s5 + $0xe0] sm:$0xff] }
  0xb7   : > { %1879 = vmatpush1.bf16.msra.mxu0 %v406_v43  ;;  %v6308_v24 = vld [vmem:[%s10032_s1 + $0x2a4] ss:$16 sps:$4 sm:$0xff]  }
  0xb8   : > { %v7755_v10 = vpop.permute.xlu1 %736 }
  0xb9   : > { %2429 = vperm.xlu0 %6243, %v2291_v31   ;;  %v5114_v31 = vld [vmem:[%s10036_s5 + $0x120] sm:$0xff] }
  0xba   : > { %2434 = vperm.xlu1 %6244, %v2292_v36   ;;  %v6310_v36 = vld [vmem:[%s10032_s1 + $0x2a0] ss:$16 sps:$4 sm:$0xff]  }
  0xbc   : > { %v7777_v20 = vpop.permute.xlu1 %656 }
  0xbd   : > { %1696 = vmatmul.mubr.bf16.gmra.mrb[52].mxu0 %v6286_v62  ;;  %2349 = vperm.xlu0 %6243, %v2275_v42   ;;  %v2279_v62 = vld [vmem:[%s10036_s5 + $0x70] sm:$0xff]  ;;  %v5133_v42 = vld [vmem:[%s10036_s5 + $0x1b8] sm:$0xff] }
  0xbe   : > { %1703 = vmatprep.mubr.bf16.mxu0 %v6287_v63  ;;  %2354 = vperm.xlu1 %6244, %v2276_v44   ;;  %v7734_v63 = vpop.permute.xlu0 %641 }
  0xc0   : > { %v7793_v27 = vpop.permute.xlu1 %746 }
  0xc1   : > { %2439 = vperm.xlu0 %6243, %v2293_v49   ;;  %v6313_v49 = vld [vmem:[%s10032_s1 + $0x2c0] ss:$16 sps:$4 sm:$0xff]  }
  0xc2   : > { %2444 = vperm.xlu1 %6244, %v2294_v0   ;;  %v7753_v9 = vpop.permute.xlu0 %731  ;;  %v6314_v0 = vld [vmem:[%s10032_s1 + $0x2e4] ss:$16 sps:$4 sm:$0xff]  }
  0xc4   : > { %v7812_v37 = vpop.permute.xlu1 %666 }
  0xc5   : > { %1704 = vmatmul.mubr.bf16.gmra.mrb[56].mxu0 %v6289_v13  ;;  %2359 = vperm.xlu0 %6243, %v2277_v52   ;;  %v6304_v13 = vld [vmem:[%s10032_s1 + $0x260] ss:$16 sps:$4 sm:$0xff]  }
  0xc6   : > { %1711 = vmatprep.mubr.bf16.mxu0 %v6290_v14  ;;  %2364 = vperm.xlu1 %6244, %v2278_v53   ;;  %v6305_v14 = vld [vmem:[%s10032_s1 + $0x284] ss:$16 sps:$4 sm:$0xff]   ;;  %v7772_v18 = vpop.permute.xlu0 %651 }
  0xc7   : > { %v5134_v52 = vld [vmem:[%s10036_s5 + $0x1c0] sm:$0xff] }
  0xc8   : > { %v7825_v44 = vpop.permute.xlu1 %756 }
  0xc9   : > { %2449 = vperm.xlu0 %6243, %v2295_v60   ;;  %v5118_v60 = vld [vmem:[%s10036_s5 + $0x140] sm:$0xff] }
  0xca   : > { %2454 = vperm.xlu1 %6244, %v2296_v61   ;;  %v7791_v25 = vpop.permute.xlu0 %741  ;;  %v5119_v61 = vld [vmem:[%s10036_s5 + $0x148] sm:$0xff] }
  0xcd   : > { %1712 = vmatmul.mubr.bf16.gmra.mrb[60].mxu0 %v6292_v28  ;;  %2369 = vperm.xlu0 %6243, %v2279_v62   ;;  %v5130_v28 = vld [vmem:[%s10036_s5 + $0x1a0] sm:$0xff] }
  0xce   : > { %1719 = vmatprep.mubr.bf16.mxu0 %v6293_v30  ;;  %2374 = vperm.xlu1 %6244, %v2280_v1   ;;  %v5131_v30 = vld [vmem:[%s10036_s5 + $0x1a8] sm:$0xff]  ;;  %v7804_v32 = vpop.permute.xlu0 %661  ;;  %v6316_v62 = vld [vmem:[%s10032_s1 + $0x2e0] ss:$16 sps:$4 sm:$0xff]   ;;  %v6317_v1 = vld [vmem:[%s10032_s1 + $0x304] ss:$16 sps:$4 sm:$0xff]  }
  0xd1   : > { %3183 = vperm.xlu0 %6243, %v5126_v6   ;;  %v5136_v6 = vld [vmem:[%s10036_s5 + $0x1d0] sm:$0xff] }
  0xd2   : > { %3188 = vperm.xlu1 %6244, %v5127_v8   ;;  %v7823_v43 = vpop.permute.xlu0 %751  ;;  %v5137_v8 = vld [vmem:[%s10036_s5 + $0x1d8] sm:$0xff] }
  0xd5   : > { %1720 = vmatmul.mubr.bf16.gmra.mrb[64].mxu0 %v6295_v46  ;;  %3103 = vperm.xlu0 %6243, %v5110_v11   ;;  %v5116_v46 = vld [vmem:[%s10036_s5 + $0x130] sm:$0xff] }
  0xd6   : > { %1727 = vmatprep.mubr.bf16.mxu0 %v6296_v47  ;;  %3108 = vperm.xlu1 %6244, %v5111_v12   ;;  %v5117_v47 = vld [vmem:[%s10036_s5 + $0x138] sm:$0xff]  ;;  %v7842_v53 = vpop.permute.xlu0 %671  ;;  %v5120_v11 = vld [vmem:[%s10036_s5 + $0x150] sm:$0xff] }
  0xd9   : > { %3193 = vperm.xlu0 %6243, %v5128_v17  }
  0xda   : > { %3198 = vperm.xlu1 %6244, %v5129_v19   ;;  %v6320_v19 = vld [vmem:[%s10032_s1 + $0x324] ss:$16 sps:$4 sm:$0xff]  }
  0xdd   : > { %1728 = vmatmul.mubr.bf16.gmra.mrb[68].mxu0 %v6298_v54  ;;  %3113 = vperm.xlu0 %6243, %v5112_v21   ;;  %v5135_v54 = vld [vmem:[%s10036_s5 + $0x1c8] sm:$0xff]  ;;  %v5138_v21 = vld [vmem:[%s10036_s5 + $0x1e0] sm:$0xff] }
  0xde   : > { %1735 = vmatprep.mubr.bf16.mxu0 %v6299_v55  ;;  %3118 = vperm.xlu1 %6244, %v5113_v22   ;;  %v7847_v55 = vpop.permute.xlu1 %676  ;;  %v5139_v22 = vld [vmem:[%s10036_s5 + $0x1e8] sm:$0xff] }
  0xe1   : > { %3203 = vperm.xlu0 %6243, %v5130_v28   ;;  %v5122_v28 = vld [vmem:[%s10036_s5 + $0x160] sm:$0xff] }
  0xe2   : > { %3208 = vperm.xlu1 %6244, %v5131_v30   ;;  %v5123_v30 = vld [vmem:[%s10036_s5 + $0x168] sm:$0xff] }
  0xe5   : > { %1736 = vmatmul.mubr.bf16.gmra.mrb[72].mxu0 %v6301_v2  ;;  %3123 = vperm.xlu0 %6243, %v5114_v31   ;;  %v7861_v2 = vpop.permute.xlu0 %841  ;;  %v6322_v31 = vld [vmem:[%s10032_s1 + $0x320] ss:$16 sps:$4 sm:$0xff]  }
  0xe6   : > { %1743 = vmatprep.mubr.bf16.mxu0 %v6302_v5  ;;  %3128 = vperm.xlu1 %6244, %v5115_v33   ;;  %v7863_v5 = vpop.permute.xlu1 %846  ;;  %v6323_v33 = vld [vmem:[%s10032_s1 + $0x344] ss:$16 sps:$4 sm:$0xff]  }
  0xe9   : > { %3213 = vperm.xlu0 %6243, %v5132_v40   ;;  %v7874_v12 = vpop.permute.xlu0 %761  ;;  %v5141_v40 = vld [vmem:[%s10036_s5 + $0x1f8] sm:$0xff] }
  0xea   : > { %3218 = vperm.xlu1 %6244, %v5133_v42   ;;  %v7882_v17 = vpop.permute.xlu1 %766 }
  0xed   : > { %1744 = vmatmul.mubr.bf16.gmra.mrb[76].mxu0 %v6304_v13  ;;  %3133 = vperm.xlu0 %6243, %v5116_v46   ;;  %v5121_v13 = vld [vmem:[%s10036_s5 + $0x158] sm:$0xff]  ;;  %v5124_v46 = vld [vmem:[%s10036_s5 + $0x170] sm:$0xff] }
  0xee   : > { %1751 = vmatprep.mubr.bf16.mxu0 %v6305_v14  ;;  %3138 = vperm.xlu1 %6244, %v5117_v47   ;;  %v6319_v14 = vld [vmem:[%s10032_s1 + $0x300] ss:$16 sps:$4 sm:$0xff]   ;;  %v5125_v47 = vld [vmem:[%s10036_s5 + $0x178] sm:$0xff] }
  0xf1   : > { %3223 = vperm.xlu0 %6243, %v5134_v52  }
  0xf2   : > { %3228 = vperm.xlu1 %6244, %v5135_v54  }
  0xf5   : > { %1752 = vmatmul.mubr.bf16.gmra.mrb[80].mxu0 %v6307_v23  ;;  %3143 = vperm.xlu0 %6243, %v5118_v60   ;;  %v7893_v23 = vpop.permute.xlu0 %851  ;;  %v5222_v60 = vld [vmem:[%s10036_s5 + $0x280] sm:$0xff] }
  0xf6   : > { %1759 = vmatprep.mubr.bf16.mxu0 %v6308_v24  ;;  %3148 = vperm.xlu1 %6244, %v5119_v61   ;;  %v7895_v24 = vpop.permute.xlu1 %856  ;;  %v5223_v61 = vld [vmem:[%s10036_s5 + $0x288] sm:$0xff] }
  0xf7   : > { %10044 = vst [vmem:[#allocation2_spill] sm:$0xff] %v7895_v24 }
  0xf9   : > { %3233 = vperm.xlu0 %6243, %v5136_v6   ;;  %v5207_v6 = vld [vmem:[%s10036_s5 + $0x208] sm:$0xff] }
  0xfa   : > { %3238 = vperm.xlu1 %6244, %v5137_v8   ;;  %v7917_v42 = vpop.permute.xlu1 %776  ;;  %v6328_v8 = vld [vmem:[%s10032_s1 + $0x360] ss:$16 sps:$4 sm:$0xff]  }
  0xfd   : > { %1760 = vmatmul.mubr.bf16.gmra.mrb[84].mxu0 %v6310_v36  ;;  %3153 = vperm.xlu0 %6243, %v5120_v11   ;;  %v5140_v36 = vld [vmem:[%s10036_s5 + $0x1f0] sm:$0xff] }
  0xfe   : > { %1767 = vmatprep.mubr.bf16.mxu0 %v6311_v38  ;;  %3158 = vperm.xlu1 %6244, %v5121_v13   ;;  %v7912_v38 = vpop.permute.xlu0 %771  ;;  %v7933_v54 = vpop.permute.xlu1 %866  ;;  %v6329_v13 = vld [vmem:[%s10032_s1 + $0x384] ss:$16 sps:$4 sm:$0xff]  }
  0xff   : > { %10046 = vst [vmem:[#allocation4_spill] sm:$0xff] %v7933_v54  ;;  %v6428_v54 = vld [vmem:[%s10032_s1 + $0x3ac] ss:$16 sps:$4 sm:$0xff]  }
 0x101   : > { %3243 = vperm.xlu0 %6243, %v5138_v21  }
 0x102   : > { %3248 = vperm.xlu1 %6244, %v5139_v22   ;;  %v7931_v52 = vpop.permute.xlu0 %861  ;;  %v7952_v11 = vpop.permute.xlu1 %786 }
 0x103   : > { %10045 = vst [vmem:[#allocation3_spill] sm:$0xff] %v7931_v52 }
 0x105   : > { %1768 = vmatmul.mubr.bf16.gmra.mrb[88].mxu0 %v6313_v49  ;;  %3163 = vperm.xlu0 %6243, %v5122_v28   ;;  %v6325_v49 = vld [vmem:[%s10032_s1 + $0x340] ss:$16 sps:$4 sm:$0xff]  }
 0x106   : > { %1775 = vmatprep.mubr.bf16.mxu0 %v6314_v0  ;;  %3168 = vperm.xlu1 %6244, %v5123_v30   ;;  %v6326_v0 = vld [vmem:[%s10032_s1 + $0x364] ss:$16 sps:$4 sm:$0xff]   ;;  %v7965_v22 = vpop.permute.xlu1 %876  ;;  %v5209_v30 = vld [vmem:[%s10036_s5 + $0x218] sm:$0xff] }
 0x107   : > { %10048 = vst [vmem:[#allocation6_spill] sm:$0xff] %v7965_v22  ;;  %v5208_v28 = vld [vmem:[%s10036_s5 + $0x210] sm:$0xff] }
 0x109   : > { %3253 = vperm.xlu0 %6243, %v5140_v36   ;;  %v5226_v36 = vld [vmem:[%s10036_s5 + $0x2a0] sm:$0xff] }
 0x10a   : > { %3258 = vperm.xlu1 %6244, %v5141_v40  }
 0x10d   : > { %1776 = vmatmul.mubr.bf16.gmra.mrb[92].mxu0 %v6316_v62  ;;  %3173 = vperm.xlu0 %6243, %v5124_v46   ;;  %v5206_v62 = vld [vmem:[%s10036_s5 + $0x200] sm:$0xff]  ;;  %v5227_v46 = vld [vmem:[%s10036_s5 + $0x2a8] sm:$0xff] }
 0x10e   : > { %1783 = vmatprep.mubr.bf16.mxu0 %v6317_v1  ;;  %3178 = vperm.xlu1 %6244, %v5125_v47   ;;  %v7944_v1 = vpop.permute.xlu0 %781  ;;  %v7987_v47 = vpop.permute.xlu1 %796 }
 0x111   : > { %3987 = vperm.xlu0 %6243, %v5222_v60   ;;  %v6334_v60 = vld [vmem:[%s10032_s1 + $0x3a0] ss:$16 sps:$4 sm:$0xff]  }
 0x112   : > { %3992 = vperm.xlu1 %6244, %v5223_v61   ;;  %v7963_v21 = vpop.permute.xlu0 %871  ;;  %v6335_v61 = vld [vmem:[%s10032_s1 + $0x3c4] ss:$16 sps:$4 sm:$0xff]  }
 0x113   : > { %10047 = vst [vmem:[#allocation5_spill] sm:$0xff] %v7963_v21 }
 0x115   : > { %1784 = vmatmul.mubr.bf16.gmra.mrb[96].mxu0 %v6319_v14  ;;  %3907 = vperm.xlu0 %6243, %v5206_v62   ;;  %v5224_v14 = vld [vmem:[%s10036_s5 + $0x290] sm:$0xff] }
 0x116   : > { %1791 = vmatprep.mubr.bf16.mxu0 %v6320_v19  ;;  %3912 = vperm.xlu1 %6244, %v5207_v6   ;;  %v5225_v19 = vld [vmem:[%s10036_s5 + $0x298] sm:$0xff]  ;;  %v7982_v40 = vpop.permute.xlu0 %791  ;;  %v8003_v6 = vpop.permute.xlu1 %886 }
 0x117   : > { %10050 = vst [vmem:[#allocation8_spill] sm:$0xff] %v8003_v6  ;;  %v6349_v6 = vld [vmem:[%s10032_s1 + $0x48] ss:$16 sps:$4 sm:$0xff]  }
 0x119   : > { %3997 = vperm.xlu0 %6243, %v5224_v14   ;;  %v5212_v14 = vld [vmem:[%s10036_s5 + $0x230] sm:$0xff] }
 0x11a   : > { %4002 = vperm.xlu1 %6244, %v5225_v19   ;;  %v8001_v62 = vpop.permute.xlu0 %881 }
 0x11b   : > { %10049 = vst [vmem:[#allocation7_spill] sm:$0xff] %v8001_v62 }
 0x11d   : > { %1792 = vmatmul.mubr.bf16.gmra.mrb[100].mxu0 %v6322_v31  ;;  %v6331_v31 = vld [vmem:[%s10032_s1 + $0x380] ss:$16 sps:$4 sm:$0xff]   ;;  %3917 = vperm.xlu0 %6243, %v5208_v28   ;;  %v5213_v28 = vld [vmem:[%s10036_s5 + $0x238] sm:$0xff] }
 0x11e   : > { %1799 = vmatprep.mubr.bf16.mxu0 %v6323_v33  ;;  %v6332_v33 = vld [vmem:[%s10032_s1 + $0x3a4] ss:$16 sps:$4 sm:$0xff]   ;;  %3922 = vperm.xlu1 %6244, %v5209_v30   ;;  %v8014_v19 = vpop.permute.xlu0 %801  ;;  %v6337_v30 = vld [vmem:[%s10032_s1 + $0x3c0] ss:$16 sps:$4 sm:$0xff]  }
 0x121   : > { %4007 = vperm.xlu0 %6243, %v5226_v36   ;;  %v5230_v36 = vld [vmem:[%s10036_s5 + $0x2c0] sm:$0xff] }
 0x122   : > { %4012 = vperm.xlu1 %6244, %v5227_v46   ;;  %v5231_v46 = vld [vmem:[%s10036_s5 + $0x2c8] sm:$0xff] }
 0x125   : > { %1800 = vmatmul.mubr.bf16.gmra.mrb[104].mxu0 %v6325_v49  ;;  %v5210_v49 = vld [vmem:[%s10036_s5 + $0x220] sm:$0xff] }
 0x126   : > { %1807 = vmatprep.mubr.bf16.mxu0 %v6326_v0  ;;  %v5211_v0 = vld [vmem:[%s10036_s5 + $0x228] sm:$0xff]  ;;  %3927 = vperm.xlu0 %6243, %v5210_v49   ;;  %v8033_v49 = vpop.permute.xlu0 %891 }
 0x127   : > { %3932 = vperm.xlu1 %6244, %v5211_v0   ;;  %10051 = vst [vmem:[#allocation9_spill] sm:$0xff] %v8033_v49 }
 0x12d   : > { %1808 = vmatmul.mubr.bf16.gmra.mrb[108].mxu0 %v6328_v8  ;;  %v5228_v8 = vld [vmem:[%s10036_s5 + $0x2b0] sm:$0xff] }
 0x12e   : > { %1815 = vmatprep.mubr.bf16.mxu0 %v6329_v13  ;;  %v5229_v13 = vld [vmem:[%s10036_s5 + $0x2b8] sm:$0xff]  ;;  %4017 = vperm.xlu0 %6243, %v5228_v8   ;;  %v6340_v8 = vld [vmem:[%s10032_s1 + $0x3e0] ss:$16 sps:$4 sm:$0xff]  }
 0x12f   : > { %4022 = vperm.xlu1 %6244, %v5229_v13   ;;  %v6343_v13 = vld [vmem:[%s10032_s1 + $0xc] ss:$16 sps:$4 sm:$0xff]  }
 0x132   : > { %3937 = vperm.xlu0 %6243, %v5212_v14   ;;  %v5232_v14 = vld [vmem:[%s10036_s5 + $0x2d0] sm:$0xff] }
 0x133   : > { %3942 = vperm.xlu1 %6244, %v5213_v28   ;;  %v8052_v28 = vpop.permute.xlu0 %811 }
 0x135   : > { %1816 = vmatmul.mubr.bf16.gmra.mrb[112].mxu0 %v6331_v31  ;;  %v8022_v31 = vpop.permute.xlu1 %806 }
 0x136   : > { %1823 = vmatprep.mubr.bf16.mxu0 %v6332_v33  ;;  %v6338_v33 = vld [vmem:[%s10032_s1 + $0x3e4] ss:$16 sps:$4 sm:$0xff]   ;;  %4027 = vperm.xlu0 %6243, %v5230_v36  }
 0x137   : > { %4032 = vperm.xlu1 %6244, %v5231_v46   ;;  %v5216_v36 = vld [vmem:[%s10036_s5 + $0x250] sm:$0xff]  ;;  %v5217_v46 = vld [vmem:[%s10036_s5 + $0x258] sm:$0xff] }
 0x139   : > { %v8035_v0 = vpop.permute.xlu1 %896 }
 0x13a   : > { %10052 = vst [vmem:[#allocation10_spill] sm:$0xff] %v8035_v0 }
 0x13d   : > { %1824 = vmatmul.mubr.bf16.gmra.mrb[116].mxu0 %v6334_v60  ;;  %v5214_v60 = vld [vmem:[%s10036_s5 + $0x240] sm:$0xff] }
 0x13e   : > { %1831 = vmatprep.mubr.bf16.mxu0 %v6335_v61  ;;  %v5215_v61 = vld [vmem:[%s10036_s5 + $0x248] sm:$0xff]  ;;  %3947 = vperm.xlu0 %6243, %v5214_v60  }
 0x13f   : > { %3952 = vperm.xlu1 %6244, %v5215_v61   ;;  %v6341_v60 = vld [vmem:[%s10032_s1 + $0x8] ss:$16 sps:$4 sm:$0xff]   ;;  %v6344_v61 = vld [vmem:[%s10032_s1 + $0x2c] ss:$16 sps:$4 sm:$0xff]  }
 0x142   : > { %4037 = vperm.xlu0 %6243, %v5232_v14   ;;  %v5234_v14 = vld [vmem:[%s10036_s5 + $0x2e0] sm:$0xff] }
 0x145   : > { %1832 = vmatmul.mubr.bf16.gmra.mrb[120].mxu0 %v6337_v30  ;;  %v5233_v30 = vld [vmem:[%s10036_s5 + $0x2d8] sm:$0xff] }
 0x146   : > { %1839 = vmatprep.mubr.bf16.mxu0 %v6338_v33  ;;  %v8057_v33 = vpop.permute.xlu1 %816  ;;  %4042 = vperm.xlu1 %6244, %v5233_v30   ;;  %v5235_v30 = vld [vmem:[%s10036_s5 + $0x2e8] sm:$0xff] }
 0x147   : > { %3957 = vperm.xlu0 %6243, %v5216_v36  }
 0x14a   : > { %3962 = vperm.xlu1 %6244, %v5217_v46   ;;  %v5219_v46 = vld [vmem:[%s10036_s5 + $0x268] sm:$0xff] }
 0x14b   : > { %4047 = vperm.xlu0 %6243, %v5234_v14   ;;  %v5237_v14 = vld [vmem:[%s10036_s5 + $0x2f8] sm:$0xff] }
 0x14d   : > { %1840 = vmatmul.mubr.bf16.gmra.mrb[124].mxu0 %v6340_v8  ;;  %v8071_v8 = vpop.permute.xlu0 %901 }
 0x14e   : > { %1880 = vmatprep.mubr.bf16.mxu0 %v6343_v13  ;;  %10053 = vst [vmem:[#allocation11_spill] sm:$0xff] %v8071_v8  ;;  %v8073_v13 = vpop.permute.xlu1 %906  ;;  %4052 = vperm.xlu1 %6244, %v5235_v30   ;;  %v5218_v8 = vld [vmem:[%s10036_s5 + $0x260] sm:$0xff] }
 0x14f   : > { %10054 = vst [vmem:[#allocation12_spill] sm:$0xff] %v8073_v13  ;;  %v6346_v13 = vld [vmem:[%s10032_s1 + $0x28] ss:$16 sps:$4 sm:$0xff]   ;;  %3967 = vperm.xlu0 %6243, %v5218_v8   ;;  %v5220_v8 = vld [vmem:[%s10036_s5 + $0x270] sm:$0xff] }
 0x151   : > { %v8084_v36 = vpop.permute.xlu0 %821 }
 0x152   : > { %v8092_v0 = vpop.permute.xlu1 %826  ;;  %3972 = vperm.xlu1 %6244, %v5219_v46   ;;  %v5221_v46 = vld [vmem:[%s10036_s5 + $0x278] sm:$0xff] }
 0x155   : > { %1881 = vmatmul.mubr.bf16.vlgmr.msra.gmra.mrb[0].mxu0 %v6341_v60  ;;  %v6347_v60 = vld [vmem:[%s10032_s1 + $0x4c] ss:$16 sps:$4 sm:$0xff]   ;;  %v8103_v30 = vpop.permute.xlu0 %911 }
 0x156   : > { %1888 = vmatprep.mubr.bf16.mxu0 %v6344_v61  ;;  %v5236_v61 = vld [vmem:[%s10036_s5 + $0x2f0] sm:$0xff]  ;;  %10055 = vst [vmem:[#allocation13_spill] sm:$0xff] %v8103_v30  ;;  %v8105_v49 = vpop.permute.xlu1 %916  ;;  %4062 = vperm.xlu1 %6244, %v5237_v14   ;;  %v4790_v14 = vld [vmem:[%s10037_s6 + $0x8] sm:$0xff] }
 0x157   : > { %4057 = vperm.xlu0 %6243, %v5236_v61   ;;  %10056 = vst [vmem:[#allocation14_spill] sm:$0xff] %v8105_v49  ;;  %v6352_v30 = vld [vmem:[%s10032_s1 + $0x68] ss:$16 sps:$4 sm:$0xff]  }
 0x159   : > { %v8122_v61 = vpop.permute.xlu0 %831 }
 0x15a   : > { %3982 = vperm.xlu1 %6244, %v5221_v46   ;;  %v8127_v49 = vpop.permute.xlu1 %836  ;;  %v4792_v46 = vld [vmem:[%s10037_s6 + $0x18] sm:$0xff] }
 0x15b   : > { %3977 = vperm.xlu0 %6243, %v5220_v8   ;;  %v4791_v8 = vld [vmem:[%s10037_s6 + $0x10] sm:$0xff] }
 0x15d   : > { %1889 = vmatmul.mubr.bf16.gmra.mrb[4].mxu0 %v6346_v13  ;;  %v6350_v13 = vld [vmem:[%s10032_s1 + $0x6c] ss:$16 sps:$4 sm:$0xff]   ;;  %v8141_v62 = vpop.permute.xlu0 %2379 }
 0x15e   : > { %1896 = vmatprep.mubr.bf16.mxu0 %v6347_v60  ;;  %v4789_v60 = vld [vmem:[%s10037_s6] sm:$0xff]  ;;  %4800 = vperm.xlu1 %6244, %v4790_v14   ;;  %10057 = vst [vmem:[#allocation15_spill] sm:$0xff] %v8141_v62  ;;  %v6356_v14 = vld [vmem:[%s10032_s1 + $0xac] ss:$16 sps:$4 sm:$0xff]   ;;  %v6358_v62 = vld [vmem:[%s10032_s1 + $0xa8] ss:$16 sps:$4 sm:$0xff]  }
 0x15f   : > { %4795 = vperm.xlu0 %6243, %v4789_v60   ;;  %v6355_v60 = vld [vmem:[%s10032_s1 + $0x88] ss:$16 sps:$4 sm:$0xff]  }
 0x163   : > { %4805 = vperm.xlu0 %6243, %v4791_v8   ;;  %v6359_v8 = vld [vmem:[%s10032_s1 + $0xcc] ss:$16 sps:$4 sm:$0xff]  }
 0x165   : > { %1897 = vmatmul.mubr.bf16.gmra.mrb[8].mxu0 %v6349_v6  ;;  %v6353_v6 = vld [vmem:[%s10032_s1 + $0x8c] ss:$16 sps:$4 sm:$0xff]  }
 0x166   : > { %1904 = vmatprep.mubr.bf16.mxu0 %v6350_v13  ;;  %v8143_v13 = vpop.permute.xlu1 %2384  ;;  %4810 = vperm.xlu1 %6244, %v4792_v46   ;;  %v6362_v46 = vld [vmem:[%s10032_s1 + $0xec] ss:$16 sps:$4 sm:$0xff]  }
 0x167   : > { %10058 = vst [vmem:[#allocation16_spill] sm:$0xff] %v8143_v13  ;;  %v6424_v13 = vld [vmem:[%s10032_s1 + $0x368] ss:$16 sps:$4 sm:$0xff]  }
 0x16d   : > { %1905 = vmatmul.mubr.bf16.gmra.mrb[12].mxu0 %v6352_v30  ;;  %v6361_v30 = vld [vmem:[%s10032_s1 + $0xc8] ss:$16 sps:$4 sm:$0xff]  }
 0x16e   : > { %1912 = vmatprep.mubr.bf16.mxu0 %v6353_v6  ;;  %v6364_v6 = vld [vmem:[%s10032_s1 + $0xe8] ss:$16 sps:$4 sm:$0xff]  }
 0x175   : > { %1913 = vmatmul.mubr.bf16.gmra.mrb[16].mxu0 %v6355_v60  ;;  %v6365_v60 = vld [vmem:[%s10032_s1 + $0x10c] ss:$16 sps:$4 sm:$0xff]  }
 0x176   : > { %1920 = vmatprep.mubr.bf16.mxu0 %v6356_v14  ;;  %v6368_v14 = vld [vmem:[%s10032_s1 + $0x12c] ss:$16 sps:$4 sm:$0xff]  }
 0x17d   : > { %1921 = vmatmul.mubr.bf16.gmra.mrb[20].mxu0 %v6358_v62  ;;  %v6367_v62 = vld [vmem:[%s10032_s1 + $0x108] ss:$16 sps:$4 sm:$0xff]  }
 0x17e   : > { %1928 = vmatprep.mubr.bf16.mxu0 %v6359_v8  ;;  %v6370_v8 = vld [vmem:[%s10032_s1 + $0x128] ss:$16 sps:$4 sm:$0xff]  }
 0x185   : > { %1929 = vmatmul.mubr.bf16.gmra.mrb[24].mxu0 %v6361_v30  ;;  %v6371_v30 = vld [vmem:[%s10032_s1 + $0x14c] ss:$16 sps:$4 sm:$0xff]  }
 0x186   : > { %1936 = vmatprep.mubr.bf16.mxu0 %v6362_v46  ;;  %v6373_v46 = vld [vmem:[%s10032_s1 + $0x148] ss:$16 sps:$4 sm:$0xff]  }
 0x18d   : > { %1937 = vmatmul.mubr.bf16.gmra.mrb[28].mxu0 %v6364_v6  ;;  %v6374_v6 = vld [vmem:[%s10032_s1 + $0x16c] ss:$16 sps:$4 sm:$0xff]  }
 0x18e   : > { %1944 = vmatprep.mubr.bf16.mxu0 %v6365_v60  ;;  %v6376_v60 = vld [vmem:[%s10032_s1 + $0x168] ss:$16 sps:$4 sm:$0xff]  }
 0x195   : > { %1945 = vmatmul.mubr.bf16.gmra.mrb[32].mxu0 %v6367_v62  ;;  %v6377_v62 = vld [vmem:[%s10032_s1 + $0x18c] ss:$16 sps:$4 sm:$0xff]  }
 0x196   : > { %1952 = vmatprep.mubr.bf16.mxu0 %v6368_v14  ;;  %v6379_v14 = vld [vmem:[%s10032_s1 + $0x188] ss:$16 sps:$4 sm:$0xff]  }
 0x19d   : > { %1953 = vmatmul.mubr.bf16.gmra.mrb[36].mxu0 %v6370_v8  ;;  %v6380_v8 = vld [vmem:[%s10032_s1 + $0x1ac] ss:$16 sps:$4 sm:$0xff]  }
 0x19e   : > { %1960 = vmatprep.mubr.bf16.mxu0 %v6371_v30  ;;  %v6382_v30 = vld [vmem:[%s10032_s1 + $0x1a8] ss:$16 sps:$4 sm:$0xff]  }
 0x1a5   : > { %1961 = vmatmul.mubr.bf16.gmra.mrb[40].mxu0 %v6373_v46  ;;  %v6383_v46 = vld [vmem:[%s10032_s1 + $0x1cc] ss:$16 sps:$4 sm:$0xff]  }
 0x1a6   : > { %1968 = vmatprep.mubr.bf16.mxu0 %v6374_v6  ;;  %v6385_v6 = vld [vmem:[%s10032_s1 + $0x1c8] ss:$16 sps:$4 sm:$0xff]  }
 0x1ad   : > { %1969 = vmatmul.mubr.bf16.gmra.mrb[44].mxu0 %v6376_v60  ;;  %v6386_v60 = vld [vmem:[%s10032_s1 + $0x1ec] ss:$16 sps:$4 sm:$0xff]  }
 0x1ae   : > { %1976 = vmatprep.mubr.bf16.mxu0 %v6377_v62  ;;  %v6388_v62 = vld [vmem:[%s10032_s1 + $0x1e8] ss:$16 sps:$4 sm:$0xff]  }
 0x1b5   : > { %1977 = vmatmul.mubr.bf16.gmra.mrb[48].mxu0 %v6379_v14  ;;  %v6389_v14 = vld [vmem:[%s10032_s1 + $0x20c] ss:$16 sps:$4 sm:$0xff]  }
 0x1b6   : > { %1984 = vmatprep.mubr.bf16.mxu0 %v6380_v8  ;;  %v6391_v8 = vld [vmem:[%s10032_s1 + $0x208] ss:$16 sps:$4 sm:$0xff]  }
 0x1bd   : > { %1985 = vmatmul.mubr.bf16.gmra.mrb[52].mxu0 %v6382_v30  ;;  %v6392_v30 = vld [vmem:[%s10032_s1 + $0x22c] ss:$16 sps:$4 sm:$0xff]  }
 0x1be   : > { %1992 = vmatprep.mubr.bf16.mxu0 %v6383_v46  ;;  %v6394_v46 = vld [vmem:[%s10032_s1 + $0x228] ss:$16 sps:$4 sm:$0xff]  }
 0x1c5   : > { %1993 = vmatmul.mubr.bf16.gmra.mrb[56].mxu0 %v6385_v6  ;;  %v6395_v6 = vld [vmem:[%s10032_s1 + $0x24c] ss:$16 sps:$4 sm:$0xff]  }
 0x1c6   : > { %2000 = vmatprep.mubr.bf16.mxu0 %v6386_v60  ;;  %v6397_v60 = vld [vmem:[%s10032_s1 + $0x248] ss:$16 sps:$4 sm:$0xff]  }
 0x1cd   : > { %2001 = vmatmul.mubr.bf16.gmra.mrb[60].mxu0 %v6388_v62  ;;  %v6398_v62 = vld [vmem:[%s10032_s1 + $0x26c] ss:$16 sps:$4 sm:$0xff]  }
 0x1ce   : > { %2008 = vmatprep.mubr.bf16.mxu0 %v6389_v14  ;;  %v6400_v14 = vld [vmem:[%s10032_s1 + $0x268] ss:$16 sps:$4 sm:$0xff]  }
 0x1d5   : > { %2009 = vmatmul.mubr.bf16.gmra.mrb[64].mxu0 %v6391_v8  ;;  %v6401_v8 = vld [vmem:[%s10032_s1 + $0x28c] ss:$16 sps:$4 sm:$0xff]  }
 0x1d6   : > { %2016 = vmatprep.mubr.bf16.mxu0 %v6392_v30  ;;  %v6403_v30 = vld [vmem:[%s10032_s1 + $0x288] ss:$16 sps:$4 sm:$0xff]  }
 0x1dd   : > { %2017 = vmatmul.mubr.bf16.gmra.mrb[68].mxu0 %v6394_v46  ;;  %v6404_v46 = vld [vmem:[%s10032_s1 + $0x2ac] ss:$16 sps:$4 sm:$0xff]  }
 0x1de   : > { %2024 = vmatprep.mubr.bf16.mxu0 %v6395_v6  ;;  %v6406_v6 = vld [vmem:[%s10032_s1 + $0x2a8] ss:$16 sps:$4 sm:$0xff]  }
 0x1e5   : > { %2025 = vmatmul.mubr.bf16.gmra.mrb[72].mxu0 %v6397_v60  ;;  %v6407_v60 = vld [vmem:[%s10032_s1 + $0x2cc] ss:$16 sps:$4 sm:$0xff]  }
 0x1e6   : > { %2032 = vmatprep.mubr.bf16.mxu0 %v6398_v62  ;;  %v6409_v62 = vld [vmem:[%s10032_s1 + $0x2c8] ss:$16 sps:$4 sm:$0xff]  }
 0x1ed   : > { %2033 = vmatmul.mubr.bf16.gmra.mrb[76].mxu0 %v6400_v14  ;;  %v6410_v14 = vld [vmem:[%s10032_s1 + $0x2ec] ss:$16 sps:$4 sm:$0xff]  }
 0x1ee   : > { %2040 = vmatprep.mubr.bf16.mxu0 %v6401_v8  ;;  %v6412_v8 = vld [vmem:[%s10032_s1 + $0x2e8] ss:$16 sps:$4 sm:$0xff]  }
 0x1f5   : > { %2041 = vmatmul.mubr.bf16.gmra.mrb[80].mxu0 %v6403_v30  ;;  %v6413_v30 = vld [vmem:[%s10032_s1 + $0x30c] ss:$16 sps:$4 sm:$0xff]  }
 0x1f6   : > { %2048 = vmatprep.mubr.bf16.mxu0 %v6404_v46  ;;  %v6415_v46 = vld [vmem:[%s10032_s1 + $0x308] ss:$16 sps:$4 sm:$0xff]  }
 0x1fd   : > { %2049 = vmatmul.mubr.bf16.gmra.mrb[84].mxu0 %v6406_v6  ;;  %v6416_v6 = vld [vmem:[%s10032_s1 + $0x32c] ss:$16 sps:$4 sm:$0xff]  }
 0x1fe   : > { %2056 = vmatprep.mubr.bf16.mxu0 %v6407_v60  ;;  %v6418_v60 = vld [vmem:[%s10032_s1 + $0x328] ss:$16 sps:$4 sm:$0xff]  }
 0x205   : > { %2057 = vmatmul.mubr.bf16.gmra.mrb[88].mxu0 %v6409_v62  ;;  %v6419_v62 = vld [vmem:[%s10032_s1 + $0x34c] ss:$16 sps:$4 sm:$0xff]  }
 0x206   : > { %2064 = vmatprep.mubr.bf16.mxu0 %v6410_v14  ;;  %v6421_v14 = vld [vmem:[%s10032_s1 + $0x348] ss:$16 sps:$4 sm:$0xff]  }
 0x20d   : > { %2065 = vmatmul.mubr.bf16.gmra.mrb[92].mxu0 %v6412_v8  ;;  %v6422_v8 = vld [vmem:[%s10032_s1 + $0x36c] ss:$16 sps:$4 sm:$0xff]  }
 0x20e   : > { %2072 = vmatprep.mubr.bf16.mxu0 %v6413_v30 }
 0x215   : > { %2073 = vmatmul.mubr.bf16.gmra.mrb[96].mxu0 %v6415_v46 }
 0x216   : > { %2080 = vmatprep.mubr.bf16.mxu0 %v6416_v6 }
 0x21d   : > { %2081 = vmatmul.mubr.bf16.gmra.mrb[100].mxu0 %v6418_v60 }
 0x21e   : > { %2088 = vmatprep.mubr.bf16.mxu0 %v6419_v62  ;;  %v6425_v62 = vld [vmem:[%s10032_s1 + $0x38c] ss:$16 sps:$4 sm:$0xff]  }
 0x225   : > { %2089 = vmatmul.mubr.bf16.gmra.mrb[104].mxu0 %v6421_v14 }
 0x226   : > { %2096 = vmatprep.mubr.bf16.mxu0 %v6422_v8 }
 0x228   : > { %v1882_v30 = vpop.f32.mrb[0].mxu0 }
 0x229   : > { %v6026_v46 = vadd.f32 %v1882_v30, %v7553_v35  ;;  %v1884_v6 = vpop.f32.mrb[1].mxu0  ;;  %v6427_v30 = vld [vmem:[%s10032_s1 + $0x388] ss:$16 sps:$4 sm:$0xff]  }
 0x22a   : > { %v1885_v60 = vpop.f32.mrb[2].mxu0 }
 0x22b   : > { %v6027_v22 = vadd.f32 %v1885_v60, %v7578_v48  ;;  %v1887_v21 = vpop.f32.mrb[3].mxu0  ;;  %6593 = vtanh.f32 %v6026_v46 }
 0x22d   : > { %6595 = vtanh.f32 %v6027_v22  ;;  %2097 = vmatmul.mubr.bf16.gmra.mrb[108].mxu0 %v6424_v13  ;;  %v8302_v22 = vld [vmem:[%s10033_s2 + $0x4] ss:$8 sps:$4 sm:$0xff]  }
 0x22e   : > { %2104 = vmatprep.mubr.bf16.mxu0 %v6425_v62  ;;  %10059 = vst [vmem:[#allocation17_spill] sm:$0xff] %v8302_v22  ;;  %2649 = vmatprep.mubr.bf16.mxu1 %v8302_v22 }
 0x230   : > { %v1890_v14 = vpop.f32.mrb[4].mxu0 }
 0x231   : > { %v6028_v35 = vadd.f32 %v1890_v14, %v7616_v4  ;;  %v1892_v8 = vpop.f32.mrb[5].mxu0  ;;  %v6430_v14 = vld [vmem:[%s10032_s1 + $0x3a8] ss:$16 sps:$4 sm:$0xff]  }
 0x232   : > { %v1893_v6 = vpop.f32.mrb[6].mxu0  ;;  %v6431_v8 = vld [vmem:[%s10032_s1 + $0x3cc] ss:$16 sps:$4 sm:$0xff]  }
 0x233   : > { %v6029_v48 = vadd.f32 %v1893_v6, %v7622_v7  ;;  %v1895_v21 = vpop.f32.mrb[7].mxu0  ;;  %6597 = vtanh.f32 %v6028_v35 }
 0x235   : > { %6599 = vtanh.f32 %v6029_v48  ;;  %2105 = vmatmul.mubr.bf16.gmra.mrb[112].mxu0 %v6427_v30  ;;  %v8305_v4 = vpop.eup %6593 }
 0x236   : > { %2112 = vmatprep.mubr.bf16.mxu0 %v6428_v54 }
 0x237   : > { %v8307_v13 = vpop.eup %6595 }
 0x238   : > { %v1898_v46 = vpop.f32.mrb[8].mxu0 }
 0x239   : > { %v6030_v60 = vadd.f32 %v1898_v46, %v7657_v26  ;;  %v1900_v62 = vpop.f32.mrb[9].mxu0 }
 0x23a   : > { %v1901_v35 = vpop.f32.mrb[10].mxu0 }
 0x23b   : > { %v6031_v54 = vadd.f32 %v1901_v35, %v7666_v29  ;;  %v1903_v30 = vpop.f32.mrb[11].mxu0  ;;  %6601 = vtanh.f32 %v6030_v60  ;;  %v6433_v29 = vld [vmem:[%s10032_s1 + $0x3c8] ss:$16 sps:$4 sm:$0xff]   ;;  %v6434_v60 = vld [vmem:[%s10032_s1 + $0x3ec] ss:$16 sps:$4 sm:$0xff]  }
 0x23d   : > { %6603 = vtanh.f32 %v6031_v54  ;;  %2113 = vmatmul.mubr.bf16.gmra.mrb[116].mxu0 %v6430_v14  ;;  %v8319_v6 = vpop.eup %6597 }
 0x23e   : > { %2120 = vmatprep.mubr.bf16.mxu0 %v6431_v8 }
 0x23f   : > { %v8321_v26 = vpop.eup %6599 }
 0x240   : > { %v1906_v48 = vpop.f32.mrb[12].mxu0 }
 0x241   : > { %v6032_v46 = vadd.f32 %v1906_v48, %v7702_v50  ;;  %v1908_v62 = vpop.f32.mrb[13].mxu0 }
 0x242   : > { %v1909_v35 = vpop.f32.mrb[14].mxu0 }
 0x243   : > { %v6033_v14 = vadd.f32 %v1909_v35, %v7707_v51  ;;  %v1911_v8 = vpop.f32.mrb[15].mxu0  ;;  %6605 = vtanh.f32 %v6032_v46  ;;  %v6436_v51 = vld [vmem:[%s10032_s1 + $0x3e8] ss:$16 sps:$4 sm:$0xff]  }
 0x245   : > { %6607 = vtanh.f32 %v6033_v14  ;;  %2121 = vmatmul.mubr.bf16.gmra.mrb[120].mxu0 %v6433_v29  ;;  %v8333_v54 = vpop.eup %6601 }
 0x246   : > { %2128 = vmatprep.mubr.bf16.mxu0 %v6434_v60 }
 0x247   : > { %v8335_v50 = vpop.eup %6603 }
 0x248   : > { %v1914_v30 = vpop.f32.mrb[16].mxu0 }
 0x249   : > { %v6034_v62 = vadd.f32 %v1914_v30, %v7734_v63  ;;  %v1916_v21 = vpop.f32.mrb[17].mxu0 }
 0x24a   : > { %v1917_v35 = vpop.f32.mrb[18].mxu0 }
 0x24b   : > { %v6035_v46 = vadd.f32 %v1917_v35, %v7742_v3  ;;  %v1919_v29 = vpop.f32.mrb[19].mxu0  ;;  %6609 = vtanh.f32 %v6034_v62 }
 0x24d   : > { %6611 = vtanh.f32 %v6035_v46  ;;  %2129 = vmatmul.mubr.bf16.gmra.mrb[124].mxu0 %v6436_v51  ;;  %v8344_v60 = vpop.eup %6605 }
 0x24f   : > { %v8346_v14 = vpop.eup %6607 }
 0x250   : > { %v1922_v8 = vpop.f32.mrb[20].mxu0 }
 0x251   : > { %v6036_v21 = vadd.f32 %v1922_v8, %v7772_v18  ;;  %v1924_v30 = vpop.f32.mrb[21].mxu0 }
 0x252   : > { %v1925_v48 = vpop.f32.mrb[22].mxu0 }
 0x253   : > { %v6037_v7 = vadd.f32 %v1925_v48, %v7777_v20  ;;  %v1927_v22 = vpop.f32.mrb[23].mxu0  ;;  %6613 = vtanh.f32 %v6036_v21 }
 0x255   : > { %6615 = vtanh.f32 %v6037_v7  ;;  %v8352_v3 = vpop.eup %6609 }
 0x257   : > { %v8354_v62 = vpop.eup %6611 }
 0x258   : > { %v1930_v51 = vpop.f32.mrb[24].mxu0 }
 0x259   : > { %v6038_v46 = vadd.f32 %v1930_v51, %v7804_v32  ;;  %v1932_v29 = vpop.f32.mrb[25].mxu0 }
 0x25a   : > { %v1933_v63 = vpop.f32.mrb[26].mxu0 }
 0x25b   : > { %v6039_v18 = vadd.f32 %v1933_v63, %v7812_v37  ;;  %v1935_v8 = vpop.f32.mrb[27].mxu0  ;;  %6617 = vtanh.f32 %v6038_v46 }
 0x25d   : > { %6619 = vtanh.f32 %v6039_v18  ;;  %v8360_v20 = vpop.eup %6613 }
 0x25f   : > { %v8362_v22 = vpop.eup %6615 }
 0x260   : > { %v1938_v7 = vpop.f32.mrb[28].mxu0 }
 0x261   : > { %v6040_v21 = vadd.f32 %v1938_v7, %v7842_v53  ;;  %v1940_v30 = vpop.f32.mrb[29].mxu0 }
 0x262   : > { %v1941_v35 = vpop.f32.mrb[30].mxu0 }
 0x263   : > { %v6041_v32 = vadd.f32 %v1941_v35, %v7847_v55  ;;  %v1943_v51 = vpop.f32.mrb[31].mxu0  ;;  %6621 = vtanh.f32 %v6040_v21 }
 0x265   : > { %6623 = vtanh.f32 %v6041_v32  ;;  %v8368_v37 = vpop.eup %6617 }
 0x267   : > { %v8370_v63 = vpop.eup %6619 }
 0x268   : > { %v1946_v46 = vpop.f32.mrb[32].mxu0 }
 0x269   : > { %v6042_v18 = vadd.f32 %v1946_v46, %v7551_v34  ;;  %v1948_v8 = vpop.f32.mrb[33].mxu0 }
 0x26a   : > { %v1949_v48 = vpop.f32.mrb[34].mxu0 }
 0x26b   : > { %v6043_v53 = vadd.f32 %v1949_v48, %v7569_v45  ;;  %v1951_v7 = vpop.f32.mrb[35].mxu0  ;;  %6625 = vtanh.f32 %v6042_v18 }
 0x26d   : > { %6627 = vtanh.f32 %v6043_v53  ;;  %v8376_v55 = vpop.eup %6621 }
 0x26f   : > { %v8378_v35 = vpop.eup %6623 }
 0x270   : > { %v1954_v21 = vpop.f32.mrb[36].mxu0 }
 0x271   : > { %v6044_v32 = vadd.f32 %v1954_v21, %v7593_v56  ;;  %v1956_v51 = vpop.f32.mrb[37].mxu0  ;;  %v10060_v56 = vpack.c.bf16 %v8307_v13, %v8305_v4 }
 0x272   : > { %v1957_v29 = vpop.f32.mrb[38].mxu0 }
 0x273   : > { %v6045_v34 = vadd.f32 %v1957_v29, %v7596_v58  ;;  %v1959_v46 = vpop.f32.mrb[39].mxu0  ;;  %6629 = vtanh.f32 %v6044_v32 }
 0x275   : > { %6631 = vtanh.f32 %v6045_v34  ;;  %v6626_v45 = vpop.eup %6625 }
 0x277   : > { %v6628_v48 = vpop.eup %6627 }
 0x278   : > { %v1962_v18 = vpop.f32.mrb[40].mxu0  ;;  %v2209_v8 = vpack.c.bf16 %v6628_v48, %v6626_v45 }
 0x279   : > { %v6046_v53 = vadd.f32 %v1962_v18, %v7639_v15  ;;  %v1964_v7 = vpop.f32.mrb[41].mxu0 }
 0x27a   : > { %v1965_v52 = vpop.f32.mrb[42].mxu0  ;;  %5282 = vmatprep.subr.bf16.mxu1 %v2209_v8 }
 0x27b   : > { %v6047_v30 = vadd.f32 %v1965_v52, %v7641_v16  ;;  %v1967_v24 = vpop.f32.mrb[43].mxu0  ;;  %5283 = vmatpush3.bf16.msra.mxu1 %v10060_v56  ;;  %6633 = vtanh.f32 %v6046_v53  ;;  %v10061_v16 = vpack.c.bf16 %v8321_v26, %v8319_v6 }
 0x27d   : > { %6635 = vtanh.f32 %v6047_v30  ;;  %v6630_v58 = vpop.eup %6629 }
 0x27f   : > { %v6632_v29 = vpop.eup %6631 }
 0x280   : > { %v1970_v21 = vpop.f32.mrb[44].mxu0  ;;  %v2210_v32 = vpack.c.bf16 %v6632_v29, %v6630_v58 }
 0x281   : > { %v6048_v51 = vadd.f32 %v1970_v21, %v7681_v39  ;;  %v1972_v34 = vpop.f32.mrb[45].mxu0 }
 0x282   : > { %v1973_v15 = vpop.f32.mrb[46].mxu0  ;;  %5284 = vmatprep.subr.bf16.mxu1 %v2210_v32 }
 0x283   : > { %v6049_v46 = vadd.f32 %v1973_v15, %v7684_v41  ;;  %v1975_v45 = vpop.f32.mrb[47].mxu0  ;;  %5285 = vmatpush3.bf16.msra.mxu1 %v10061_v16  ;;  %6637 = vtanh.f32 %v6048_v51  ;;  %v10062_v41 = vpack.c.bf16 %v8335_v50, %v8333_v54 }
 0x285   : > { %6639 = vtanh.f32 %v6049_v46  ;;  %v6634_v24 = vpop.eup %6633 }
 0x287   : > { %v6636_v52 = vpop.eup %6635 }
 0x288   : > { %v1978_v4 = vpop.f32.mrb[48].mxu0  ;;  %v2211_v13 = vpack.c.bf16 %v6636_v52, %v6634_v24 }
 0x289   : > { %v6050_v30 = vadd.f32 %v1978_v4, %v7721_v57  ;;  %v1980_v48 = vpop.f32.mrb[49].mxu0 }
 0x28a   : > { %v1981_v39 = vpop.f32.mrb[50].mxu0  ;;  %5286 = vmatprep.subr.bf16.mxu1 %v2211_v13 }
 0x28b   : > { %v6051_v18 = vadd.f32 %v1981_v39, %v7723_v59  ;;  %v1983_v8 = vpop.f32.mrb[51].mxu0  ;;  %5287 = vmatpush3.bf16.msra.mxu1 %v10062_v41  ;;  %6641 = vtanh.f32 %v6050_v30  ;;  %v10063_v59 = vpack.c.bf16 %v8346_v14, %v8344_v60 }
 0x28d   : > { %6643 = vtanh.f32 %v6051_v18  ;;  %v6638_v6 = vpop.eup %6637 }
 0x28f   : > { %v6640_v26 = vpop.eup %6639 }
 0x290   : > { %v1986_v53 = vpop.f32.mrb[52].mxu0  ;;  %v2212_v7 = vpack.c.bf16 %v6640_v26, %v6638_v6 }
 0x291   : > { %v6052_v56 = vadd.f32 %v1986_v53, %v7753_v9  ;;  %v1988_v58 = vpop.f32.mrb[53].mxu0 }
 0x292   : > { %v1989_v57 = vpop.f32.mrb[54].mxu0  ;;  %5288 = vmatprep.subr.bf16.mxu1 %v2212_v7 }
 0x293   : > { %v6053_v29 = vadd.f32 %v1989_v57, %v7755_v10  ;;  %v1991_v21 = vpop.f32.mrb[55].mxu0  ;;  %5289 = vmatpush3.bf16.msra.mxu1 %v10063_v59  ;;  %6645 = vtanh.f32 %v6052_v56  ;;  %v10064_v10 = vpack.c.bf16 %v8354_v62, %v8352_v3  ;;  %v8432_v57 = vld [vmem:[%s10033_s2 + $0x14] ss:$8 sps:$4 sm:$0xff]  }
 0x295   : > { %6647 = vtanh.f32 %v6053_v29  ;;  %v6642_v54 = vpop.eup %6641 }
 0x297   : > { %v6644_v50 = vpop.eup %6643 }
 0x298   : > { %v1994_v32 = vpop.f32.mrb[56].mxu0  ;;  %v2213_v51 = vpack.c.bf16 %v6644_v50, %v6642_v54  ;;  %v8446_v54 = vld [vmem:[%s10033_s2 + $0x10] ss:$8 sps:$4 sm:$0xff]  }
 0x299   : > { %v6054_v34 = vadd.f32 %v1994_v32, %v7791_v25  ;;  %v1996_v15 = vpop.f32.mrb[57].mxu0 }
 0x29a   : > { %v1997_v9 = vpop.f32.mrb[58].mxu0  ;;  %5290 = vmatprep.subr.bf16.mxu1 %v2213_v51  ;;  %v8452_v51 = vld [vmem:[%s10033_s2 + $0x24] ss:$8 sps:$4 sm:$0xff]  }
 0x29b   : > { %v6055_v46 = vadd.f32 %v1997_v9, %v7793_v27  ;;  %v1999_v45 = vpop.f32.mrb[59].mxu0  ;;  %5291 = vmatpush3.bf16.msra.mxu1 %v10064_v10  ;;  %6649 = vtanh.f32 %v6054_v34  ;;  %v10065_v27 = vpack.c.bf16 %v8362_v22, %v8360_v20  ;;  %v8466_v10 = vld [vmem:[%s10033_s2 + $0x20] ss:$8 sps:$4 sm:$0xff]  }
 0x29d   : > { %6651 = vtanh.f32 %v6055_v46  ;;  %v6646_v60 = vpop.eup %6645 }
 0x29f   : > { %v6648_v14 = vpop.eup %6647 }
 0x2a0   : > { %v2002_v16 = vpop.f32.mrb[60].mxu0  ;;  %v2214_v24 = vpack.c.bf16 %v6648_v14, %v6646_v60 }
 0x2a1   : > { %v6056_v52 = vadd.f32 %v2002_v16, %v7823_v43  ;;  %v2004_v4 = vpop.f32.mrb[61].mxu0  ;;  %v8472_v16 = vld [vmem:[%s10033_s2 + $0x34] ss:$8 sps:$4 sm:$0xff]  }
 0x2a2   : > { %v2005_v25 = vpop.f32.mrb[62].mxu0  ;;  %5292 = vmatprep.subr.bf16.mxu1 %v2214_v24 }
 0x2a3   : > { %v6057_v13 = vadd.f32 %v2005_v25, %v7825_v44  ;;  %v2007_v30 = vpop.f32.mrb[63].mxu0  ;;  %5293 = vmatpush3.bf16.msra.mxu1 %v10065_v27  ;;  %6653 = vtanh.f32 %v6056_v52  ;;  %v10066_v44 = vpack.c.bf16 %v8370_v63, %v8368_v37  ;;  %v10067_v63 = vpack.c.bf16 %v8378_v35, %v8376_v55 }
 0x2a4   : > { %v8486_v30 = vld [vmem:[%s10033_s2 + $0x30] ss:$8 sps:$4 sm:$0xff]  }
 0x2a5   : > { %6655 = vtanh.f32 %v6057_v13  ;;  %v6650_v3 = vpop.eup %6649 }
 0x2a7   : > { %v6652_v62 = vpop.eup %6651 }
 0x2a8   : > { %v2010_v48 = vpop.f32.mrb[64].mxu0  ;;  %v2215_v39 = vpack.c.bf16 %v6652_v62, %v6650_v3  ;;  %v8492_v62 = vld [vmem:[%s10033_s2 + $0x44] ss:$8 sps:$4 sm:$0xff]  }
 0x2a9   : > { %v6058_v18 = vadd.f32 %v2010_v48, %v7874_v12  ;;  %v2012_v8 = vpop.f32.mrb[65].mxu0 }
 0x2aa   : > { %v2013_v43 = vpop.f32.mrb[66].mxu0  ;;  %5294 = vmatprep.subr.bf16.mxu1 %v2215_v39 }
 0x2ab   : > { %v6059_v41 = vadd.f32 %v2013_v43, %v7882_v17  ;;  %v2015_v6 = vpop.f32.mrb[67].mxu0  ;;  %5295 = vmatpush3.bf16.msra.mxu1 %v10066_v44  ;;  %6657 = vtanh.f32 %v6058_v18  ;;  %v8423_v17 = vld [vmem:[%s10033_s2] ss:$8 sps:$4 sm:$0xff]  }
 0x2ad   : > { %6659 = vtanh.f32 %v6059_v41  ;;  %v6654_v20 = vpop.eup %6653  ;;  %v8506_v41 = vld [vmem:[%s10033_s2 + $0x40] ss:$8 sps:$4 sm:$0xff]  }
 0x2af   : > { %v6656_v22 = vpop.eup %6655 }
 0x2b0   : > { %v2018_v26 = vpop.f32.mrb[68].mxu0  ;;  %v2216_v53 = vpack.c.bf16 %v6656_v22, %v6654_v20  ;;  %v8512_v20 = vld [vmem:[%s10033_s2 + $0x54] ss:$8 sps:$4 sm:$0xff]  }
 0x2b1   : > { %v6060_v7 = vadd.f32 %v2018_v26, %v7912_v38  ;;  %v2020_v56 = vpop.f32.mrb[69].mxu0 }
 0x2b2   : > { %v2021_v12 = vpop.f32.mrb[70].mxu0  ;;  %5296 = vmatprep.subr.bf16.mxu1 %v2216_v53 }
 0x2b3   : > { %v6061_v58 = vadd.f32 %v2021_v12, %v7917_v42  ;;  %v2023_v37 = vpop.f32.mrb[71].mxu0  ;;  %5297 = vmatpush3.bf16.msra.mxu1 %v10067_v63  ;;  %6661 = vtanh.f32 %v6060_v7  ;;  %v8526_v12 = vld [vmem:[%s10033_s2 + $0x50] ss:$8 sps:$4 sm:$0xff]   ;;  %v8532_v63 = vld [vmem:[%s10033_s2 + $0x64] ss:$8 sps:$4 sm:$0xff]  }
 0x2b5   : > { %6663 = vtanh.f32 %v6061_v58  ;;  %v8434_v38 = vpop.eup %6657 }
 0x2b6   : > { %2650 = vmatmul.mubr.bf16.vlgmr.msra.gmra.mrb[0].mxu1 %v8423_v17 }
 0x2b7   : > { %v8437_v29 = vpop.eup %6659  ;;  %2657 = vmatprep.mubr.bf16.mxu1 %v8432_v57 }
 0x2b8   : > { %v2026_v42 = vpop.f32.mrb[72].mxu0  ;;  %v2217_v55 = vpack.c.bf16 %v8437_v29, %v8434_v38  ;;  %v8617_v29 = vld [vmem:[%s10033_s2 + $0xa0] ss:$8 sps:$4 sm:$0xff]  }
 0x2b9   : > { %v6062_v35 = vadd.f32 %v2026_v42, %v7944_v1  ;;  %v2028_v21 = vpop.f32.mrb[73].mxu0 }
 0x2ba   : > { %v2029_v59 = vpop.f32.mrb[74].mxu0 }
 0x2bb   : > { %v6063_v50 = vadd.f32 %v2029_v59, %v7952_v11  ;;  %v2031_v32 = vpop.f32.mrb[75].mxu0  ;;  %6665 = vtanh.f32 %v6062_v35 }
 0x2bc   : > { %v8546_v32 = vld [vmem:[%s10033_s2 + $0x60] ss:$8 sps:$4 sm:$0xff]  }
 0x2bd   : > { %6667 = vtanh.f32 %v6063_v50  ;;  %v8454_v34 = vpop.eup %6661 }
 0x2be   : > { %2658 = vmatmul.mubr.bf16.gmra.mrb[4].mxu1 %v8446_v54 }
 0x2bf   : > { %v8457_v1 = vpop.eup %6663  ;;  %2665 = vmatprep.mubr.bf16.mxu1 %v8452_v51 }
 0x2c0   : > { %v2034_v15 = vpop.f32.mrb[76].mxu0  ;;  %v2218_v11 = vpack.c.bf16 %v8457_v1, %v8454_v34  ;;  %v8634_v1 = vld [vmem:[%s10033_s2 + $0xb0] ss:$8 sps:$4 sm:$0xff]  }
 0x2c1   : > { %v6064_v9 = vadd.f32 %v2034_v15, %v7982_v40  ;;  %v2036_v46 = vpop.f32.mrb[77].mxu0 }
 0x2c2   : > { %v2037_v45 = vpop.f32.mrb[78].mxu0  ;;  %v8552_v46 = vld [vmem:[%s10033_s2 + $0x74] ss:$8 sps:$4 sm:$0xff]  }
 0x2c3   : > { %v6065_v60 = vadd.f32 %v2037_v45, %v7987_v47  ;;  %v2039_v14 = vpop.f32.mrb[79].mxu0  ;;  %6669 = vtanh.f32 %v6064_v9 }
 0x2c5   : > { %6671 = vtanh.f32 %v6065_v60  ;;  %v8474_v24 = vpop.eup %6665 }
 0x2c6   : > { %2666 = vmatmul.mubr.bf16.gmra.mrb[8].mxu1 %v8466_v10 }
 0x2c7   : > { %v8477_v40 = vpop.eup %6667  ;;  %2673 = vmatprep.mubr.bf16.mxu1 %v8472_v16 }
 0x2c8   : > { %v2042_v52 = vpop.f32.mrb[80].mxu0  ;;  %v2219_v47 = vpack.c.bf16 %v8477_v40, %v8474_v24  ;;  %v8651_v40 = vld [vmem:[%s10033_s2 + $0xc0] ss:$8 sps:$4 sm:$0xff]  }
 0x2c9   : > { %v6066_v4 = vadd.f32 %v2042_v52, %v8014_v19  ;;  %v2044_v25 = vpop.f32.mrb[81].mxu0 }
 0x2ca   : > { %v2045_v13 = vpop.f32.mrb[82].mxu0  ;;  %v8566_v25 = vld [vmem:[%s10033_s2 + $0x70] ss:$8 sps:$4 sm:$0xff]  }
 0x2cb   : > { %v6067_v27 = vadd.f32 %v2045_v13, %v8022_v31  ;;  %v2047_v3 = vpop.f32.mrb[83].mxu0  ;;  %6673 = vtanh.f32 %v6066_v4 }
 0x2cc   : > { %v8572_v3 = vld [vmem:[%s10033_s2 + $0x84] ss:$8 sps:$4 sm:$0xff]  }
 0x2cd   : > { %6675 = vtanh.f32 %v6067_v27  ;;  %v8494_v48 = vpop.eup %6669 }
 0x2ce   : > { %2674 = vmatmul.mubr.bf16.gmra.mrb[12].mxu1 %v8486_v30 }
 0x2cf   : > { %v8497_v19 = vpop.eup %6671  ;;  %2681 = vmatprep.mubr.bf16.mxu1 %v8492_v62 }
 0x2d0   : > { %v2050_v39 = vpop.f32.mrb[84].mxu0  ;;  %v2220_v31 = vpack.c.bf16 %v8497_v19, %v8494_v48  ;;  %v8668_v19 = vld [vmem:[%s10033_s2 + $0xd0] ss:$8 sps:$4 sm:$0xff]  }
 0x2d1   : > { %v6068_v18 = vadd.f32 %v2050_v39, %v8052_v28  ;;  %v2052_v8 = vpop.f32.mrb[85].mxu0 }
 0x2d2   : > { %v2053_v43 = vpop.f32.mrb[86].mxu0 }
 0x2d3   : > { %v6069_v6 = vadd.f32 %v2053_v43, %v8057_v33  ;;  %v2055_v44 = vpop.f32.mrb[87].mxu0  ;;  %6677 = vtanh.f32 %v6068_v18 }
 0x2d4   : > { %v8586_v44 = vld [vmem:[%s10033_s2 + $0x80] ss:$8 sps:$4 sm:$0xff]  }
 0x2d5   : > { %6679 = vtanh.f32 %v6069_v6  ;;  %v8514_v22 = vpop.eup %6673 }
 0x2d6   : > { %2682 = vmatmul.mubr.bf16.gmra.mrb[16].mxu1 %v8506_v41 }
 0x2d7   : > { %v8517_v28 = vpop.eup %6675  ;;  %2689 = vmatprep.mubr.bf16.mxu1 %v8512_v20 }
 0x2d8   : > { %v2058_v26 = vpop.f32.mrb[88].mxu0  ;;  %v2221_v33 = vpack.c.bf16 %v8517_v28, %v8514_v22  ;;  %v8685_v28 = vld [vmem:[%s10033_s2 + $0xe0] ss:$8 sps:$4 sm:$0xff]  }
 0x2d9   : > { %v6070_v53 = vadd.f32 %v2058_v26, %v8084_v36  ;;  %v2060_v7 = vpop.f32.mrb[89].mxu0  ;;  %v10068_v26 = vld [vmem:[#allocation2_spill] sm:$0xff] }
 0x2da   : > { %v2061_v56 = vpop.f32.mrb[90].mxu0 }
 0x2db   : > { %v6071_v58 = vadd.f32 %v2061_v56, %v8092_v0  ;;  %v2063_v37 = vpop.f32.mrb[91].mxu0  ;;  %6681 = vtanh.f32 %v6070_v53  ;;  %v8592_v56 = vld [vmem:[%s10033_s2 + $0x94] ss:$8 sps:$4 sm:$0xff]  }
 0x2dd   : > { %6683 = vtanh.f32 %v6071_v58  ;;  %v8534_v42 = vpop.eup %6677 }
 0x2de   : > { %2690 = vmatmul.mubr.bf16.gmra.mrb[20].mxu1 %v8526_v12 }
 0x2df   : > { %v8537_v36 = vpop.eup %6679  ;;  %2697 = vmatprep.mubr.bf16.mxu1 %v8532_v63 }
 0x2e0   : > { %v2066_v35 = vpop.f32.mrb[92].mxu0  ;;  %v2222_v0 = vpack.c.bf16 %v8537_v36, %v8534_v42  ;;  %v8701_v42 = vld [vmem:[%s10033_s2 + $0xf0] ss:$8 sps:$4 sm:$0xff]  }
 0x2e1   : > { %v6072_v21 = vadd.f32 %v2066_v35, %v8122_v61  ;;  %v2068_v59 = vpop.f32.mrb[93].mxu0 }
 0x2e2   : > { %v2069_v50 = vpop.f32.mrb[94].mxu0 }
 0x2e3   : > { %v6073_v15 = vadd.f32 %v2069_v50, %v8127_v49  ;;  %v2071_v9 = vpop.f32.mrb[95].mxu0  ;;  %6685 = vtanh.f32 %v6072_v21  ;;  %v10069_v21 = vld [vmem:[#allocation3_spill] sm:$0xff] }
 0x2e4   : > { %v8600_v9 = vld [vmem:[%s10033_s2 + $0x90] ss:$8 sps:$4 sm:$0xff]  }
 0x2e5   : > { %6687 = vtanh.f32 %v6073_v15  ;;  %v8554_v45 = vpop.eup %6681 }
 0x2e6   : > { %2698 = vmatmul.mubr.bf16.gmra.mrb[24].mxu1 %v8546_v32 }
 0x2e7   : > { %v8557_v61 = vpop.eup %6683  ;;  %2705 = vmatprep.mubr.bf16.mxu1 %v8552_v46 }
 0x2e8   : > { %v2074_v60 = vpop.f32.mrb[96].mxu0  ;;  %v2223_v49 = vpack.c.bf16 %v8557_v61, %v8554_v45 }
 0x2e9   : > { %v6074_v14 = vadd.f32 %v2074_v60, %v7861_v2  ;;  %v2076_v52 = vpop.f32.mrb[97].mxu0  ;;  %v10070_v60 = vld [vmem:[#allocation4_spill] sm:$0xff] }
 0x2ea   : > { %v2077_v4 = vpop.f32.mrb[98].mxu0 }
 0x2eb   : > { %v6075_v13 = vadd.f32 %v2077_v4, %v7863_v5  ;;  %v2079_v27 = vpop.f32.mrb[99].mxu0  ;;  %6689 = vtanh.f32 %v6074_v14  ;;  %v8609_v4 = vld [vmem:[%s10033_s2 + $0xa4] ss:$8 sps:$4 sm:$0xff]  }
 0x2ed   : > { %6691 = vtanh.f32 %v6075_v13  ;;  %v8574_v39 = vpop.eup %6685 }
 0x2ee   : > { %2706 = vmatmul.mubr.bf16.gmra.mrb[28].mxu1 %v8566_v25 }
 0x2ef   : > { %v8577_v2 = vpop.eup %6687  ;;  %2713 = vmatprep.mubr.bf16.mxu1 %v8572_v3 }
 0x2f0   : > { %v2082_v18 = vpop.f32.mrb[100].mxu0  ;;  %v2224_v5 = vpack.c.bf16 %v8577_v2, %v8574_v39 }
 0x2f1   : > { %v6076_v8 = vadd.f32 %v2082_v18, %v7893_v23  ;;  %v2084_v43 = vpop.f32.mrb[101].mxu0 }
 0x2f2   : > { %v2085_v6 = vpop.f32.mrb[102].mxu0  ;;  %v10071_v43 = vld [vmem:[#allocation5_spill] sm:$0xff] }
 0x2f3   : > { %v6077_v53 = vadd.f32 %v2085_v6, %v10068_v26  ;;  %v2087_v7 = vpop.f32.mrb[103].mxu0  ;;  %6693 = vtanh.f32 %v6076_v8 }
 0x2f5   : > { %6695 = vtanh.f32 %v6077_v53  ;;  %v6690_v58 = vpop.eup %6689 }
 0x2f6   : > { %2714 = vmatmul.mubr.bf16.gmra.mrb[32].mxu1 %v8586_v44 }
 0x2f7   : > { %v6692_v23 = vpop.eup %6691  ;;  %2721 = vmatprep.mubr.bf16.mxu1 %v8592_v56 }
 0x2f8   : > { %v2090_v37 = vpop.f32.mrb[104].mxu0  ;;  %v2225_v35 = vpack.c.bf16 %v6692_v23, %v6690_v58  ;;  %v8626_v58 = vld [vmem:[%s10033_s2 + $0xb4] ss:$8 sps:$4 sm:$0xff]  }
 0x2f9   : > { %v6078_v59 = vadd.f32 %v2090_v37, %v10069_v21  ;;  %v2092_v50 = vpop.f32.mrb[105].mxu0 }
 0x2fa   : > { %v2093_v15 = vpop.f32.mrb[106].mxu0  ;;  %5394 = vmatprep.subr.bf16.mxu1 %v2225_v35 }
 0x2fb   : > { %v6079_v14 = vadd.f32 %v2093_v15, %v10070_v60  ;;  %v2095_v52 = vpop.f32.mrb[107].mxu0  ;;  %5395 = vmatpush3.bf16.msra.mxu1 %v2217_v55  ;;  %6697 = vtanh.f32 %v6078_v59  ;;  %v10072_v55 = vld [vmem:[#allocation6_spill] sm:$0xff]  ;;  %v10073_v59 = vld [vmem:[#allocation7_spill] sm:$0xff] }
 0x2fc   : > { %v8643_v52 = vld [vmem:[%s10033_s2 + $0xc4] ss:$8 sps:$4 sm:$0xff]  }
 0x2fd   : > { %6699 = vtanh.f32 %v6079_v14  ;;  %v6694_v13 = vpop.eup %6693 }
 0x2fe   : > { %2722 = vmatmul.mubr.bf16.gmra.mrb[36].mxu1 %v8600_v9 }
 0x2ff   : > { %v6696_v27 = vpop.eup %6695  ;;  %2729 = vmatprep.mubr.bf16.mxu1 %v8609_v4 }
 0x300   : > { %v2098_v18 = vpop.f32.mrb[108].mxu0  ;;  %v2226_v8 = vpack.c.bf16 %v6696_v27, %v6694_v13 }
 0x301   : > { %v6080_v6 = vadd.f32 %v2098_v18, %v10071_v43  ;;  %v2100_v26 = vpop.f32.mrb[109].mxu0  ;;  %v10075_v43 = vld [vmem:[#allocation9_spill] sm:$0xff] }
 0x302   : > { %v2101_v38 = vpop.f32.mrb[110].mxu0  ;;  %5396 = vmatprep.subr.bf16.mxu1 %v2226_v8 }
 0x303   : > { %v6081_v53 = vadd.f32 %v2101_v38, %v10072_v55  ;;  %v2103_v7 = vpop.f32.mrb[111].mxu0  ;;  %5397 = vmatpush3.bf16.msra.mxu1 %v2218_v11  ;;  %6701 = vtanh.f32 %v6080_v6  ;;  %v10074_v11 = vld [vmem:[#allocation8_spill] sm:$0xff] }
 0x305   : > { %6703 = vtanh.f32 %v6081_v53  ;;  %v6698_v23 = vpop.eup %6697  ;;  %v8660_v53 = vld [vmem:[%s10033_s2 + $0xd4] ss:$8 sps:$4 sm:$0xff]  }
 0x306   : > { %2730 = vmatmul.mubr.bf16.gmra.mrb[40].mxu1 %v8617_v29 }
 0x307   : > { %v6700_v37 = vpop.eup %6699  ;;  %2737 = vmatprep.mubr.bf16.mxu1 %v8626_v58 }
 0x308   : > { %v2106_v35 = vpop.f32.mrb[112].mxu0  ;;  %v2227_v21 = vpack.c.bf16 %v6700_v37, %v6698_v23 }
 0x309   : > { %v6082_v50 = vadd.f32 %v2106_v35, %v10073_v59  ;;  %v2108_v15 = vpop.f32.mrb[113].mxu0 }
 0x30a   : > { %v2109_v34 = vpop.f32.mrb[114].mxu0  ;;  %5398 = vmatprep.subr.bf16.mxu1 %v2227_v21  ;;  %v10077_v21 = vld [vmem:[#allocation11_spill] sm:$0xff] }
 0x30b   : > { %v6083_v60 = vadd.f32 %v2109_v34, %v10074_v11  ;;  %v2111_v14 = vpop.f32.mrb[115].mxu0  ;;  %5399 = vmatpush3.bf16.msra.mxu1 %v2219_v47  ;;  %6705 = vtanh.f32 %v6082_v50  ;;  %v10076_v47 = vld [vmem:[#allocation10_spill] sm:$0xff] }
 0x30c   : > { %v8677_v11 = vld [vmem:[%s10033_s2 + $0xe4] ss:$8 sps:$4 sm:$0xff]  }
 0x30d   : > { %6707 = vtanh.f32 %v6083_v60  ;;  %v6702_v13 = vpop.eup %6701 }
 0x30e   : > { %2738 = vmatmul.mubr.bf16.gmra.mrb[44].mxu1 %v8634_v1 }
 0x30f   : > { %v6704_v27 = vpop.eup %6703  ;;  %2745 = vmatprep.mubr.bf16.mxu1 %v8643_v52 }
 0x310   : > { %v2114_v18 = vpop.f32.mrb[116].mxu0  ;;  %v2228_v8 = vpack.c.bf16 %v6704_v27, %v6702_v13 }
 0x311   : > { %v6084_v6 = vadd.f32 %v2114_v18, %v10075_v43  ;;  %v2116_v26 = vpop.f32.mrb[117].mxu0  ;;  %v10079_v18 = vld [vmem:[#allocation13_spill] sm:$0xff] }
 0x312   : > { %v2117_v24 = vpop.f32.mrb[118].mxu0  ;;  %5400 = vmatprep.subr.bf16.mxu1 %v2228_v8 }
 0x313   : > { %v6085_v38 = vadd.f32 %v2117_v24, %v10076_v47  ;;  %v2119_v55 = vpop.f32.mrb[119].mxu0  ;;  %5401 = vmatpush3.bf16.msra.mxu1 %v2220_v31  ;;  %6709 = vtanh.f32 %v6084_v6  ;;  %v10078_v31 = vld [vmem:[#allocation12_spill] sm:$0xff] }
 0x314   : > { %v8694_v24 = vld [vmem:[%s10033_s2 + $0xf4] ss:$8 sps:$4 sm:$0xff]  }
 0x315   : > { %6711 = vtanh.f32 %v6085_v38  ;;  %v6706_v7 = vpop.eup %6705 }
 0x316   : > { %2746 = vmatmul.mubr.bf16.gmra.mrb[48].mxu1 %v8651_v40 }
 0x317   : > { %v6708_v23 = vpop.eup %6707  ;;  %2753 = vmatprep.mubr.bf16.mxu1 %v8660_v53 }
 0x318   : > { %v2122_v37 = vpop.f32.mrb[120].mxu0  ;;  %v2229_v35 = vpack.c.bf16 %v6708_v23, %v6706_v7  ;;  %v10081_v7 = vld [vmem:[#allocation17_spill] sm:$0xff] }
 0x319   : > { %v6086_v59 = vadd.f32 %v2122_v37, %v10077_v21  ;;  %v2124_v50 = vpop.f32.mrb[121].mxu0 }
 0x31a   : > { %v2125_v48 = vpop.f32.mrb[122].mxu0  ;;  %5402 = vmatprep.subr.bf16.mxu1 %v2229_v35 }
 0x31b   : > { %v6087_v15 = vadd.f32 %v2125_v48, %v10078_v31  ;;  %v2127_v34 = vpop.f32.mrb[123].mxu0  ;;  %5403 = vmatpush3.bf16.msra.mxu1 %v2221_v33  ;;  %6713 = vtanh.f32 %v6086_v59  ;;  %v10080_v33 = vld [vmem:[#allocation14_spill] sm:$0xff] }
 0x31d   : > { %6715 = vtanh.f32 %v6087_v15  ;;  %v6710_v60 = vpop.eup %6709 }
 0x31e   : > { %2754 = vmatmul.mubr.bf16.gmra.mrb[52].mxu1 %v8668_v19 }
 0x31f   : > { %v6712_v14 = vpop.eup %6711  ;;  %2761 = vmatprep.mubr.bf16.mxu1 %v8677_v11 }
 0x320   : > { %v2130_v13 = vpop.f32.mrb[124].mxu0  ;;  %v2230_v27 = vpack.c.bf16 %v6712_v14, %v6710_v60 }
 0x321   : > { %v6088_v8 = vadd.f32 %v2130_v13, %v10079_v18  ;;  %v2132_v43 = vpop.f32.mrb[125].mxu0 }
 0x322   : > { %v2133_v22 = vpop.f32.mrb[126].mxu0  ;;  %5404 = vmatprep.subr.bf16.mxu1 %v2230_v27 }
 0x323   : > { %v6089_v6 = vadd.f32 %v2133_v22, %v10080_v33  ;;  %v2135_v26 = vpop.f32.mrb[127].mxu0  ;;  %5405 = vmatpush3.bf16.msra.mxu1 %v2222_v0  ;;  %6717 = vtanh.f32 %v6088_v8 }
 0x325   : > { %6719 = vtanh.f32 %v6089_v6  ;;  %v6714_v47 = vpop.eup %6713 }
 0x326   : > { %2762 = vmatmul.mubr.bf16.gmra.mrb[56].mxu1 %v8685_v28 }
 0x327   : > { %v6716_v38 = vpop.eup %6715  ;;  %2769 = vmatprep.mubr.bf16.mxu1 %v8694_v24 }
 0x328   : > { %v2231_v55 = vpack.c.bf16 %v6716_v38, %v6714_v47 }
 0x32a   : > { %5406 = vmatprep.subr.bf16.mxu1 %v2231_v55 }
 0x32b   : > { %5407 = vmatpush3.bf16.msra.mxu1 %v2223_v49 }
 0x32d   : > { %v6718_v36 = vpop.eup %6717 }
 0x32e   : > { %2770 = vmatmul.mubr.bf16.gmra.mrb[60].mxu1 %v8701_v42 }
 0x32f   : > { %v6720_v0 = vpop.eup %6719  ;;  %2858 = vmatprep.mubr.bf16.mxu1 %v10081_v7 }
 0x330   : > { %v2232_v23 = vpack.c.bf16 %v6720_v0, %v6718_v36 }
 0x332   : > { %5408 = vmatprep.subr.bf16.mxu1 %v2232_v23 }
 0x333   : > { %5409 = vmatpush3.bf16.msra.mxu1 %v2224_v5 }
 0x336   : > { %2859 = vmatmul.mubr.bf16.vlgmr.msra.gmra.mrb[64].mxu1 %v8423_v17  ;;  %v8727_v17 = vpop.permute.xlu0 %2299 }
 0x337   : > { %2866 = vmatprep.mubr.bf16.mxu1 %v8432_v57  ;;  %v8729_v57 = vpop.permute.xlu1 %2304 }
 0x33e   : > { %2867 = vmatmul.mubr.bf16.gmra.mrb[68].mxu1 %v8446_v54  ;;  %v8731_v54 = vpop.permute.xlu0 %2389 }
 0x33f   : > { %2874 = vmatprep.mubr.bf16.mxu1 %v8452_v51  ;;  %v8735_v51 = vpop.permute.xlu1 %2394 }
 0x346   : > { %2875 = vmatmul.mubr.bf16.gmra.mrb[72].mxu1 %v8466_v10  ;;  %v8737_v10 = vpop.permute.xlu0 %2309 }
 0x347   : > { %2882 = vmatprep.mubr.bf16.mxu1 %v8472_v16  ;;  %v8739_v16 = vpop.permute.xlu1 %2314 }
 0x34e   : > { %2883 = vmatmul.mubr.bf16.gmra.mrb[76].mxu1 %v8486_v30  ;;  %v8743_v30 = vpop.permute.xlu0 %2399 }
 0x34f   : > { %2890 = vmatprep.mubr.bf16.mxu1 %v8492_v62  ;;  %v8745_v62 = vpop.permute.xlu1 %2404 }
 0x356   : > { %2891 = vmatmul.mubr.bf16.gmra.mrb[80].mxu1 %v8506_v41  ;;  %v8749_v41 = vpop.permute.xlu0 %2319 }
 0x357   : > { %2898 = vmatprep.mubr.bf16.mxu1 %v8512_v20 }
 0x35e   : > { %2899 = vmatmul.mubr.bf16.gmra.mrb[84].mxu1 %v8526_v12  ;;  %v8751_v12 = vpop.permute.xlu1 %2324 }
 0x35f   : > { %2906 = vmatprep.mubr.bf16.mxu1 %v8532_v63 }
 0x362   : > { %v8759_v39 = vpop.permute.xlu1 %2414 }
 0x366   : > { %2907 = vmatmul.mubr.bf16.gmra.mrb[88].mxu1 %v8546_v32  ;;  %v8764_v37 = vpop.permute.xlu1 %2334 }
 0x367   : > { %2914 = vmatprep.mubr.bf16.mxu1 %v8552_v46 }
 0x36a   : > { %v8775_v15 = vpop.permute.xlu1 %2424 }
 0x36e   : > { %2915 = vmatmul.mubr.bf16.gmra.mrb[92].mxu1 %v8566_v25  ;;  %v8754_v25 = vpop.permute.xlu0 %2409  ;;  %v8787_v8 = vpop.permute.xlu1 %2344 }
 0x36f   : > { %2922 = vmatprep.mubr.bf16.mxu1 %v8572_v3 }
 0x372   : > { %v8799_v36 = vpop.permute.xlu1 %2434 }
 0x376   : > { %2923 = vmatmul.mubr.bf16.gmra.mrb[96].mxu1 %v8586_v44 }
 0x377   : > { %2930 = vmatprep.mubr.bf16.mxu1 %v8592_v56 }
 0x37e   : > { %2931 = vmatmul.mubr.bf16.gmra.mrb[100].mxu1 %v8600_v9  ;;  %v8761_v9 = vpop.permute.xlu0 %2329 }
 0x37f   : > { %2938 = vmatprep.mubr.bf16.mxu1 %v8609_v4 }
 0x382   : > { %v8771_v21 = vpop.permute.xlu0 %2419 }
 0x386   : > { %2939 = vmatmul.mubr.bf16.gmra.mrb[104].mxu1 %v8617_v29  ;;  %v8783_v13 = vpop.permute.xlu0 %2339 }
 0x387   : > { %2946 = vmatprep.mubr.bf16.mxu1 %v8626_v58 }
 0x389   : > { %v5298_v20 = vpop.f32.mrb[0].mxu1 }
 0x38a   : > { %v5299_v63 = vpop.f32.mrb[1].mxu1  ;;  %v8794_v38 = vpop.permute.xlu0 %2429 }
 0x38b   : > { %v5300_v32 = vadd.f32 %v5299_v63, %v5298_v20  ;;  %v5301_v46 = vpop.f32.mrb[2].mxu1 }
 0x38c   : > { %v5302_v45 = vpop.f32.mrb[3].mxu1 }
 0x38d   : > { %v2652_v61 = vadd.f32 %v5300_v32, %v8727_v17  ;;  %v5303_v49 = vadd.f32 %v5302_v45, %v5301_v46 }
 0x38e   : > { %2947 = vmatmul.mubr.bf16.gmra.mrb[108].mxu1 %v8634_v1  ;;  %v8810_v46 = vpop.permute.xlu0 %2349 }
 0x38f   : > { %v2655_v3 = vadd.f32 %v5303_v49, %v8729_v57  ;;  %2954 = vmatprep.mubr.bf16.mxu1 %v8643_v52  ;;  %6721 = vtanh.f32 %v2652_v61 }
 0x391   : > { %6723 = vtanh.f32 %v2655_v3  ;;  %v5304_v2 = vpop.f32.mrb[4].mxu1  ;;  %v8815_v3 = vpop.permute.xlu1 %2354 }
 0x392   : > { %v5305_v5 = vpop.f32.mrb[5].mxu1 }
 0x393   : > { %v5306_v44 = vadd.f32 %v5305_v5, %v5304_v2  ;;  %v5307_v56 = vpop.f32.mrb[6].mxu1 }
 0x394   : > { %v5308_v4 = vpop.f32.mrb[7].mxu1 }
 0x395   : > { %v2660_v29 = vadd.f32 %v5306_v44, %v8737_v10  ;;  %v5309_v58 = vadd.f32 %v5308_v4, %v5307_v56  ;;  %v8822_v56 = vpop.permute.xlu0 %2439 }
 0x396   : > { %2955 = vmatmul.mubr.bf16.gmra.mrb[112].mxu1 %v8651_v40 }
 0x397   : > { %v2663_v1 = vadd.f32 %v5309_v58, %v8739_v16  ;;  %2962 = vmatprep.mubr.bf16.mxu1 %v8660_v53  ;;  %6725 = vtanh.f32 %v2660_v29 }
 0x399   : > { %6727 = vtanh.f32 %v2663_v1  ;;  %v5310_v52 = vpop.f32.mrb[8].mxu1  ;;  %v8769_v35 = vpop.eup %6721 }
 0x39a   : > { %v5311_v59 = vpop.f32.mrb[9].mxu1 }
 0x39b   : > { %v8773_v50 = vpop.eup %6723  ;;  %v5312_v48 = vadd.f32 %v5311_v59, %v5310_v52  ;;  %v5313_v31 = vpop.f32.mrb[10].mxu1 }
 0x39c   : > { %v5314_v34 = vpop.f32.mrb[11].mxu1  ;;  %v8826_v52 = vpop.permute.xlu1 %2444 }
 0x39d   : > { %v2668_v53 = vadd.f32 %v5312_v48, %v8749_v41  ;;  %v5315_v60 = vadd.f32 %v5314_v34, %v5313_v31 }
 0x39e   : > { %2963 = vmatmul.mubr.bf16.gmra.mrb[116].mxu1 %v8668_v19 }
 0x39f   : > { %v2671_v14 = vadd.f32 %v5315_v60, %v8751_v12  ;;  %2970 = vmatprep.mubr.bf16.mxu1 %v8677_v11  ;;  %6729 = vtanh.f32 %v2668_v53  ;;  %v8832_v53 = vpop.permute.xlu0 %2359 }
 0x3a1   : > { %6731 = vtanh.f32 %v2671_v14  ;;  %v5316_v27 = vpop.f32.mrb[12].mxu1  ;;  %v8785_v18 = vpop.eup %6725 }
 0x3a2   : > { %v5317_v43 = vpop.f32.mrb[13].mxu1 }
 0x3a3   : > { %v8789_v22 = vpop.eup %6727  ;;  %v5318_v33 = vadd.f32 %v5317_v43, %v5316_v27  ;;  %v5319_v6 = vpop.f32.mrb[14].mxu1 }
 0x3a4   : > { %v5320_v26 = vpop.f32.mrb[15].mxu1  ;;  %v8836_v27 = vpop.permute.xlu1 %2364 }
 0x3a5   : > { %v2676_v11 = vadd.f32 %v5318_v33, %v8761_v9  ;;  %v5321_v47 = vadd.f32 %v5320_v26, %v5319_v6 }
 0x3a6   : > { %2971 = vmatmul.mubr.bf16.gmra.mrb[120].mxu1 %v8685_v28  ;;  %v8808_v28 = vld [vmem:[%s10033_s2 + $0x104] ss:$8 sps:$4 sm:$0xff]  }
 0x3a7   : > { %v2679_v55 = vadd.f32 %v5321_v47, %v8764_v37  ;;  %2978 = vmatprep.mubr.bf16.mxu1 %v8694_v24  ;;  %6733 = vtanh.f32 %v2676_v11  ;;  %10082 = vst [vmem:[#allocation2_spill] sm:$0xff] %v8808_v28 }
 0x3a9   : > { %6735 = vtanh.f32 %v2679_v55  ;;  %v5322_v0 = vpop.f32.mrb[16].mxu1  ;;  %v8801_v7 = vpop.eup %6729 }
 0x3aa   : > { %v5323_v23 = vpop.f32.mrb[17].mxu1 }
 0x3ab   : > { %v8803_v20 = vpop.eup %6731  ;;  %v5324_v63 = vadd.f32 %v5323_v23, %v5322_v0  ;;  %v5325_v32 = vpop.f32.mrb[18].mxu1 }
 0x3ac   : > { %v5326_v24 = vpop.f32.mrb[19].mxu1  ;;  %v8843_v23 = vpop.permute.xlu0 %2449 }
 0x3ad   : > { %v2684_v61 = vadd.f32 %v5324_v63, %v8783_v13  ;;  %v5327_v49 = vadd.f32 %v5326_v24, %v5325_v32  ;;  %v8846_v32 = vpop.permute.xlu1 %2454 }
 0x3ae   : > { %2979 = vmatmul.mubr.bf16.gmra.mrb[124].mxu1 %v8701_v42 }
 0x3af   : > { %v2687_v2 = vadd.f32 %v5327_v49, %v8787_v8  ;;  %3453 = vmatprep.mubr.bf16.mxu1 %v8808_v28  ;;  %6737 = vtanh.f32 %v2684_v61 }
 0x3b1   : > { %6739 = vtanh.f32 %v2687_v2  ;;  %v5328_v5 = vpop.f32.mrb[20].mxu1  ;;  %v8820_v44 = vpop.eup %6733 }
 0x3b2   : > { %v5329_v4 = vpop.f32.mrb[21].mxu1 }
 0x3b3   : > { %v8824_v29 = vpop.eup %6735  ;;  %v5330_v58 = vadd.f32 %v5329_v4, %v5328_v5  ;;  %v5331_v1 = vpop.f32.mrb[22].mxu1 }
 0x3b4   : > { %v5332_v59 = vpop.f32.mrb[23].mxu1 }
 0x3b5   : > { %v2692_v48 = vadd.f32 %v5330_v58, %v8810_v46  ;;  %v5333_v31 = vadd.f32 %v5332_v59, %v5331_v1  ;;  %v8852_v58 = vpop.permute.xlu0 %2369 }
 0x3b7   : > { %v2695_v34 = vadd.f32 %v5333_v31, %v8815_v3  ;;  %6741 = vtanh.f32 %v2692_v48 }
 0x3b9   : > { %6743 = vtanh.f32 %v2695_v34  ;;  %v5334_v60 = vpop.f32.mrb[24].mxu1  ;;  %v8834_v14 = vpop.eup %6737 }
 0x3ba   : > { %v5335_v43 = vpop.f32.mrb[25].mxu1  ;;  %v8857_v34 = vpop.permute.xlu1 %2374 }
 0x3bb   : > { %v8838_v33 = vpop.eup %6739  ;;  %v5336_v6 = vadd.f32 %v5335_v43, %v5334_v60  ;;  %v5337_v26 = vpop.f32.mrb[26].mxu1 }
 0x3bc   : > { %v5338_v11 = vpop.f32.mrb[27].mxu1 }
 0x3bd   : > { %v2700_v55 = vadd.f32 %v5336_v6, %v8832_v53  ;;  %v5339_v0 = vadd.f32 %v5338_v11, %v5337_v26 }
 0x3bf   : > { %v2703_v63 = vadd.f32 %v5339_v0, %v8836_v27  ;;  %6745 = vtanh.f32 %v2700_v55 }
 0x3c1   : > { %6747 = vtanh.f32 %v2703_v63  ;;  %v5340_v24 = vpop.f32.mrb[28].mxu1  ;;  %v8848_v61 = vpop.eup %6741 }
 0x3c2   : > { %v5341_v49 = vpop.f32.mrb[29].mxu1 }
 0x3c3   : > { %v8850_v2 = vpop.eup %6743  ;;  %v5342_v5 = vadd.f32 %v5341_v49, %v5340_v24  ;;  %v5343_v4 = vpop.f32.mrb[30].mxu1  ;;  %v10083_v49 = vld [vmem:[#allocation15_spill] sm:$0xff] }
 0x3c4   : > { %v5344_v1 = vpop.f32.mrb[31].mxu1 }
 0x3c5   : > { %v2708_v48 = vadd.f32 %v5342_v5, %v8852_v58  ;;  %v5345_v31 = vadd.f32 %v5344_v1, %v5343_v4  ;;  %v10084_v1 = vld [vmem:[#allocation16_spill] sm:$0xff] }
 0x3c7   : > { %v2711_v60 = vadd.f32 %v5345_v31, %v8857_v34  ;;  %6749 = vtanh.f32 %v2708_v48 }
 0x3c9   : > { %6751 = vtanh.f32 %v2711_v60  ;;  %v5346_v43 = vpop.f32.mrb[32].mxu1  ;;  %v8860_v6 = vpop.eup %6745 }
 0x3ca   : > { %v5347_v26 = vpop.f32.mrb[33].mxu1 }
 0x3cb   : > { %v8862_v11 = vpop.eup %6747  ;;  %v5348_v55 = vadd.f32 %v5347_v26, %v5346_v43  ;;  %v5349_v0 = vpop.f32.mrb[34].mxu1 }
 0x3cc   : > { %v5350_v63 = vpop.f32.mrb[35].mxu1 }
 0x3cd   : > { %v2716_v5 = vadd.f32 %v5348_v55, %v10083_v49  ;;  %v5351_v4 = vadd.f32 %v5350_v63, %v5349_v0 }
 0x3cf   : > { %v2719_v59 = vadd.f32 %v5351_v4, %v10084_v1  ;;  %6753 = vtanh.f32 %v2716_v5 }
 0x3d1   : > { %6755 = vtanh.f32 %v2719_v59  ;;  %v5352_v48 = vpop.f32.mrb[36].mxu1  ;;  %v8868_v31 = vpop.eup %6749 }
 0x3d2   : > { %v5353_v60 = vpop.f32.mrb[37].mxu1 }
 0x3d3   : > { %v8870_v47 = vpop.eup %6751  ;;  %v5354_v42 = vadd.f32 %v5353_v60, %v5352_v48  ;;  %v5355_v43 = vpop.f32.mrb[38].mxu1 }
 0x3d4   : > { %v5356_v26 = vpop.f32.mrb[39].mxu1 }
 0x3d5   : > { %v2724_v24 = vadd.f32 %v5354_v42, %v8731_v54  ;;  %v5357_v55 = vadd.f32 %v5356_v26, %v5355_v43  ;;  %v10085_v42 = vpack.c.bf16 %v8773_v50, %v8769_v35  ;;  %v10086_v35 = vpack.c.bf16 %v8789_v22, %v8785_v18 }
 0x3d6   : > { %v10087_v18 = vpack.c.bf16 %v8803_v20, %v8801_v7  ;;  %v10088_v7 = vpack.c.bf16 %v8824_v29, %v8820_v44  ;;  %v10089_v44 = vpack.c.bf16 %v8838_v33, %v8834_v14  ;;  %v10090_v14 = vpack.c.bf16 %v8850_v2, %v8848_v61 }
 0x3d7   : > { %v2727_v0 = vadd.f32 %v5357_v55, %v8735_v51  ;;  %6757 = vtanh.f32 %v2724_v24  ;;  %v10091_v61 = vpack.c.bf16 %v8862_v11, %v8860_v6  ;;  %v10092_v11 = vpack.c.bf16 %v8870_v47, %v8868_v31 }
 0x3d9   : > { %6759 = vtanh.f32 %v2727_v0  ;;  %v5358_v59 = vpop.f32.mrb[40].mxu1  ;;  %v6754_v63 = vpop.eup %6753 }
 0x3da   : > { %v5359_v5 = vpop.f32.mrb[41].mxu1 }
 0x3db   : > { %v6756_v4 = vpop.eup %6755  ;;  %v5360_v19 = vadd.f32 %v5359_v5, %v5358_v59  ;;  %v5361_v40 = vpop.f32.mrb[42].mxu1 }
 0x3dc   : > { %v5362_v28 = vpop.f32.mrb[43].mxu1  ;;  %v2818_v48 = vpack.c.bf16 %v6756_v4, %v6754_v63 }
 0x3dd   : > { %v2732_v60 = vadd.f32 %v5360_v19, %v8743_v30  ;;  %v5363_v1 = vadd.f32 %v5362_v28, %v5361_v40 }
 0x3de   : > { %5506 = vmatprep.subr.bf16.mxu1 %v2818_v48 }
 0x3df   : > { %v2735_v45 = vadd.f32 %v5363_v1, %v8745_v62  ;;  %5507 = vmatpush3.bf16.msra.mxu1 %v10085_v42  ;;  %6761 = vtanh.f32 %v2732_v60 }
 0x3e1   : > { %6763 = vtanh.f32 %v2735_v45  ;;  %v5364_v24 = vpop.f32.mrb[44].mxu1  ;;  %v6758_v43 = vpop.eup %6757 }
 0x3e2   : > { %v5365_v26 = vpop.f32.mrb[45].mxu1 }
 0x3e3   : > { %v6760_v55 = vpop.eup %6759  ;;  %v5366_v0 = vadd.f32 %v5365_v26, %v5364_v24  ;;  %v5367_v59 = vpop.f32.mrb[46].mxu1 }
 0x3e4   : > { %v5368_v5 = vpop.f32.mrb[47].mxu1  ;;  %v2819_v63 = vpack.c.bf16 %v6760_v55, %v6758_v43 }
 0x3e5   : > { %v2740_v19 = vadd.f32 %v5366_v0, %v8754_v25  ;;  %v5369_v40 = vadd.f32 %v5368_v5, %v5367_v59 }
 0x3e6   : > { %5508 = vmatprep.subr.bf16.mxu1 %v2819_v63 }
 0x3e7   : > { %v2743_v28 = vadd.f32 %v5369_v40, %v8759_v39  ;;  %5509 = vmatpush3.bf16.msra.mxu1 %v10086_v35  ;;  %6765 = vtanh.f32 %v2740_v19 }
 0x3e9   : > { %6767 = vtanh.f32 %v2743_v28  ;;  %v5370_v50 = vpop.f32.mrb[48].mxu1  ;;  %v6762_v45 = vpop.eup %6761 }
 0x3ea   : > { %v5371_v1 = vpop.f32.mrb[49].mxu1 }
 0x3eb   : > { %v6764_v4 = vpop.eup %6763  ;;  %v5372_v48 = vadd.f32 %v5371_v1, %v5370_v50  ;;  %v5373_v60 = vpop.f32.mrb[50].mxu1 }
 0x3ec   : > { %v5374_v42 = vpop.f32.mrb[51].mxu1  ;;  %v2820_v24 = vpack.c.bf16 %v6764_v4, %v6762_v45 }
 0x3ed   : > { %v2748_v43 = vadd.f32 %v5372_v48, %v8771_v21  ;;  %v5375_v26 = vadd.f32 %v5374_v42, %v5373_v60 }
 0x3ee   : > { %5510 = vmatprep.subr.bf16.mxu1 %v2820_v24 }
 0x3ef   : > { %v2751_v55 = vadd.f32 %v5375_v26, %v8775_v15  ;;  %5511 = vmatpush3.bf16.msra.mxu1 %v10087_v18  ;;  %6769 = vtanh.f32 %v2748_v43 }
 0x3f1   : > { %6771 = vtanh.f32 %v2751_v55  ;;  %v5376_v22 = vpop.f32.mrb[52].mxu1  ;;  %v6766_v0 = vpop.eup %6765 }
 0x3f2   : > { %v5377_v59 = vpop.f32.mrb[53].mxu1 }
 0x3f3   : > { %v6768_v5 = vpop.eup %6767  ;;  %v5378_v63 = vadd.f32 %v5377_v59, %v5376_v22  ;;  %v5379_v19 = vpop.f32.mrb[54].mxu1 }
 0x3f4   : > { %v5380_v40 = vpop.f32.mrb[55].mxu1  ;;  %v2821_v28 = vpack.c.bf16 %v6768_v5, %v6766_v0 }
 0x3f5   : > { %v2756_v35 = vadd.f32 %v5378_v63, %v8794_v38  ;;  %v5381_v50 = vadd.f32 %v5380_v40, %v5379_v19 }
 0x3f6   : > { %5512 = vmatprep.subr.bf16.mxu1 %v2821_v28 }
 0x3f7   : > { %v2759_v45 = vadd.f32 %v5381_v50, %v8799_v36  ;;  %5513 = vmatpush3.bf16.msra.mxu1 %v10088_v7  ;;  %6773 = vtanh.f32 %v2756_v35 }
 0x3f9   : > { %6775 = vtanh.f32 %v2759_v45  ;;  %v5382_v20 = vpop.f32.mrb[56].mxu1  ;;  %v6770_v1 = vpop.eup %6769 }
 0x3fa   : > { %v5383_v4 = vpop.f32.mrb[57].mxu1 }
 0x3fb   : > { %v6772_v48 = vpop.eup %6771  ;;  %v5384_v60 = vadd.f32 %v5383_v4, %v5382_v20  ;;  %v5385_v42 = vpop.f32.mrb[58].mxu1 }
 0x3fc   : > { %v5386_v24 = vpop.f32.mrb[59].mxu1  ;;  %v2822_v43 = vpack.c.bf16 %v6772_v48, %v6770_v1 }
 0x3fd   : > { %v2764_v26 = vadd.f32 %v5384_v60, %v8822_v56  ;;  %v5387_v55 = vadd.f32 %v5386_v24, %v5385_v42 }
 0x3fe   : > { %5514 = vmatprep.subr.bf16.mxu1 %v2822_v43 }
 0x3ff   : > { %v2767_v18 = vadd.f32 %v5387_v55, %v8826_v52  ;;  %5515 = vmatpush3.bf16.msra.mxu1 %v10089_v44  ;;  %6777 = vtanh.f32 %v2764_v26 }
 0x401   : > { %6779 = vtanh.f32 %v2767_v18  ;;  %v5388_v29 = vpop.f32.mrb[60].mxu1  ;;  %v6774_v22 = vpop.eup %6773 }
 0x402   : > { %v5389_v0 = vpop.f32.mrb[61].mxu1 }
 0x403   : > { %v6776_v59 = vpop.eup %6775  ;;  %v5390_v5 = vadd.f32 %v5389_v0, %v5388_v29  ;;  %v5391_v63 = vpop.f32.mrb[62].mxu1 }
 0x404   : > { %v5392_v19 = vpop.f32.mrb[63].mxu1  ;;  %v2823_v40 = vpack.c.bf16 %v6776_v59, %v6774_v22 }
 0x405   : > { %v2772_v28 = vadd.f32 %v5390_v5, %v8843_v23  ;;  %v5393_v35 = vadd.f32 %v5392_v19, %v5391_v63  ;;  %v8924_v5 = vld [vmem:[%s10033_s2 + $0x114] ss:$8 sps:$4 sm:$0xff]  }
 0x406   : > { %5516 = vmatprep.subr.bf16.mxu1 %v2823_v40 }
 0x407   : > { %v2775_v50 = vadd.f32 %v5393_v35, %v8846_v32  ;;  %5517 = vmatpush3.bf16.msra.mxu1 %v10090_v14  ;;  %6781 = vtanh.f32 %v2772_v28  ;;  %v8938_v14 = vld [vmem:[%s10033_s2 + $0x110] ss:$8 sps:$4 sm:$0xff]  }
 0x409   : > { %6783 = vtanh.f32 %v2775_v50  ;;  %v5410_v33 = vpop.f32.mrb[64].mxu1  ;;  %v6778_v45 = vpop.eup %6777 }
 0x40a   : > { %v5411_v7 = vpop.f32.mrb[65].mxu1 }
 0x40b   : > { %v6780_v20 = vpop.eup %6779  ;;  %v5412_v1 = vadd.f32 %v5411_v7, %v5410_v33  ;;  %v5413_v4 = vpop.f32.mrb[66].mxu1 }
 0x40c   : > { %v5414_v48 = vpop.f32.mrb[67].mxu1  ;;  %v2824_v60 = vpack.c.bf16 %v6780_v20, %v6778_v45  ;;  %v8944_v45 = vld [vmem:[%s10033_s2 + $0x124] ss:$8 sps:$4 sm:$0xff]  }
 0x40d   : > { %v2861_v42 = vadd.f32 %v5412_v1, %v8727_v17  ;;  %v5415_v24 = vadd.f32 %v5414_v48, %v5413_v4 }
 0x40e   : > { %5518 = vmatprep.subr.bf16.mxu1 %v2824_v60 }
 0x40f   : > { %v2864_v43 = vadd.f32 %v5415_v24, %v8729_v57  ;;  %5519 = vmatpush3.bf16.msra.mxu1 %v10091_v61  ;;  %6785 = vtanh.f32 %v2861_v42  ;;  %v8915_v57 = vld [vmem:[%s10033_s2 + $0x100] ss:$8 sps:$4 sm:$0xff]  }
 0x411   : > { %6787 = vtanh.f32 %v2864_v43  ;;  %v5416_v2 = vpop.f32.mrb[68].mxu1  ;;  %v6782_v26 = vpop.eup %6781  ;;  %v8958_v43 = vld [vmem:[%s10033_s2 + $0x120] ss:$8 sps:$4 sm:$0xff]  }
 0x412   : > { %v5417_v55 = vpop.f32.mrb[69].mxu1 }
 0x413   : > { %v6784_v18 = vpop.eup %6783  ;;  %v5418_v44 = vadd.f32 %v5417_v55, %v5416_v2  ;;  %v5419_v29 = vpop.f32.mrb[70].mxu1  ;;  %v8964_v2 = vld [vmem:[%s10033_s2 + $0x134] ss:$8 sps:$4 sm:$0xff]  }
 0x414   : > { %v5420_v22 = vpop.f32.mrb[71].mxu1  ;;  %v2825_v0 = vpack.c.bf16 %v6784_v18, %v6782_v26 }
 0x415   : > { %v2869_v17 = vadd.f32 %v5418_v44, %v8737_v10  ;;  %v5421_v59 = vadd.f32 %v5420_v22, %v5419_v29 }
 0x416   : > { %5520 = vmatprep.subr.bf16.mxu1 %v2825_v0 }
 0x417   : > { %v2872_v6 = vadd.f32 %v5421_v59, %v8739_v16  ;;  %5521 = vmatpush3.bf16.msra.mxu1 %v10092_v11  ;;  %6789 = vtanh.f32 %v2869_v17  ;;  %v8978_v59 = vld [vmem:[%s10033_s2 + $0x130] ss:$8 sps:$4 sm:$0xff]   ;;  %v8984_v11 = vld [vmem:[%s10033_s2 + $0x144] ss:$8 sps:$4 sm:$0xff]  }
 0x419   : > { %6791 = vtanh.f32 %v2872_v6  ;;  %v5422_v10 = vpop.f32.mrb[72].mxu1  ;;  %v8926_v63 = vpop.eup %6785 }
 0x41a   : > { %v5423_v19 = vpop.f32.mrb[73].mxu1  ;;  %3454 = vmatmul.mubr.bf16.vlgmr.msra.gmra.mrb[128].mxu1 %v8915_v57 }
 0x41b   : > { %v8929_v40 = vpop.eup %6787  ;;  %v5424_v16 = vadd.f32 %v5423_v19, %v5422_v10  ;;  %v5425_v28 = vpop.f32.mrb[74].mxu1  ;;  %3461 = vmatprep.mubr.bf16.mxu1 %v8924_v5 }
 0x41c   : > { %v5426_v47 = vpop.f32.mrb[75].mxu1  ;;  %v3019_v31 = vpack.c.bf16 %v8929_v40, %v8926_v63 }
 0x41d   : > { %v2877_v35 = vadd.f32 %v5424_v16, %v8749_v41  ;;  %v5427_v50 = vadd.f32 %v5426_v47, %v5425_v28 }
 0x41f   : > { %v2880_v33 = vadd.f32 %v5427_v50, %v8751_v12  ;;  %6793 = vtanh.f32 %v2877_v35 }
 0x421   : > { %6795 = vtanh.f32 %v2880_v33  ;;  %v5428_v7 = vpop.f32.mrb[76].mxu1  ;;  %v8946_v20 = vpop.eup %6789 }
 0x422   : > { %v5429_v1 = vpop.f32.mrb[77].mxu1  ;;  %3462 = vmatmul.mubr.bf16.gmra.mrb[132].mxu1 %v8938_v14 }
 0x423   : > { %v8949_v41 = vpop.eup %6791  ;;  %v5430_v4 = vadd.f32 %v5429_v1, %v5428_v7  ;;  %v5431_v48 = vpop.f32.mrb[78].mxu1  ;;  %3469 = vmatprep.mubr.bf16.mxu1 %v8944_v45  ;;  %v8998_v7 = vld [vmem:[%s10033_s2 + $0x140] ss:$8 sps:$4 sm:$0xff]  }
 0x424   : > { %v5432_v12 = vpop.f32.mrb[79].mxu1  ;;  %v3020_v60 = vpack.c.bf16 %v8949_v41, %v8946_v20 }
 0x425   : > { %v2885_v42 = vadd.f32 %v5430_v4, %v8761_v9  ;;  %v5433_v24 = vadd.f32 %v5432_v12, %v5431_v48  ;;  %v9004_v4 = vld [vmem:[%s10033_s2 + $0x154] ss:$8 sps:$4 sm:$0xff]  }
 0x427   : > { %v2888_v61 = vadd.f32 %v5433_v24, %v8764_v37  ;;  %6797 = vtanh.f32 %v2885_v42 }
 0x429   : > { %6799 = vtanh.f32 %v2888_v61  ;;  %v5434_v26 = vpop.f32.mrb[80].mxu1  ;;  %v8966_v55 = vpop.eup %6793 }
 0x42a   : > { %v5435_v18 = vpop.f32.mrb[81].mxu1  ;;  %3470 = vmatmul.mubr.bf16.gmra.mrb[136].mxu1 %v8958_v43 }
 0x42b   : > { %v8969_v9 = vpop.eup %6795  ;;  %v5436_v44 = vadd.f32 %v5435_v18, %v5434_v26  ;;  %v5437_v29 = vpop.f32.mrb[82].mxu1  ;;  %3477 = vmatprep.mubr.bf16.mxu1 %v8964_v2 }
 0x42c   : > { %v5438_v37 = vpop.f32.mrb[83].mxu1  ;;  %v3021_v22 = vpack.c.bf16 %v8969_v9, %v8966_v55 }
 0x42d   : > { %v2893_v0 = vadd.f32 %v5436_v44, %v8783_v13  ;;  %v5439_v17 = vadd.f32 %v5438_v37, %v5437_v29  ;;  %v9018_v29 = vld [vmem:[%s10033_s2 + $0x150] ss:$8 sps:$4 sm:$0xff]  }
 0x42f   : > { %v2896_v6 = vadd.f32 %v5439_v17, %v8787_v8  ;;  %6801 = vtanh.f32 %v2893_v0  ;;  %v9024_v0 = vld [vmem:[%s10033_s2 + $0x164] ss:$8 sps:$4 sm:$0xff]  }
 0x431   : > { %6803 = vtanh.f32 %v2896_v6  ;;  %v5440_v10 = vpop.f32.mrb[84].mxu1  ;;  %v8986_v19 = vpop.eup %6797 }
 0x432   : > { %v5441_v16 = vpop.f32.mrb[85].mxu1  ;;  %3478 = vmatmul.mubr.bf16.gmra.mrb[140].mxu1 %v8978_v59 }
 0x433   : > { %v8989_v13 = vpop.eup %6799  ;;  %v5442_v28 = vadd.f32 %v5441_v16, %v5440_v10  ;;  %v5443_v47 = vpop.f32.mrb[86].mxu1  ;;  %3485 = vmatprep.mubr.bf16.mxu1 %v8984_v11 }
 0x434   : > { %v5444_v8 = vpop.f32.mrb[87].mxu1  ;;  %v3022_v35 = vpack.c.bf16 %v8989_v13, %v8986_v19 }
 0x435   : > { %v2901_v50 = vadd.f32 %v5442_v28, %v8810_v46  ;;  %v5445_v33 = vadd.f32 %v5444_v8, %v5443_v47 }
 0x437   : > { %v2904_v1 = vadd.f32 %v5445_v33, %v8815_v3  ;;  %6805 = vtanh.f32 %v2901_v50  ;;  %v9038_v33 = vld [vmem:[%s10033_s2 + $0x160] ss:$8 sps:$4 sm:$0xff]  }
 0x439   : > { %6807 = vtanh.f32 %v2904_v1  ;;  %v5446_v48 = vpop.f32.mrb[88].mxu1  ;;  %v9006_v12 = vpop.eup %6801 }
 0x43a   : > { %v5447_v42 = vpop.f32.mrb[89].mxu1  ;;  %3486 = vmatmul.mubr.bf16.gmra.mrb[144].mxu1 %v8998_v7 }
 0x43b   : > { %v9009_v46 = vpop.eup %6803  ;;  %v5448_v24 = vadd.f32 %v5447_v42, %v5446_v48  ;;  %v5449_v61 = vpop.f32.mrb[90].mxu1  ;;  %3493 = vmatprep.mubr.bf16.mxu1 %v9004_v4  ;;  %v9044_v48 = vld [vmem:[%s10033_s2 + $0x174] ss:$8 sps:$4 sm:$0xff]  }
 0x43c   : > { %v5450_v3 = vpop.f32.mrb[91].mxu1  ;;  %v3023_v26 = vpack.c.bf16 %v9009_v46, %v9006_v12 }
 0x43d   : > { %v2909_v18 = vadd.f32 %v5448_v24, %v8832_v53  ;;  %v5451_v44 = vadd.f32 %v5450_v3, %v5449_v61 }
 0x43f   : > { %v2912_v37 = vadd.f32 %v5451_v44, %v8836_v27  ;;  %6809 = vtanh.f32 %v2909_v18 }
 0x441   : > { %6811 = vtanh.f32 %v2912_v37  ;;  %v5452_v17 = vpop.f32.mrb[92].mxu1  ;;  %v9026_v6 = vpop.eup %6805 }
 0x442   : > { %v5453_v10 = vpop.f32.mrb[93].mxu1  ;;  %3494 = vmatmul.mubr.bf16.gmra.mrb[148].mxu1 %v9018_v29 }
 0x443   : > { %v9029_v53 = vpop.eup %6807  ;;  %v5454_v16 = vadd.f32 %v5453_v10, %v5452_v17  ;;  %v5455_v28 = vpop.f32.mrb[94].mxu1  ;;  %3501 = vmatprep.mubr.bf16.mxu1 %v9024_v0  ;;  %v9058_v10 = vld [vmem:[%s10033_s2 + $0x170] ss:$8 sps:$4 sm:$0xff]  }
 0x444   : > { %v5456_v27 = vpop.f32.mrb[95].mxu1  ;;  %v3024_v47 = vpack.c.bf16 %v9029_v53, %v9026_v6 }
 0x445   : > { %v2917_v8 = vadd.f32 %v5454_v16, %v8852_v58  ;;  %v5457_v50 = vadd.f32 %v5456_v27, %v5455_v28  ;;  %v10093_v16 = vld [vmem:[#allocation16_spill] sm:$0xff]  ;;  %v9064_v27 = vld [vmem:[%s10033_s2 + $0x184] ss:$8 sps:$4 sm:$0xff]  }
 0x447   : > { %v2920_v1 = vadd.f32 %v5457_v50, %v8857_v34  ;;  %6813 = vtanh.f32 %v2917_v8 }
 0x449   : > { %6815 = vtanh.f32 %v2920_v1  ;;  %v5458_v42 = vpop.f32.mrb[96].mxu1  ;;  %v9046_v24 = vpop.eup %6809 }
 0x44a   : > { %v5459_v61 = vpop.f32.mrb[97].mxu1  ;;  %3502 = vmatmul.mubr.bf16.gmra.mrb[152].mxu1 %v9038_v33 }
 0x44b   : > { %v9049_v58 = vpop.eup %6811  ;;  %v5460_v3 = vadd.f32 %v5459_v61, %v5458_v42  ;;  %v5461_v18 = vpop.f32.mrb[98].mxu1  ;;  %3509 = vmatprep.mubr.bf16.mxu1 %v9044_v48 }
 0x44c   : > { %v5462_v34 = vpop.f32.mrb[99].mxu1  ;;  %v10094_v6 = vpack.c.bf16 %v9049_v58, %v9046_v24 }
 0x44d   : > { %v2925_v37 = vadd.f32 %v5460_v3, %v10083_v49  ;;  %v5463_v17 = vadd.f32 %v5462_v34, %v5461_v18 }
 0x44f   : > { %v2928_v28 = vadd.f32 %v5463_v17, %v10093_v16  ;;  %6817 = vtanh.f32 %v2925_v37  ;;  %v9078_v17 = vld [vmem:[%s10033_s2 + $0x180] ss:$8 sps:$4 sm:$0xff]  }
 0x451   : > { %6819 = vtanh.f32 %v2928_v28  ;;  %v5464_v8 = vpop.f32.mrb[100].mxu1  ;;  %v9066_v50 = vpop.eup %6813  ;;  %v9084_v28 = vld [vmem:[%s10033_s2 + $0x194] ss:$8 sps:$4 sm:$0xff]  }
 0x452   : > { %v5465_v1 = vpop.f32.mrb[101].mxu1  ;;  %3510 = vmatmul.mubr.bf16.gmra.mrb[156].mxu1 %v9058_v10 }
 0x453   : > { %v9069_v49 = vpop.eup %6815  ;;  %v5466_v42 = vadd.f32 %v5465_v1, %v5464_v8  ;;  %v5467_v61 = vpop.f32.mrb[102].mxu1  ;;  %3517 = vmatprep.mubr.bf16.mxu1 %v9064_v27 }
 0x454   : > { %v5468_v3 = vpop.f32.mrb[103].mxu1 }
 0x455   : > { %v2933_v34 = vadd.f32 %v5466_v42, %v8731_v54  ;;  %v5469_v37 = vadd.f32 %v5468_v3, %v5467_v61 }
 0x457   : > { %v2936_v16 = vadd.f32 %v5469_v37, %v8735_v51  ;;  %6821 = vtanh.f32 %v2933_v34  ;;  %v9092_v34 = vld [vmem:[%s10033_s2 + $0x190] ss:$8 sps:$4 sm:$0xff]  }
 0x459   : > { %6823 = vtanh.f32 %v2936_v16  ;;  %v5470_v8 = vpop.f32.mrb[104].mxu1  ;;  %v6818_v1 = vpop.eup %6817 }
 0x45a   : > { %v5471_v18 = vpop.f32.mrb[105].mxu1  ;;  %3518 = vmatmul.mubr.bf16.gmra.mrb[160].mxu1 %v9078_v17 }
 0x45b   : > { %v6820_v54 = vpop.eup %6819  ;;  %v5472_v42 = vadd.f32 %v5471_v18, %v5470_v8  ;;  %v5473_v61 = vpop.f32.mrb[106].mxu1  ;;  %3525 = vmatprep.mubr.bf16.mxu1 %v9084_v28  ;;  %v9101_v18 = vld [vmem:[%s10033_s2 + $0x1a4] ss:$8 sps:$4 sm:$0xff]  }
 0x45c   : > { %v5474_v3 = vpop.f32.mrb[107].mxu1  ;;  %v3027_v44 = vpack.c.bf16 %v6820_v54, %v6818_v1 }
 0x45d   : > { %v2941_v51 = vadd.f32 %v5472_v42, %v8743_v30  ;;  %v5475_v37 = vadd.f32 %v5474_v3, %v5473_v61  ;;  %v9109_v61 = vld [vmem:[%s10033_s2 + $0x1a0] ss:$8 sps:$4 sm:$0xff]  }
 0x45e   : > { %5618 = vmatprep.subr.bf16.mxu1 %v3027_v44 }
 0x45f   : > { %v2944_v16 = vadd.f32 %v5475_v37, %v8745_v62  ;;  %5619 = vmatpush3.bf16.msra.mxu1 %v3019_v31  ;;  %6825 = vtanh.f32 %v2941_v51  ;;  %v9118_v51 = vld [vmem:[%s10033_s2 + $0x1b4] ss:$8 sps:$4 sm:$0xff]  }
 0x461   : > { %6827 = vtanh.f32 %v2944_v16  ;;  %v5476_v30 = vpop.f32.mrb[108].mxu1  ;;  %v6822_v44 = vpop.eup %6821 }
 0x462   : > { %v5477_v8 = vpop.f32.mrb[109].mxu1  ;;  %3526 = vmatmul.mubr.bf16.gmra.mrb[164].mxu1 %v9092_v34 }
 0x463   : > { %v6824_v1 = vpop.eup %6823  ;;  %v5478_v54 = vadd.f32 %v5477_v8, %v5476_v30  ;;  %v5479_v42 = vpop.f32.mrb[110].mxu1  ;;  %3533 = vmatprep.mubr.bf16.mxu1 %v9101_v18 }
 0x464   : > { %v5480_v62 = vpop.f32.mrb[111].mxu1  ;;  %v3028_v63 = vpack.c.bf16 %v6824_v1, %v6822_v44  ;;  %v9126_v1 = vld [vmem:[%s10033_s2 + $0x1b0] ss:$8 sps:$4 sm:$0xff]  }
 0x465   : > { %v2949_v40 = vadd.f32 %v5478_v54, %v8754_v25  ;;  %v5481_v31 = vadd.f32 %v5480_v62, %v5479_v42  ;;  %v9135_v42 = vld [vmem:[%s10033_s2 + $0x1c4] ss:$8 sps:$4 sm:$0xff]  }
 0x466   : > { %5620 = vmatprep.subr.bf16.mxu1 %v3028_v63 }
 0x467   : > { %v2952_v3 = vadd.f32 %v5481_v31, %v8759_v39  ;;  %5621 = vmatpush3.bf16.msra.mxu1 %v3020_v60  ;;  %6829 = vtanh.f32 %v2949_v40 }
 0x469   : > { %6831 = vtanh.f32 %v2952_v3  ;;  %v5482_v25 = vpop.f32.mrb[112].mxu1  ;;  %v6826_v37 = vpop.eup %6825 }
 0x46a   : > { %v5483_v16 = vpop.f32.mrb[113].mxu1  ;;  %3534 = vmatmul.mubr.bf16.gmra.mrb[168].mxu1 %v9109_v61 }
 0x46b   : > { %v6828_v30 = vpop.eup %6827  ;;  %v5484_v44 = vadd.f32 %v5483_v16, %v5482_v25  ;;  %v5485_v8 = vpop.f32.mrb[114].mxu1  ;;  %3541 = vmatprep.mubr.bf16.mxu1 %v9118_v51  ;;  %v9143_v25 = vld [vmem:[%s10033_s2 + $0x1c0] ss:$8 sps:$4 sm:$0xff]   ;;  %v9152_v16 = vld [vmem:[%s10033_s2 + $0x1d4] ss:$8 sps:$4 sm:$0xff]  }
 0x46c   : > { %v5486_v39 = vpop.f32.mrb[115].mxu1  ;;  %v3029_v20 = vpack.c.bf16 %v6828_v30, %v6826_v37 }
 0x46d   : > { %v2957_v41 = vadd.f32 %v5484_v44, %v8771_v21  ;;  %v5487_v60 = vadd.f32 %v5486_v39, %v5485_v8 }
 0x46e   : > { %5622 = vmatprep.subr.bf16.mxu1 %v3029_v20 }
 0x46f   : > { %v2960_v54 = vadd.f32 %v5487_v60, %v8775_v15  ;;  %5623 = vmatpush3.bf16.msra.mxu1 %v3021_v22  ;;  %6833 = vtanh.f32 %v2957_v41  ;;  %v9160_v41 = vld [vmem:[%s10033_s2 + $0x1d0] ss:$8 sps:$4 sm:$0xff]  }
 0x471   : > { %6835 = vtanh.f32 %v2960_v54  ;;  %v5488_v21 = vpop.f32.mrb[116].mxu1  ;;  %v6830_v62 = vpop.eup %6829  ;;  %v9169_v54 = vld [vmem:[%s10033_s2 + $0x1e4] ss:$8 sps:$4 sm:$0xff]  }
 0x472   : > { %v5489_v63 = vpop.f32.mrb[117].mxu1  ;;  %3542 = vmatmul.mubr.bf16.gmra.mrb[172].mxu1 %v9126_v1 }
 0x473   : > { %v6832_v40 = vpop.eup %6831  ;;  %v5490_v31 = vadd.f32 %v5489_v63, %v5488_v21  ;;  %v5491_v3 = vpop.f32.mrb[118].mxu1  ;;  %3549 = vmatprep.mubr.bf16.mxu1 %v9135_v42 }
 0x474   : > { %v5492_v15 = vpop.f32.mrb[119].mxu1  ;;  %v3030_v55 = vpack.c.bf16 %v6832_v40, %v6830_v62 }
 0x475   : > { %v2965_v9 = vadd.f32 %v5490_v31, %v8794_v38  ;;  %v5493_v22 = vadd.f32 %v5492_v15, %v5491_v3  ;;  %v9177_v3 = vld [vmem:[%s10033_s2 + $0x1e0] ss:$8 sps:$4 sm:$0xff]  }
 0x476   : > { %5624 = vmatprep.subr.bf16.mxu1 %v3030_v55  ;;  %v9186_v55 = vld [vmem:[%s10033_s2 + $0x1f4] ss:$8 sps:$4 sm:$0xff]  }
 0x477   : > { %v2968_v37 = vadd.f32 %v5493_v22, %v8799_v36  ;;  %5625 = vmatpush3.bf16.msra.mxu1 %v3022_v35  ;;  %6837 = vtanh.f32 %v2965_v9 }
 0x479   : > { %6839 = vtanh.f32 %v2968_v37  ;;  %v5494_v38 = vpop.f32.mrb[120].mxu1  ;;  %v6834_v30 = vpop.eup %6833  ;;  %v10095_v37 = vld [vmem:[#allocation2_spill] sm:$0xff] }
 0x47a   : > { %v5495_v44 = vpop.f32.mrb[121].mxu1  ;;  %3550 = vmatmul.mubr.bf16.gmra.mrb[176].mxu1 %v9143_v25 }
 0x47b   : > { %v6836_v8 = vpop.eup %6835  ;;  %v5496_v39 = vadd.f32 %v5495_v44, %v5494_v38  ;;  %v5497_v20 = vpop.f32.mrb[122].mxu1  ;;  %3557 = vmatprep.mubr.bf16.mxu1 %v9152_v16 }
 0x47c   : > { %v5498_v36 = vpop.f32.mrb[123].mxu1  ;;  %v3031_v19 = vpack.c.bf16 %v6836_v8, %v6834_v30  ;;  %v10096_v30 = vpack.c.bf16 %v9069_v49, %v9066_v50 }
 0x47d   : > { %v2973_v13 = vadd.f32 %v5496_v39, %v8822_v56  ;;  %v5499_v35 = vadd.f32 %v5498_v36, %v5497_v20 }
 0x47e   : > { %5626 = vmatprep.subr.bf16.mxu1 %v3031_v19 }
 0x47f   : > { %v2976_v60 = vadd.f32 %v5499_v35, %v8826_v52  ;;  %5627 = vmatpush3.bf16.msra.mxu1 %v3023_v26  ;;  %6841 = vtanh.f32 %v2973_v13 }
 0x481   : > { %6843 = vtanh.f32 %v2976_v60  ;;  %v5500_v56 = vpop.f32.mrb[124].mxu1  ;;  %v6838_v21 = vpop.eup %6837 }
 0x482   : > { %v5501_v62 = vpop.f32.mrb[125].mxu1  ;;  %3558 = vmatmul.mubr.bf16.gmra.mrb[180].mxu1 %v9160_v41 }
 0x483   : > { %v6840_v63 = vpop.eup %6839  ;;  %v5502_v40 = vadd.f32 %v5501_v62, %v5500_v56  ;;  %v5503_v31 = vpop.f32.mrb[126].mxu1  ;;  %3565 = vmatprep.mubr.bf16.mxu1 %v9169_v54 }
 0x484   : > { %v5504_v52 = vpop.f32.mrb[127].mxu1  ;;  %v3032_v12 = vpack.c.bf16 %v6840_v63, %v6838_v21 }
 0x485   : > { %v2981_v46 = vadd.f32 %v5502_v40, %v8843_v23  ;;  %v5505_v26 = vadd.f32 %v5504_v52, %v5503_v31 }
 0x486   : > { %5628 = vmatprep.subr.bf16.mxu1 %v3032_v12 }
 0x487   : > { %v2984_v15 = vadd.f32 %v5505_v26, %v8846_v32  ;;  %5629 = vmatpush3.bf16.msra.mxu1 %v3024_v47  ;;  %6845 = vtanh.f32 %v2981_v46  ;;  %v9193_v32 = vld [vmem:[%s10033_s2 + $0x1f0] ss:$8 sps:$4 sm:$0xff]  }
 0x489   : > { %6847 = vtanh.f32 %v2984_v15  ;;  %v6842_v23 = vpop.eup %6841 }
 0x48a   : > { %3566 = vmatmul.mubr.bf16.gmra.mrb[184].mxu1 %v9177_v3 }
 0x48b   : > { %v6844_v9 = vpop.eup %6843  ;;  %3573 = vmatprep.mubr.bf16.mxu1 %v9186_v55 }
 0x48c   : > { %v3033_v22 = vpack.c.bf16 %v6844_v9, %v6842_v23 }
 0x48e   : > { %5630 = vmatprep.subr.bf16.mxu1 %v3033_v22 }
 0x48f   : > { %5631 = vmatpush3.bf16.msra.mxu1 %v10094_v6 }
 0x491   : > { %v6846_v53 = vpop.eup %6845 }
 0x492   : > { %3574 = vmatmul.mubr.bf16.gmra.mrb[188].mxu1 %v9193_v32 }
 0x493   : > { %v6848_v47 = vpop.eup %6847  ;;  %3662 = vmatprep.mubr.bf16.mxu1 %v10095_v37 }
 0x494   : > { %v3034_v38 = vpack.c.bf16 %v6848_v47, %v6846_v53 }
 0x496   : > { %5632 = vmatprep.subr.bf16.mxu1 %v3034_v38 }
 0x497   : > { %5633 = vmatpush3.bf16.msra.mxu1 %v10096_v30 }
 0x49a   : > { %3663 = vmatmul.mubr.bf16.vlgmr.msra.gmra.mrb[192].mxu1 %v8915_v57  ;;  %v9217_v57 = vpop.permute.xlu0 %3183 }
 0x49b   : > { %3670 = vmatprep.mubr.bf16.mxu1 %v8924_v5  ;;  %v9219_v5 = vpop.permute.xlu1 %3188 }
 0x49c   : > { %10097 = vst [vmem:[#allocation3_spill] sm:$0xff] %v9219_v5 }
 0x4a2   : > { %3671 = vmatmul.mubr.bf16.gmra.mrb[196].mxu1 %v8938_v14  ;;  %v9223_v14 = vpop.permute.xlu0 %3103 }
 0x4a3   : > { %3678 = vmatprep.mubr.bf16.mxu1 %v8944_v45  ;;  %v9225_v45 = vpop.permute.xlu1 %3108 }
 0x4aa   : > { %3679 = vmatmul.mubr.bf16.gmra.mrb[200].mxu1 %v8958_v43  ;;  %v9227_v43 = vpop.permute.xlu0 %3193 }
 0x4ab   : > { %3686 = vmatprep.mubr.bf16.mxu1 %v8964_v2  ;;  %v9231_v2 = vpop.permute.xlu1 %3198 }
 0x4b2   : > { %3687 = vmatmul.mubr.bf16.gmra.mrb[204].mxu1 %v8978_v59  ;;  %v9233_v59 = vpop.permute.xlu0 %3113 }
 0x4b3   : > { %3694 = vmatprep.mubr.bf16.mxu1 %v8984_v11  ;;  %v9235_v11 = vpop.permute.xlu1 %3118 }
 0x4ba   : > { %3695 = vmatmul.mubr.bf16.gmra.mrb[208].mxu1 %v8998_v7  ;;  %v9239_v7 = vpop.permute.xlu0 %3203 }
 0x4bb   : > { %3702 = vmatprep.mubr.bf16.mxu1 %v9004_v4  ;;  %v9241_v4 = vpop.permute.xlu1 %3208 }
 0x4c2   : > { %3703 = vmatmul.mubr.bf16.gmra.mrb[212].mxu1 %v9018_v29  ;;  %v9245_v29 = vpop.permute.xlu0 %3123 }
 0x4c3   : > { %3710 = vmatprep.mubr.bf16.mxu1 %v9024_v0 }
 0x4c6   : > { %v9250_v49 = vpop.permute.xlu0 %3213 }
 0x4ca   : > { %3711 = vmatmul.mubr.bf16.gmra.mrb[216].mxu1 %v9038_v33  ;;  %v9247_v33 = vpop.permute.xlu1 %3128  ;;  %v9257_v44 = vpop.permute.xlu0 %3133 }
 0x4cb   : > { %3718 = vmatprep.mubr.bf16.mxu1 %v9044_v48 }
 0x4ce   : > { %v9270_v35 = vpop.permute.xlu0 %3223 }
 0x4d2   : > { %3719 = vmatmul.mubr.bf16.gmra.mrb[220].mxu1 %v9058_v10  ;;  %v9282_v12 = vpop.permute.xlu0 %3143 }
 0x4d3   : > { %3726 = vmatprep.mubr.bf16.mxu1 %v9064_v27 }
 0x4d6   : > { %v9293_v37 = vpop.permute.xlu0 %3233 }
 0x4da   : > { %3727 = vmatmul.mubr.bf16.gmra.mrb[224].mxu1 %v9078_v17 }
 0x4db   : > { %3734 = vmatprep.mubr.bf16.mxu1 %v9084_v28  ;;  %v9255_v28 = vpop.permute.xlu1 %3218 }
 0x4df   : > { %v9260_v36 = vpop.permute.xlu1 %3138 }
 0x4e2   : > { %3735 = vmatmul.mubr.bf16.gmra.mrb[228].mxu1 %v9092_v34 }
 0x4e3   : > { %3742 = vmatprep.mubr.bf16.mxu1 %v9101_v18  ;;  %v9274_v62 = vpop.permute.xlu1 %3228 }
 0x4e7   : > { %v9286_v15 = vpop.permute.xlu1 %3148 }
 0x4ea   : > { %3743 = vmatmul.mubr.bf16.gmra.mrb[232].mxu1 %v9109_v61 }
 0x4eb   : > { %3750 = vmatprep.mubr.bf16.mxu1 %v9118_v51  ;;  %v9298_v30 = vpop.permute.xlu1 %3238 }
 0x4ed   : > { %v5522_v0 = vpop.f32.mrb[128].mxu1 }
 0x4ee   : > { %v5523_v48 = vpop.f32.mrb[129].mxu1 }
 0x4ef   : > { %v5524_v24 = vadd.f32 %v5523_v48, %v5522_v0  ;;  %v5525_v58 = vpop.f32.mrb[130].mxu1 }
 0x4f0   : > { %v5526_v10 = vpop.f32.mrb[131].mxu1 }
 0x4f1   : > { %v3456_v27 = vadd.f32 %v5524_v24, %v9223_v14  ;;  %v5527_v50 = vadd.f32 %v5526_v10, %v5525_v58 }
 0x4f2   : > { %3751 = vmatmul.mubr.bf16.gmra.mrb[236].mxu1 %v9126_v1 }
 0x4f3   : > { %v3459_v17 = vadd.f32 %v5527_v50, %v9225_v45  ;;  %3758 = vmatprep.mubr.bf16.mxu1 %v9135_v42  ;;  %6849 = vtanh.f32 %v3456_v27  ;;  %v6535_v42 = vld [vmem:[%s10033_s2 + $0x204] ss:$8 sps:$4 sm:$0xff]   ;;  %v9304_v50 = vpop.permute.xlu0 %3153 }
 0x4f4   : > { %4466 = vmatprep.mubr.bf16.mxu0 %v6535_v42 }
 0x4f5   : > { %6851 = vtanh.f32 %v3459_v17  ;;  %v5528_v34 = vpop.f32.mrb[132].mxu1 }
 0x4f6   : > { %v5529_v18 = vpop.f32.mrb[133].mxu1 }
 0x4f7   : > { %v5530_v61 = vadd.f32 %v5529_v18, %v5528_v34  ;;  %v5531_v51 = vpop.f32.mrb[134].mxu1  ;;  %v9309_v18 = vpop.permute.xlu1 %3158 }
 0x4f8   : > { %v5532_v8 = vpop.f32.mrb[135].mxu1 }
 0x4f9   : > { %v3464_v39 = vadd.f32 %v5530_v61, %v9233_v59  ;;  %v5533_v20 = vadd.f32 %v5532_v8, %v5531_v51 }
 0x4fa   : > { %3759 = vmatmul.mubr.bf16.gmra.mrb[240].mxu1 %v9143_v25 }
 0x4fb   : > { %v3467_v1 = vadd.f32 %v5533_v20, %v9235_v11  ;;  %3766 = vmatprep.mubr.bf16.mxu1 %v9152_v16  ;;  %6853 = vtanh.f32 %v3464_v39  ;;  %v9315_v39 = vpop.permute.xlu0 %3243 }
 0x4fd   : > { %6855 = vtanh.f32 %v3467_v1  ;;  %v5534_v19 = vpop.f32.mrb[136].mxu1  ;;  %v9268_v13 = vpop.eup %6849 }
 0x4fe   : > { %v5535_v60 = vpop.f32.mrb[137].mxu1 }
 0x4ff   : > { %v9272_v56 = vpop.eup %6851  ;;  %v5536_v25 = vadd.f32 %v5535_v60, %v5534_v19  ;;  %v5537_v21 = vpop.f32.mrb[138].mxu1 }
 0x500   : > { %v5538_v16 = vpop.f32.mrb[139].mxu1 }
 0x501   : > { %v3472_v40 = vadd.f32 %v5536_v25, %v9245_v29  ;;  %v5539_v31 = vadd.f32 %v5538_v16, %v5537_v21  ;;  %v9319_v25 = vpop.permute.xlu1 %3248 }
 0x502   : > { %3767 = vmatmul.mubr.bf16.gmra.mrb[244].mxu1 %v9160_v41 }
 0x503   : > { %v3475_v52 = vadd.f32 %v5539_v31, %v9247_v33  ;;  %3774 = vmatprep.mubr.bf16.mxu1 %v9169_v54  ;;  %6857 = vtanh.f32 %v3472_v40  ;;  %v9325_v31 = vpop.permute.xlu0 %3163 }
 0x505   : > { %6859 = vtanh.f32 %v3475_v52  ;;  %v5540_v46 = vpop.f32.mrb[140].mxu1  ;;  %v9284_v26 = vpop.eup %6853 }
 0x506   : > { %v5541_v23 = vpop.f32.mrb[141].mxu1 }
 0x507   : > { %v9288_v9 = vpop.eup %6855  ;;  %v5542_v22 = vadd.f32 %v5541_v23, %v5540_v46  ;;  %v5543_v6 = vpop.f32.mrb[142].mxu1 }
 0x508   : > { %v5544_v53 = vpop.f32.mrb[143].mxu1  ;;  %v9329_v23 = vpop.permute.xlu1 %3168 }
 0x509   : > { %v3480_v54 = vadd.f32 %v5542_v22, %v9257_v44  ;;  %v5545_v47 = vadd.f32 %v5544_v53, %v5543_v6 }
 0x50a   : > { %3775 = vmatmul.mubr.bf16.gmra.mrb[248].mxu1 %v9177_v3 }
 0x50b   : > { %v3483_v38 = vadd.f32 %v5545_v47, %v9260_v36  ;;  %3782 = vmatprep.mubr.bf16.mxu1 %v9186_v55  ;;  %6861 = vtanh.f32 %v3480_v54 }
 0x50d   : > { %6863 = vtanh.f32 %v3483_v38  ;;  %v5546_v0 = vpop.f32.mrb[144].mxu1  ;;  %v9300_v48 = vpop.eup %6857 }
 0x50e   : > { %v5547_v24 = vpop.f32.mrb[145].mxu1 }
 0x50f   : > { %v9302_v58 = vpop.eup %6859  ;;  %v5548_v10 = vadd.f32 %v5547_v24, %v5546_v0  ;;  %v5549_v27 = vpop.f32.mrb[146].mxu1 }
 0x510   : > { %v5550_v17 = vpop.f32.mrb[147].mxu1 }
 0x511   : > { %v3488_v55 = vadd.f32 %v5548_v10, %v9282_v12  ;;  %v5551_v34 = vadd.f32 %v5550_v17, %v5549_v27  ;;  %v9336_v10 = vpop.permute.xlu0 %3253  ;;  %v9339_v17 = vpop.permute.xlu1 %3258 }
 0x512   : > { %3783 = vmatmul.mubr.bf16.gmra.mrb[252].mxu1 %v9193_v32 }
 0x513   : > { %v3491_v61 = vadd.f32 %v5551_v34, %v9286_v15  ;;  %4257 = vmatprep.mubr.bf16.mxu1 %v6535_v42  ;;  %6865 = vtanh.f32 %v3488_v55 }
 0x515   : > { %6867 = vtanh.f32 %v3491_v61  ;;  %v5552_v51 = vpop.f32.mrb[148].mxu1  ;;  %v9313_v8 = vpop.eup %6861 }
 0x516   : > { %v5553_v20 = vpop.f32.mrb[149].mxu1 }
 0x517   : > { %v9317_v1 = vpop.eup %6863  ;;  %v5554_v19 = vadd.f32 %v5553_v20, %v5552_v51  ;;  %v5555_v60 = vpop.f32.mrb[150].mxu1 }
 0x518   : > { %v5556_v21 = vpop.f32.mrb[151].mxu1 }
 0x519   : > { %v3496_v42 = vadd.f32 %v5554_v19, %v9304_v50  ;;  %v5557_v16 = vadd.f32 %v5556_v21, %v5555_v60  ;;  %v9345_v60 = vpop.permute.xlu0 %3173 }
 0x51b   : > { %v3499_v40 = vadd.f32 %v5557_v16, %v9309_v18  ;;  %6869 = vtanh.f32 %v3496_v42 }
 0x51d   : > { %6871 = vtanh.f32 %v3499_v40  ;;  %v5558_v52 = vpop.f32.mrb[152].mxu1  ;;  %v9327_v46 = vpop.eup %6865 }
 0x51e   : > { %v5559_v22 = vpop.f32.mrb[153].mxu1 }
 0x51f   : > { %v9331_v6 = vpop.eup %6867  ;;  %v5560_v53 = vadd.f32 %v5559_v22, %v5558_v52  ;;  %v5561_v54 = vpop.f32.mrb[154].mxu1 }
 0x520   : > { %v5562_v47 = vpop.f32.mrb[155].mxu1  ;;  %v9350_v52 = vpop.permute.xlu1 %3178 }
 0x521   : > { %v3504_v0 = vadd.f32 %v5560_v53, %v9325_v31  ;;  %v5563_v24 = vadd.f32 %v5562_v47, %v5561_v54 }
 0x523   : > { %v3507_v27 = vadd.f32 %v5563_v24, %v9329_v23  ;;  %6873 = vtanh.f32 %v3504_v0 }
 0x525   : > { %6875 = vtanh.f32 %v3507_v27  ;;  %v5564_v55 = vpop.f32.mrb[156].mxu1  ;;  %v9341_v34 = vpop.eup %6869 }
 0x526   : > { %v5565_v61 = vpop.f32.mrb[157].mxu1 }
 0x527   : > { %v9343_v51 = vpop.eup %6871  ;;  %v5566_v20 = vadd.f32 %v5565_v61, %v5564_v55  ;;  %v5567_v19 = vpop.f32.mrb[158].mxu1 }
 0x528   : > { %v5568_v21 = vpop.f32.mrb[159].mxu1 }
 0x529   : > { %v3512_v16 = vadd.f32 %v5566_v20, %v9345_v60  ;;  %v5569_v40 = vadd.f32 %v5568_v21, %v5567_v19 }
 0x52b   : > { %v3515_v22 = vadd.f32 %v5569_v40, %v9350_v52  ;;  %6877 = vtanh.f32 %v3512_v16 }
 0x52d   : > { %6879 = vtanh.f32 %v3515_v22  ;;  %v5570_v53 = vpop.f32.mrb[160].mxu1  ;;  %v9353_v54 = vpop.eup %6873 }
 0x52e   : > { %v5571_v47 = vpop.f32.mrb[161].mxu1 }
 0x52f   : > { %v9355_v0 = vpop.eup %6875  ;;  %v5572_v24 = vadd.f32 %v5571_v47, %v5570_v53  ;;  %v5573_v27 = vpop.f32.mrb[162].mxu1 }
 0x530   : > { %v5574_v55 = vpop.f32.mrb[163].mxu1 }
 0x531   : > { %v3520_v20 = vadd.f32 %v5572_v24, %v9217_v57  ;;  %v5575_v19 = vadd.f32 %v5574_v55, %v5573_v27 }
 0x533   : > { %v3523_v21 = vadd.f32 %v5575_v19, %v9219_v5  ;;  %6881 = vtanh.f32 %v3520_v20 }
 0x535   : > { %6883 = vtanh.f32 %v3523_v21  ;;  %v5576_v16 = vpop.f32.mrb[164].mxu1  ;;  %v9361_v40 = vpop.eup %6877 }
 0x536   : > { %v5577_v22 = vpop.f32.mrb[165].mxu1 }
 0x537   : > { %v9363_v42 = vpop.eup %6879  ;;  %v5578_v38 = vadd.f32 %v5577_v22, %v5576_v16  ;;  %v5579_v53 = vpop.f32.mrb[166].mxu1 }
 0x538   : > { %v5580_v47 = vpop.f32.mrb[167].mxu1 }
 0x539   : > { %v3528_v61 = vadd.f32 %v5578_v38, %v9227_v43  ;;  %v5581_v24 = vadd.f32 %v5580_v47, %v5579_v53  ;;  %v10098_v38 = vpack.c.bf16 %v9272_v56, %v9268_v13  ;;  %v10099_v13 = vpack.c.bf16 %v9288_v9, %v9284_v26 }
 0x53a   : > { %v10100_v26 = vpack.c.bf16 %v9302_v58, %v9300_v48  ;;  %v10101_v48 = vpack.c.bf16 %v9317_v1, %v9313_v8  ;;  %v10102_v8 = vpack.c.bf16 %v9331_v6, %v9327_v46  ;;  %v10103_v46 = vpack.c.bf16 %v9343_v51, %v9341_v34 }
 0x53b   : > { %v3531_v27 = vadd.f32 %v5581_v24, %v9231_v2  ;;  %6885 = vtanh.f32 %v3528_v61  ;;  %v10104_v34 = vpack.c.bf16 %v9355_v0, %v9353_v54  ;;  %v10105_v0 = vpack.c.bf16 %v9363_v42, %v9361_v40 }
 0x53d   : > { %6887 = vtanh.f32 %v3531_v27  ;;  %v5582_v55 = vpop.f32.mrb[168].mxu1  ;;  %v6882_v20 = vpop.eup %6881 }
 0x53e   : > { %v5583_v19 = vpop.f32.mrb[169].mxu1 }
 0x53f   : > { %v6884_v21 = vpop.eup %6883  ;;  %v5584_v3 = vadd.f32 %v5583_v19, %v5582_v55  ;;  %v5585_v41 = vpop.f32.mrb[170].mxu1 }
 0x540   : > { %v5586_v63 = vpop.f32.mrb[171].mxu1  ;;  %v3622_v16 = vpack.c.bf16 %v6884_v21, %v6882_v20 }
 0x541   : > { %v3536_v22 = vadd.f32 %v5584_v3, %v9239_v7  ;;  %v5587_v5 = vadd.f32 %v5586_v63, %v5585_v41 }
 0x542   : > { %5730 = vmatprep.subr.bf16.mxu1 %v3622_v16 }
 0x543   : > { %v3539_v32 = vadd.f32 %v5587_v5, %v9241_v4  ;;  %5731 = vmatpush3.bf16.msra.mxu1 %v10098_v38  ;;  %6889 = vtanh.f32 %v3536_v22 }
 0x545   : > { %6891 = vtanh.f32 %v3539_v32  ;;  %v5588_v61 = vpop.f32.mrb[172].mxu1  ;;  %v6886_v53 = vpop.eup %6885 }
 0x546   : > { %v5589_v47 = vpop.f32.mrb[173].mxu1 }
 0x547   : > { %v6888_v24 = vpop.eup %6887  ;;  %v5590_v27 = vadd.f32 %v5589_v47, %v5588_v61  ;;  %v5591_v55 = vpop.f32.mrb[174].mxu1 }
 0x548   : > { %v5592_v19 = vpop.f32.mrb[175].mxu1  ;;  %v3623_v20 = vpack.c.bf16 %v6888_v24, %v6886_v53 }
 0x549   : > { %v3544_v3 = vadd.f32 %v5590_v27, %v9250_v49  ;;  %v5593_v63 = vadd.f32 %v5592_v19, %v5591_v55 }
 0x54a   : > { %5732 = vmatprep.subr.bf16.mxu1 %v3623_v20 }
 0x54b   : > { %v3547_v5 = vadd.f32 %v5593_v63, %v9255_v28  ;;  %5733 = vmatpush3.bf16.msra.mxu1 %v10099_v13  ;;  %6893 = vtanh.f32 %v3544_v3 }
 0x54d   : > { %6895 = vtanh.f32 %v3547_v5  ;;  %v5594_v56 = vpop.f32.mrb[176].mxu1  ;;  %v6890_v41 = vpop.eup %6889 }
 0x54e   : > { %v5595_v32 = vpop.f32.mrb[177].mxu1 }
 0x54f   : > { %v6892_v21 = vpop.eup %6891  ;;  %v5596_v16 = vadd.f32 %v5595_v32, %v5594_v56  ;;  %v5597_v22 = vpop.f32.mrb[178].mxu1 }
 0x550   : > { %v5598_v38 = vpop.f32.mrb[179].mxu1  ;;  %v3624_v61 = vpack.c.bf16 %v6892_v21, %v6890_v41 }
 0x551   : > { %v3552_v53 = vadd.f32 %v5596_v16, %v9270_v35  ;;  %v5599_v47 = vadd.f32 %v5598_v38, %v5597_v22 }
 0x552   : > { %5734 = vmatprep.subr.bf16.mxu1 %v3624_v61 }
 0x553   : > { %v3555_v24 = vadd.f32 %v5599_v47, %v9274_v62  ;;  %5735 = vmatpush3.bf16.msra.mxu1 %v10100_v26  ;;  %6897 = vtanh.f32 %v3552_v53 }
 0x555   : > { %6899 = vtanh.f32 %v3555_v24  ;;  %v5600_v9 = vpop.f32.mrb[180].mxu1  ;;  %v6894_v27 = vpop.eup %6893 }
 0x556   : > { %v5601_v55 = vpop.f32.mrb[181].mxu1 }
 0x557   : > { %v6896_v19 = vpop.eup %6895  ;;  %v5602_v20 = vadd.f32 %v5601_v55, %v5600_v9  ;;  %v5603_v3 = vpop.f32.mrb[182].mxu1 }
 0x558   : > { %v5604_v63 = vpop.f32.mrb[183].mxu1  ;;  %v3625_v5 = vpack.c.bf16 %v6896_v19, %v6894_v27 }
 0x559   : > { %v3560_v13 = vadd.f32 %v5602_v20, %v9293_v37  ;;  %v5605_v56 = vadd.f32 %v5604_v63, %v5603_v3 }
 0x55a   : > { %5736 = vmatprep.subr.bf16.mxu1 %v3625_v5 }
 0x55b   : > { %v3563_v41 = vadd.f32 %v5605_v56, %v9298_v30  ;;  %5737 = vmatpush3.bf16.msra.mxu1 %v10101_v48  ;;  %6901 = vtanh.f32 %v3560_v13 }
 0x55d   : > { %6903 = vtanh.f32 %v3563_v41  ;;  %v5606_v58 = vpop.f32.mrb[184].mxu1  ;;  %v6898_v32 = vpop.eup %6897 }
 0x55e   : > { %v5607_v21 = vpop.f32.mrb[185].mxu1 }
 0x55f   : > { %v6900_v16 = vpop.eup %6899  ;;  %v5608_v22 = vadd.f32 %v5607_v21, %v5606_v58  ;;  %v5609_v38 = vpop.f32.mrb[186].mxu1 }
 0x560   : > { %v5610_v61 = vpop.f32.mrb[187].mxu1  ;;  %v3626_v53 = vpack.c.bf16 %v6900_v16, %v6898_v32 }
 0x561   : > { %v3568_v47 = vadd.f32 %v5608_v22, %v9315_v39  ;;  %v5611_v24 = vadd.f32 %v5610_v61, %v5609_v38 }
 0x562   : > { %5738 = vmatprep.subr.bf16.mxu1 %v3626_v53 }
 0x563   : > { %v3571_v26 = vadd.f32 %v5611_v24, %v9319_v25  ;;  %5739 = vmatpush3.bf16.msra.mxu1 %v10102_v8  ;;  %6905 = vtanh.f32 %v3568_v47 }
 0x565   : > { %6907 = vtanh.f32 %v3571_v26  ;;  %v5612_v1 = vpop.f32.mrb[188].mxu1  ;;  %v6902_v9 = vpop.eup %6901 }
 0x566   : > { %v5613_v27 = vpop.f32.mrb[189].mxu1 }
 0x567   : > { %v6904_v55 = vpop.eup %6903  ;;  %v5614_v19 = vadd.f32 %v5613_v27, %v5612_v1  ;;  %v5615_v20 = vpop.f32.mrb[190].mxu1 }
 0x568   : > { %v5616_v3 = vpop.f32.mrb[191].mxu1  ;;  %v3627_v63 = vpack.c.bf16 %v6904_v55, %v6902_v9 }
 0x569   : > { %v3576_v5 = vadd.f32 %v5614_v19, %v9336_v10  ;;  %v5617_v13 = vadd.f32 %v5616_v3, %v5615_v20  ;;  %v9417_v19 = vld [vmem:[%s10033_s2 + $0x214] ss:$8 sps:$4 sm:$0xff]  }
 0x56a   : > { %5740 = vmatprep.subr.bf16.mxu1 %v3627_v63 }
 0x56b   : > { %v3579_v56 = vadd.f32 %v5617_v13, %v9339_v17  ;;  %5741 = vmatpush3.bf16.msra.mxu1 %v10103_v46  ;;  %6909 = vtanh.f32 %v3576_v5  ;;  %v9431_v46 = vld [vmem:[%s10033_s2 + $0x210] ss:$8 sps:$4 sm:$0xff]  }
 0x56d   : > { %6911 = vtanh.f32 %v3579_v56  ;;  %v5634_v6 = vpop.f32.mrb[192].mxu1  ;;  %v6906_v41 = vpop.eup %6905 }
 0x56e   : > { %v5635_v48 = vpop.f32.mrb[193].mxu1 }
 0x56f   : > { %v6908_v58 = vpop.eup %6907  ;;  %v5636_v32 = vadd.f32 %v5635_v48, %v5634_v6  ;;  %v5637_v21 = vpop.f32.mrb[194].mxu1 }
 0x570   : > { %v5638_v16 = vpop.f32.mrb[195].mxu1  ;;  %v3628_v22 = vpack.c.bf16 %v6908_v58, %v6906_v41  ;;  %v9437_v41 = vld [vmem:[%s10033_s2 + $0x224] ss:$8 sps:$4 sm:$0xff]  }
 0x571   : > { %v3665_v38 = vadd.f32 %v5636_v32, %v9223_v14  ;;  %v5639_v61 = vadd.f32 %v5638_v16, %v5637_v21 }
 0x572   : > { %5742 = vmatprep.subr.bf16.mxu1 %v3628_v22 }
 0x573   : > { %v3668_v53 = vadd.f32 %v5639_v61, %v9225_v45  ;;  %5743 = vmatpush3.bf16.msra.mxu1 %v10104_v34  ;;  %6913 = vtanh.f32 %v3665_v38  ;;  %v9408_v45 = vld [vmem:[%s10033_s2 + $0x200] ss:$8 sps:$4 sm:$0xff]  }
 0x575   : > { %6915 = vtanh.f32 %v3668_v53  ;;  %v5640_v51 = vpop.f32.mrb[196].mxu1  ;;  %v6910_v47 = vpop.eup %6909  ;;  %v9451_v53 = vld [vmem:[%s10033_s2 + $0x220] ss:$8 sps:$4 sm:$0xff]  }
 0x576   : > { %v5641_v24 = vpop.f32.mrb[197].mxu1 }
 0x577   : > { %v6912_v26 = vpop.eup %6911  ;;  %v5642_v8 = vadd.f32 %v5641_v24, %v5640_v51  ;;  %v5643_v1 = vpop.f32.mrb[198].mxu1  ;;  %v9457_v51 = vld [vmem:[%s10033_s2 + $0x234] ss:$8 sps:$4 sm:$0xff]  }
 0x578   : > { %v5644_v9 = vpop.f32.mrb[199].mxu1  ;;  %v3629_v27 = vpack.c.bf16 %v6912_v26, %v6910_v47 }
 0x579   : > { %v3673_v14 = vadd.f32 %v5642_v8, %v9233_v59  ;;  %v5645_v55 = vadd.f32 %v5644_v9, %v5643_v1 }
 0x57a   : > { %5744 = vmatprep.subr.bf16.mxu1 %v3629_v27 }
 0x57b   : > { %v3676_v54 = vadd.f32 %v5645_v55, %v9235_v11  ;;  %5745 = vmatpush3.bf16.msra.mxu1 %v10105_v0  ;;  %6917 = vtanh.f32 %v3673_v14  ;;  %v9471_v55 = vld [vmem:[%s10033_s2 + $0x230] ss:$8 sps:$4 sm:$0xff]   ;;  %v9477_v0 = vld [vmem:[%s10033_s2 + $0x244] ss:$8 sps:$4 sm:$0xff]  }
 0x57d   : > { %6919 = vtanh.f32 %v3676_v54  ;;  %v5646_v59 = vpop.f32.mrb[200].mxu1  ;;  %v9419_v20 = vpop.eup %6913 }
 0x57e   : > { %v5647_v3 = vpop.f32.mrb[201].mxu1  ;;  %4258 = vmatmul.mubr.bf16.vlgmr.msra.gmra.mrb[0].mxu1 %v9408_v45 }
 0x57f   : > { %v9422_v63 = vpop.eup %6915  ;;  %v5648_v11 = vadd.f32 %v5647_v3, %v5646_v59  ;;  %v5649_v5 = vpop.f32.mrb[202].mxu1  ;;  %4265 = vmatprep.mubr.bf16.mxu1 %v9417_v19 }
 0x580   : > { %v5650_v42 = vpop.f32.mrb[203].mxu1  ;;  %v3823_v40 = vpack.c.bf16 %v9422_v63, %v9419_v20 }
 0x581   : > { %v3681_v13 = vadd.f32 %v5648_v11, %v9245_v29  ;;  %v5651_v56 = vadd.f32 %v5650_v42, %v5649_v5 }
 0x583   : > { %v3684_v6 = vadd.f32 %v5651_v56, %v9247_v33  ;;  %6921 = vtanh.f32 %v3681_v13 }
 0x585   : > { %6923 = vtanh.f32 %v3684_v6  ;;  %v5652_v48 = vpop.f32.mrb[204].mxu1  ;;  %v9439_v58 = vpop.eup %6917 }
 0x586   : > { %v5653_v32 = vpop.f32.mrb[205].mxu1  ;;  %4266 = vmatmul.mubr.bf16.gmra.mrb[4].mxu1 %v9431_v46 }
 0x587   : > { %v9442_v29 = vpop.eup %6919  ;;  %v5654_v21 = vadd.f32 %v5653_v32, %v5652_v48  ;;  %v5655_v16 = vpop.f32.mrb[206].mxu1  ;;  %4273 = vmatprep.mubr.bf16.mxu1 %v9437_v41  ;;  %v9491_v48 = vld [vmem:[%s10033_s2 + $0x240] ss:$8 sps:$4 sm:$0xff]  }
 0x588   : > { %v5656_v33 = vpop.f32.mrb[207].mxu1  ;;  %v3824_v22 = vpack.c.bf16 %v9442_v29, %v9439_v58 }
 0x589   : > { %v3689_v38 = vadd.f32 %v5654_v21, %v9257_v44  ;;  %v5657_v61 = vadd.f32 %v5656_v33, %v5655_v16  ;;  %v9497_v21 = vld [vmem:[%s10033_s2 + $0x254] ss:$8 sps:$4 sm:$0xff]  }
 0x58b   : > { %v3692_v34 = vadd.f32 %v5657_v61, %v9260_v36  ;;  %6925 = vtanh.f32 %v3689_v38 }
 0x58d   : > { %6927 = vtanh.f32 %v3692_v34  ;;  %v5658_v47 = vpop.f32.mrb[208].mxu1  ;;  %v9459_v24 = vpop.eup %6921 }
 0x58e   : > { %v5659_v26 = vpop.f32.mrb[209].mxu1  ;;  %4274 = vmatmul.mubr.bf16.gmra.mrb[8].mxu1 %v9451_v53 }
 0x58f   : > { %v9462_v44 = vpop.eup %6923  ;;  %v5660_v8 = vadd.f32 %v5659_v26, %v5658_v47  ;;  %v5661_v1 = vpop.f32.mrb[210].mxu1  ;;  %4281 = vmatprep.mubr.bf16.mxu1 %v9457_v51 }
 0x590   : > { %v5662_v36 = vpop.f32.mrb[211].mxu1  ;;  %v3825_v9 = vpack.c.bf16 %v9462_v44, %v9459_v24 }
 0x591   : > { %v3697_v27 = vadd.f32 %v5660_v8, %v9282_v12  ;;  %v5663_v14 = vadd.f32 %v5662_v36, %v5661_v1  ;;  %v9511_v1 = vld [vmem:[%s10033_s2 + $0x250] ss:$8 sps:$4 sm:$0xff]  }
 0x593   : > { %v3700_v54 = vadd.f32 %v5663_v14, %v9286_v15  ;;  %6929 = vtanh.f32 %v3697_v27  ;;  %v9517_v27 = vld [vmem:[%s10033_s2 + $0x264] ss:$8 sps:$4 sm:$0xff]  }
 0x595   : > { %6931 = vtanh.f32 %v3700_v54  ;;  %v5664_v59 = vpop.f32.mrb[212].mxu1  ;;  %v9479_v3 = vpop.eup %6925 }
 0x596   : > { %v5665_v11 = vpop.f32.mrb[213].mxu1  ;;  %4282 = vmatmul.mubr.bf16.gmra.mrb[12].mxu1 %v9471_v55 }
 0x597   : > { %v9482_v12 = vpop.eup %6927  ;;  %v5666_v5 = vadd.f32 %v5665_v11, %v5664_v59  ;;  %v5667_v42 = vpop.f32.mrb[214].mxu1  ;;  %4289 = vmatprep.mubr.bf16.mxu1 %v9477_v0 }
 0x598   : > { %v5668_v15 = vpop.f32.mrb[215].mxu1  ;;  %v3826_v13 = vpack.c.bf16 %v9482_v12, %v9479_v3 }
 0x599   : > { %v3705_v56 = vadd.f32 %v5666_v5, %v9304_v50  ;;  %v5669_v6 = vadd.f32 %v5668_v15, %v5667_v42 }
 0x59b   : > { %v3708_v32 = vadd.f32 %v5669_v6, %v9309_v18  ;;  %6933 = vtanh.f32 %v3705_v56  ;;  %v9531_v6 = vld [vmem:[%s10033_s2 + $0x260] ss:$8 sps:$4 sm:$0xff]  }
 0x59d   : > { %6935 = vtanh.f32 %v3708_v32  ;;  %v5670_v16 = vpop.f32.mrb[216].mxu1  ;;  %v9499_v33 = vpop.eup %6929 }
 0x59e   : > { %v5671_v38 = vpop.f32.mrb[217].mxu1  ;;  %4290 = vmatmul.mubr.bf16.gmra.mrb[16].mxu1 %v9491_v48 }
 0x59f   : > { %v9502_v50 = vpop.eup %6931  ;;  %v5672_v61 = vadd.f32 %v5671_v38, %v5670_v16  ;;  %v5673_v34 = vpop.f32.mrb[218].mxu1  ;;  %4297 = vmatprep.mubr.bf16.mxu1 %v9497_v21  ;;  %v9537_v16 = vld [vmem:[%s10033_s2 + $0x274] ss:$8 sps:$4 sm:$0xff]  }
 0x5a0   : > { %v5674_v18 = vpop.f32.mrb[219].mxu1  ;;  %v3827_v47 = vpack.c.bf16 %v9502_v50, %v9499_v33 }
 0x5a1   : > { %v3713_v26 = vadd.f32 %v5672_v61, %v9325_v31  ;;  %v5675_v8 = vadd.f32 %v5674_v18, %v5673_v34 }
 0x5a3   : > { %v3716_v36 = vadd.f32 %v5675_v8, %v9329_v23  ;;  %6937 = vtanh.f32 %v3713_v26 }
 0x5a5   : > { %6939 = vtanh.f32 %v3716_v36  ;;  %v5676_v14 = vpop.f32.mrb[220].mxu1  ;;  %v9519_v54 = vpop.eup %6933 }
 0x5a6   : > { %v5677_v59 = vpop.f32.mrb[221].mxu1  ;;  %4298 = vmatmul.mubr.bf16.gmra.mrb[20].mxu1 %v9511_v1 }
 0x5a7   : > { %v9522_v31 = vpop.eup %6935  ;;  %v5678_v11 = vadd.f32 %v5677_v59, %v5676_v14  ;;  %v5679_v5 = vpop.f32.mrb[222].mxu1  ;;  %4305 = vmatprep.mubr.bf16.mxu1 %v9517_v27  ;;  %v9551_v59 = vld [vmem:[%s10033_s2 + $0x270] ss:$8 sps:$4 sm:$0xff]  }
 0x5a8   : > { %v5680_v23 = vpop.f32.mrb[223].mxu1  ;;  %v3828_v42 = vpack.c.bf16 %v9522_v31, %v9519_v54 }
 0x5a9   : > { %v3721_v15 = vadd.f32 %v5678_v11, %v9345_v60  ;;  %v5681_v56 = vadd.f32 %v5680_v23, %v5679_v5  ;;  %v10106_v11 = vld [vmem:[#allocation3_spill] sm:$0xff] }
 0x5aa   : > { %v9557_v23 = vld [vmem:[%s10033_s2 + $0x284] ss:$8 sps:$4 sm:$0xff]  }
 0x5ab   : > { %v3724_v32 = vadd.f32 %v5681_v56, %v9350_v52  ;;  %6941 = vtanh.f32 %v3721_v15 }
 0x5ad   : > { %6943 = vtanh.f32 %v3724_v32  ;;  %v5682_v38 = vpop.f32.mrb[224].mxu1  ;;  %v9539_v61 = vpop.eup %6937 }
 0x5ae   : > { %v5683_v34 = vpop.f32.mrb[225].mxu1  ;;  %4306 = vmatmul.mubr.bf16.gmra.mrb[24].mxu1 %v9531_v6 }
 0x5af   : > { %v9542_v60 = vpop.eup %6939  ;;  %v5684_v18 = vadd.f32 %v5683_v34, %v5682_v38  ;;  %v5685_v26 = vpop.f32.mrb[226].mxu1  ;;  %4313 = vmatprep.mubr.bf16.mxu1 %v9537_v16 }
 0x5b0   : > { %v5686_v52 = vpop.f32.mrb[227].mxu1  ;;  %v10107_v54 = vpack.c.bf16 %v9542_v60, %v9539_v61 }
 0x5b1   : > { %v3729_v36 = vadd.f32 %v5684_v18, %v9217_v57  ;;  %v5687_v14 = vadd.f32 %v5686_v52, %v5685_v26 }
 0x5b3   : > { %v3732_v5 = vadd.f32 %v5687_v14, %v10106_v11  ;;  %6945 = vtanh.f32 %v3729_v36  ;;  %v9571_v14 = vld [vmem:[%s10033_s2 + $0x280] ss:$8 sps:$4 sm:$0xff]  }
 0x5b5   : > { %6947 = vtanh.f32 %v3732_v5  ;;  %v5688_v15 = vpop.f32.mrb[228].mxu1  ;;  %v9559_v56 = vpop.eup %6941  ;;  %v9577_v5 = vld [vmem:[%s10033_s2 + $0x294] ss:$8 sps:$4 sm:$0xff]  }
 0x5b6   : > { %v5689_v32 = vpop.f32.mrb[229].mxu1  ;;  %4314 = vmatmul.mubr.bf16.gmra.mrb[28].mxu1 %v9551_v59 }
 0x5b7   : > { %v9562_v57 = vpop.eup %6943  ;;  %v5690_v38 = vadd.f32 %v5689_v32, %v5688_v15  ;;  %v5691_v34 = vpop.f32.mrb[230].mxu1  ;;  %4321 = vmatprep.mubr.bf16.mxu1 %v9557_v23 }
 0x5b8   : > { %v5692_v18 = vpop.f32.mrb[231].mxu1 }
 0x5b9   : > { %v3737_v52 = vadd.f32 %v5690_v38, %v9227_v43  ;;  %v5693_v36 = vadd.f32 %v5692_v18, %v5691_v34 }
 0x5bb   : > { %v3740_v11 = vadd.f32 %v5693_v36, %v9231_v2  ;;  %6949 = vtanh.f32 %v3737_v52  ;;  %v9585_v52 = vld [vmem:[%s10033_s2 + $0x290] ss:$8 sps:$4 sm:$0xff]  }
 0x5bd   : > { %6951 = vtanh.f32 %v3740_v11  ;;  %v5694_v15 = vpop.f32.mrb[232].mxu1  ;;  %v6946_v32 = vpop.eup %6945 }
 0x5be   : > { %v5695_v26 = vpop.f32.mrb[233].mxu1  ;;  %4322 = vmatmul.mubr.bf16.gmra.mrb[32].mxu1 %v9571_v14 }
 0x5bf   : > { %v6948_v43 = vpop.eup %6947  ;;  %v5696_v38 = vadd.f32 %v5695_v26, %v5694_v15  ;;  %v5697_v34 = vpop.f32.mrb[234].mxu1  ;;  %4329 = vmatprep.mubr.bf16.mxu1 %v9577_v5  ;;  %v9594_v26 = vld [vmem:[%s10033_s2 + $0x2a4] ss:$8 sps:$4 sm:$0xff]  }
 0x5c0   : > { %v5698_v18 = vpop.f32.mrb[235].mxu1  ;;  %v3831_v8 = vpack.c.bf16 %v6948_v43, %v6946_v32 }
 0x5c1   : > { %v3745_v2 = vadd.f32 %v5696_v38, %v9239_v7  ;;  %v5699_v36 = vadd.f32 %v5698_v18, %v5697_v34  ;;  %v9602_v34 = vld [vmem:[%s10033_s2 + $0x2a0] ss:$8 sps:$4 sm:$0xff]  }
 0x5c2   : > { %5842 = vmatprep.subr.bf16.mxu0 %v3831_v8 }
 0x5c3   : > { %v3748_v11 = vadd.f32 %v5699_v36, %v9241_v4  ;;  %5843 = vmatpush3.bf16.msra.mxu0 %v3823_v40  ;;  %6953 = vtanh.f32 %v3745_v2  ;;  %v9611_v2 = vld [vmem:[%s10033_s2 + $0x2b4] ss:$8 sps:$4 sm:$0xff]  }
 0x5c5   : > { %6955 = vtanh.f32 %v3748_v11  ;;  %v5700_v7 = vpop.f32.mrb[236].mxu1  ;;  %v6950_v8 = vpop.eup %6949 }
 0x5c6   : > { %v5701_v15 = vpop.f32.mrb[237].mxu1  ;;  %4330 = vmatmul.mubr.bf16.gmra.mrb[36].mxu1 %v9585_v52 }
 0x5c7   : > { %v6952_v32 = vpop.eup %6951  ;;  %v5702_v43 = vadd.f32 %v5701_v15, %v5700_v7  ;;  %v5703_v38 = vpop.f32.mrb[238].mxu1  ;;  %4337 = vmatprep.mubr.bf16.mxu1 %v9594_v26 }
 0x5c8   : > { %v5704_v4 = vpop.f32.mrb[239].mxu1  ;;  %v3832_v20 = vpack.c.bf16 %v6952_v32, %v6950_v8  ;;  %v9619_v32 = vld [vmem:[%s10033_s2 + $0x2b0] ss:$8 sps:$4 sm:$0xff]  }
 0x5c9   : > { %v3753_v63 = vadd.f32 %v5702_v43, %v9250_v49  ;;  %v5705_v40 = vadd.f32 %v5704_v4, %v5703_v38  ;;  %v9628_v38 = vld [vmem:[%s10033_s2 + $0x2c4] ss:$8 sps:$4 sm:$0xff]  }
 0x5ca   : > { %5844 = vmatprep.subr.bf16.mxu0 %v3832_v20 }
 0x5cb   : > { %v3756_v18 = vadd.f32 %v5705_v40, %v9255_v28  ;;  %5845 = vmatpush3.bf16.msra.mxu0 %v3824_v22  ;;  %6957 = vtanh.f32 %v3753_v63 }
 0x5cd   : > { %6959 = vtanh.f32 %v3756_v18  ;;  %v5706_v49 = vpop.f32.mrb[240].mxu1  ;;  %v6954_v36 = vpop.eup %6953 }
 0x5ce   : > { %v5707_v11 = vpop.f32.mrb[241].mxu1  ;;  %4338 = vmatmul.mubr.bf16.gmra.mrb[40].mxu1 %v9602_v34 }
 0x5cf   : > { %v6956_v7 = vpop.eup %6955  ;;  %v5708_v8 = vadd.f32 %v5707_v11, %v5706_v49  ;;  %v5709_v15 = vpop.f32.mrb[242].mxu1  ;;  %4345 = vmatprep.mubr.bf16.mxu1 %v9611_v2  ;;  %v9636_v49 = vld [vmem:[%s10033_s2 + $0x2c0] ss:$8 sps:$4 sm:$0xff]   ;;  %v9645_v11 = vld [vmem:[%s10033_s2 + $0x2d4] ss:$8 sps:$4 sm:$0xff]  }
 0x5d0   : > { %v5710_v28 = vpop.f32.mrb[243].mxu1  ;;  %v3833_v58 = vpack.c.bf16 %v6956_v7, %v6954_v36 }
 0x5d1   : > { %v3761_v29 = vadd.f32 %v5708_v8, %v9270_v35  ;;  %v5711_v22 = vadd.f32 %v5710_v28, %v5709_v15 }
 0x5d2   : > { %5846 = vmatprep.subr.bf16.mxu0 %v3833_v58 }
 0x5d3   : > { %v3764_v43 = vadd.f32 %v5711_v22, %v9274_v62  ;;  %5847 = vmatpush3.bf16.msra.mxu0 %v3825_v9  ;;  %6961 = vtanh.f32 %v3761_v29  ;;  %v9653_v29 = vld [vmem:[%s10033_s2 + $0x2d0] ss:$8 sps:$4 sm:$0xff]  }
 0x5d5   : > { %6963 = vtanh.f32 %v3764_v43  ;;  %v5712_v35 = vpop.f32.mrb[244].mxu1  ;;  %v6958_v4 = vpop.eup %6957  ;;  %v9662_v43 = vld [vmem:[%s10033_s2 + $0x2e4] ss:$8 sps:$4 sm:$0xff]  }
 0x5d6   : > { %v5713_v20 = vpop.f32.mrb[245].mxu1  ;;  %4346 = vmatmul.mubr.bf16.gmra.mrb[44].mxu1 %v9619_v32 }
 0x5d7   : > { %v6960_v63 = vpop.eup %6959  ;;  %v5714_v40 = vadd.f32 %v5713_v20, %v5712_v35  ;;  %v5715_v18 = vpop.f32.mrb[246].mxu1  ;;  %4353 = vmatprep.mubr.bf16.mxu1 %v9628_v38 }
 0x5d8   : > { %v5716_v62 = vpop.f32.mrb[247].mxu1  ;;  %v3834_v24 = vpack.c.bf16 %v6960_v63, %v6958_v4 }
 0x5d9   : > { %v3769_v44 = vadd.f32 %v5714_v40, %v9293_v37  ;;  %v5717_v9 = vadd.f32 %v5716_v62, %v5715_v18  ;;  %v9670_v18 = vld [vmem:[%s10033_s2 + $0x2e0] ss:$8 sps:$4 sm:$0xff]  }
 0x5da   : > { %5848 = vmatprep.subr.bf16.mxu0 %v3834_v24  ;;  %v9679_v24 = vld [vmem:[%s10033_s2 + $0x2f4] ss:$8 sps:$4 sm:$0xff]  }
 0x5db   : > { %v3772_v36 = vadd.f32 %v5717_v9, %v9298_v30  ;;  %5849 = vmatpush3.bf16.msra.mxu0 %v3826_v13  ;;  %6965 = vtanh.f32 %v3769_v44 }
 0x5dd   : > { %6967 = vtanh.f32 %v3772_v36  ;;  %v5718_v37 = vpop.f32.mrb[248].mxu1  ;;  %v6962_v7 = vpop.eup %6961 }
 0x5de   : > { %v5719_v8 = vpop.f32.mrb[249].mxu1  ;;  %4354 = vmatmul.mubr.bf16.gmra.mrb[48].mxu1 %v9636_v49 }
 0x5df   : > { %v6964_v15 = vpop.eup %6963  ;;  %v5720_v28 = vadd.f32 %v5719_v8, %v5718_v37  ;;  %v5721_v58 = vpop.f32.mrb[250].mxu1  ;;  %4361 = vmatprep.mubr.bf16.mxu1 %v9645_v11  ;;  %v10108_v37 = vpack.c.bf16 %v9562_v57, %v9559_v56 }
 0x5e0   : > { %v5722_v30 = vpop.f32.mrb[251].mxu1  ;;  %v3835_v3 = vpack.c.bf16 %v6964_v15, %v6962_v7 }
 0x5e1   : > { %v3777_v12 = vadd.f32 %v5720_v28, %v9315_v39  ;;  %v5723_v13 = vadd.f32 %v5722_v30, %v5721_v58 }
 0x5e2   : > { %5850 = vmatprep.subr.bf16.mxu0 %v3835_v3 }
 0x5e3   : > { %v3780_v22 = vadd.f32 %v5723_v13, %v9319_v25  ;;  %5851 = vmatpush3.bf16.msra.mxu0 %v3827_v47  ;;  %6969 = vtanh.f32 %v3777_v12 }
 0x5e5   : > { %6971 = vtanh.f32 %v3780_v22  ;;  %v5724_v39 = vpop.f32.mrb[252].mxu1  ;;  %v6966_v35 = vpop.eup %6965 }
 0x5e6   : > { %v5725_v4 = vpop.f32.mrb[253].mxu1  ;;  %4362 = vmatmul.mubr.bf16.gmra.mrb[52].mxu1 %v9653_v29 }
 0x5e7   : > { %v6968_v20 = vpop.eup %6967  ;;  %v5726_v63 = vadd.f32 %v5725_v4, %v5724_v39  ;;  %v5727_v40 = vpop.f32.mrb[254].mxu1  ;;  %4369 = vmatprep.mubr.bf16.mxu1 %v9662_v43 }
 0x5e8   : > { %v5728_v25 = vpop.f32.mrb[255].mxu1  ;;  %v3836_v33 = vpack.c.bf16 %v6968_v20, %v6966_v35 }
 0x5e9   : > { %v3785_v50 = vadd.f32 %v5726_v63, %v9336_v10  ;;  %v5729_v47 = vadd.f32 %v5728_v25, %v5727_v40 }
 0x5ea   : > { %5852 = vmatprep.subr.bf16.mxu0 %v3836_v33 }
 0x5eb   : > { %v3788_v62 = vadd.f32 %v5729_v47, %v9339_v17  ;;  %5853 = vmatpush3.bf16.msra.mxu0 %v3828_v42  ;;  %6973 = vtanh.f32 %v3785_v50  ;;  %v9686_v17 = vld [vmem:[%s10033_s2 + $0x2f0] ss:$8 sps:$4 sm:$0xff]  }
 0x5ed   : > { %6975 = vtanh.f32 %v3788_v62  ;;  %v6970_v10 = vpop.eup %6969 }
 0x5ee   : > { %4370 = vmatmul.mubr.bf16.gmra.mrb[56].mxu1 %v9670_v18 }
 0x5ef   : > { %v6972_v44 = vpop.eup %6971  ;;  %4377 = vmatprep.mubr.bf16.mxu1 %v9679_v24 }
 0x5f0   : > { %v3837_v9 = vpack.c.bf16 %v6972_v44, %v6970_v10 }
 0x5f2   : > { %5854 = vmatprep.subr.bf16.mxu0 %v3837_v9 }
 0x5f3   : > { %5855 = vmatpush3.bf16.msra.mxu0 %v10107_v54 }
 0x5f5   : > { %v6974_v31 = vpop.eup %6973 }
 0x5f6   : > { %4378 = vmatmul.mubr.bf16.gmra.mrb[60].mxu1 %v9686_v17 }
 0x5f7   : > { %v6976_v42 = vpop.eup %6975 }
 0x5f8   : > { %v3838_v36 = vpack.c.bf16 %v6976_v42, %v6974_v31 }
 0x5fa   : > { %5856 = vmatprep.subr.bf16.mxu0 %v3838_v36 }
 0x5fb   : > { %5857 = vmatpush3.bf16.msra.mxu0 %v10108_v37 }
 0x5fe   : > { %4467 = vmatmul.mubr.bf16.vlgmr.msra.gmra.mrb[128].mxu0 %v9408_v45  ;;  %v9709_v45 = vpop.permute.xlu0 %3987 }
 0x5ff   : > { %4474 = vmatprep.mubr.bf16.mxu0 %v9417_v19  ;;  %v9711_v19 = vpop.permute.xlu1 %3992 }
 0x606   : > { %4475 = vmatmul.mubr.bf16.gmra.mrb[132].mxu0 %v9431_v46  ;;  %v9715_v46 = vpop.permute.xlu0 %3907 }
 0x607   : > { %4482 = vmatprep.mubr.bf16.mxu0 %v9437_v41  ;;  %v9717_v41 = vpop.permute.xlu1 %3912 }
 0x60e   : > { %4483 = vmatmul.mubr.bf16.gmra.mrb[136].mxu0 %v9451_v53  ;;  %v9719_v53 = vpop.permute.xlu0 %3997 }
 0x60f   : > { %4490 = vmatprep.mubr.bf16.mxu0 %v9457_v51  ;;  %v9723_v51 = vpop.permute.xlu1 %4002 }
 0x616   : > { %4491 = vmatmul.mubr.bf16.gmra.mrb[140].mxu0 %v9471_v55  ;;  %v9725_v55 = vpop.permute.xlu0 %3917 }
 0x617   : > { %4498 = vmatprep.mubr.bf16.mxu0 %v9477_v0  ;;  %v9727_v0 = vpop.permute.xlu1 %3922 }
 0x61e   : > { %4499 = vmatmul.mubr.bf16.gmra.mrb[144].mxu0 %v9491_v48  ;;  %v9731_v48 = vpop.permute.xlu0 %4007 }
 0x61f   : > { %4506 = vmatprep.mubr.bf16.mxu0 %v9497_v21  ;;  %v9733_v21 = vpop.permute.xlu1 %4012 }
 0x626   : > { %4507 = vmatmul.mubr.bf16.gmra.mrb[148].mxu0 %v9511_v1  ;;  %v9737_v1 = vpop.permute.xlu0 %3927 }
 0x627   : > { %4514 = vmatprep.mubr.bf16.mxu0 %v9517_v27 }
 0x62a   : > { %v9742_v57 = vpop.permute.xlu0 %4017 }
 0x62e   : > { %4515 = vmatmul.mubr.bf16.gmra.mrb[152].mxu0 %v9531_v6  ;;  %v9739_v6 = vpop.permute.xlu1 %3932  ;;  %v9749_v7 = vpop.permute.xlu0 %3937 }
 0x62f   : > { %4522 = vmatprep.mubr.bf16.mxu0 %v9537_v16 }
 0x632   : > { %v9757_v3 = vpop.permute.xlu0 %4027 }
 0x636   : > { %4523 = vmatmul.mubr.bf16.gmra.mrb[156].mxu0 %v9551_v59  ;;  %v9767_v40 = vpop.permute.xlu0 %3947 }
 0x637   : > { %4530 = vmatprep.mubr.bf16.mxu0 %v9557_v23 }
 0x63a   : > { %v9774_v42 = vpop.permute.xlu0 %4037 }
 0x63e   : > { %4531 = vmatmul.mubr.bf16.gmra.mrb[160].mxu0 %v9571_v14 }
 0x63f   : > { %4538 = vmatprep.mubr.bf16.mxu0 %v9577_v5  ;;  %v9747_v5 = vpop.permute.xlu1 %4022 }
 0x643   : > { %v9752_v58 = vpop.permute.xlu1 %3942 }
 0x646   : > { %4539 = vmatmul.mubr.bf16.gmra.mrb[164].mxu0 %v9585_v52 }
 0x647   : > { %4546 = vmatprep.mubr.bf16.mxu0 %v9594_v26  ;;  %v9759_v35 = vpop.permute.xlu1 %4032 }
 0x64b   : > { %v9769_v50 = vpop.permute.xlu1 %3952 }
 0x64e   : > { %4547 = vmatmul.mubr.bf16.gmra.mrb[168].mxu0 %v9602_v34 }
 0x64f   : > { %4554 = vmatprep.mubr.bf16.mxu0 %v9611_v2  ;;  %v9779_v36 = vpop.permute.xlu1 %4042 }
 0x651   : > { %v5746_v27 = vpop.f32.mrb[0].mxu1 }
 0x652   : > { %v5747_v16 = vpop.f32.mrb[1].mxu1 }
 0x653   : > { %v5748_v61 = vadd.f32 %v5747_v16, %v5746_v27  ;;  %v5749_v60 = vpop.f32.mrb[2].mxu1 }
 0x654   : > { %v5750_v59 = vpop.f32.mrb[3].mxu1 }
 0x655   : > { %v4260_v23 = vadd.f32 %v5748_v61, %v9715_v46  ;;  %v5751_v56 = vadd.f32 %v5750_v59, %v5749_v60 }
 0x656   : > { %4555 = vmatmul.mubr.bf16.gmra.mrb[172].mxu0 %v9619_v32 }
 0x657   : > { %v4263_v14 = vadd.f32 %v5751_v56, %v9717_v41  ;;  %4562 = vmatprep.mubr.bf16.mxu0 %v9628_v38  ;;  %6977 = vtanh.f32 %v4260_v23  ;;  %v9781_v23 = vpop.permute.xlu0 %3957 }
 0x659   : > { %6979 = vtanh.f32 %v4263_v14  ;;  %v5752_v52 = vpop.f32.mrb[4].mxu1 }
 0x65a   : > { %v5753_v26 = vpop.f32.mrb[5].mxu1 }
 0x65b   : > { %v5754_v34 = vadd.f32 %v5753_v26, %v5752_v52  ;;  %v5755_v2 = vpop.f32.mrb[6].mxu1  ;;  %v9786_v26 = vpop.permute.xlu1 %3962 }
 0x65c   : > { %v5756_v8 = vpop.f32.mrb[7].mxu1 }
 0x65d   : > { %v4268_v15 = vadd.f32 %v5754_v34, %v9725_v55  ;;  %v5757_v28 = vadd.f32 %v5756_v8, %v5755_v2  ;;  %v9790_v8 = vpop.permute.xlu0 %4047 }
 0x65e   : > { %4563 = vmatmul.mubr.bf16.gmra.mrb[176].mxu0 %v9636_v49 }
 0x65f   : > { %v4271_v32 = vadd.f32 %v5757_v28, %v9727_v0  ;;  %4570 = vmatprep.mubr.bf16.mxu0 %v9645_v11  ;;  %6981 = vtanh.f32 %v4268_v15 }
 0x661   : > { %6983 = vtanh.f32 %v4271_v32  ;;  %v5758_v38 = vpop.f32.mrb[8].mxu1  ;;  %v6978_v30 = vpop.eup %6977 }
 0x662   : > { %v5759_v12 = vpop.f32.mrb[9].mxu1 }
 0x663   : > { %v6980_v13 = vpop.eup %6979  ;;  %v5760_v22 = vadd.f32 %v5759_v12, %v5758_v38  ;;  %v5761_v39 = vpop.f32.mrb[10].mxu1 }
 0x664   : > { %v5762_v4 = vpop.f32.mrb[11].mxu1  ;;  %v9761_v20 = vpack.c.bf16 %v6980_v13, %v6978_v30  ;;  %v9792_v30 = vpop.permute.xlu1 %4052 }
 0x665   : > { %v4276_v49 = vadd.f32 %v5760_v22, %v9737_v1  ;;  %v5763_v63 = vadd.f32 %v5762_v4, %v5761_v39  ;;  %v9798_v4 = vpop.permute.xlu0 %3967 }
 0x666   : > { %4571 = vmatmul.mubr.bf16.gmra.mrb[180].mxu0 %v9653_v29 }
 0x667   : > { %v4279_v11 = vadd.f32 %v5763_v63, %v9739_v6  ;;  %4578 = vmatprep.mubr.bf16.mxu0 %v9662_v43  ;;  %6985 = vtanh.f32 %v4276_v49 }
 0x669   : > { %6987 = vtanh.f32 %v4279_v11  ;;  %v5764_v25 = vpop.f32.mrb[12].mxu1  ;;  %v6982_v33 = vpop.eup %6981 }
 0x66a   : > { %v5765_v47 = vpop.f32.mrb[13].mxu1  ;;  %v9800_v11 = vpop.permute.xlu1 %3972 }
 0x66b   : > { %v6984_v62 = vpop.eup %6983  ;;  %v5766_v10 = vadd.f32 %v5765_v47, %v5764_v25  ;;  %v5767_v44 = vpop.f32.mrb[14].mxu1 }
 0x66c   : > { %v5768_v9 = vpop.f32.mrb[15].mxu1  ;;  %v9771_v54 = vpack.c.bf16 %v6984_v62, %v6982_v33 }
 0x66d   : > { %v4284_v29 = vadd.f32 %v5766_v10, %v9749_v7  ;;  %v5769_v31 = vadd.f32 %v5768_v9, %v5767_v44 }
 0x66e   : > { %4579 = vmatmul.mubr.bf16.gmra.mrb[184].mxu0 %v9670_v18 }
 0x66f   : > { %v4287_v43 = vadd.f32 %v5769_v31, %v9752_v58  ;;  %4586 = vmatprep.mubr.bf16.mxu0 %v9679_v24  ;;  %6989 = vtanh.f32 %v4284_v29  ;;  %v9805_v31 = vpop.permute.xlu0 %4057 }
 0x671   : > { %6991 = vtanh.f32 %v4287_v43  ;;  %v5770_v37 = vpop.f32.mrb[16].mxu1  ;;  %v6986_v27 = vpop.eup %6985 }
 0x672   : > { %v5771_v16 = vpop.f32.mrb[17].mxu1 }
 0x673   : > { %v6988_v61 = vpop.eup %6987  ;;  %v5772_v60 = vadd.f32 %v5771_v16, %v5770_v37  ;;  %v5773_v59 = vpop.f32.mrb[18].mxu1 }
 0x674   : > { %v5774_v56 = vpop.f32.mrb[19].mxu1  ;;  %v9783_v14 = vpack.c.bf16 %v6988_v61, %v6986_v27  ;;  %v9808_v37 = vpop.permute.xlu1 %4062 }
 0x675   : > { %v4292_v18 = vadd.f32 %v5772_v60, %v9767_v40  ;;  %v5775_v52 = vadd.f32 %v5774_v56, %v5773_v59 }
 0x676   : > { %4587 = vmatmul.mubr.bf16.gmra.mrb[188].mxu0 %v9686_v17 }
 0x677   : > { %v4295_v24 = vadd.f32 %v5775_v52, %v9769_v50  ;;  %6993 = vtanh.f32 %v4292_v18  ;;  %v9810_v18 = vpop.permute.xlu0 %3977 }
 0x679   : > { %6995 = vtanh.f32 %v4295_v24  ;;  %v5776_v34 = vpop.f32.mrb[20].mxu1  ;;  %v6990_v2 = vpop.eup %6989 }
 0x67a   : > { %v5777_v15 = vpop.f32.mrb[21].mxu1 }
 0x67b   : > { %v6992_v28 = vpop.eup %6991  ;;  %v5778_v32 = vadd.f32 %v5777_v15, %v5776_v34  ;;  %v5779_v38 = vpop.f32.mrb[22].mxu1 }
 0x67c   : > { %v5780_v12 = vpop.f32.mrb[23].mxu1  ;;  %v9794_v13 = vpack.c.bf16 %v6992_v28, %v6990_v2  ;;  %v9815_v15 = vpop.permute.xlu1 %3982 }
 0x67d   : > { %v4300_v22 = vadd.f32 %v5778_v32, %v9781_v23  ;;  %v5781_v17 = vadd.f32 %v5780_v12, %v5779_v38 }
 0x67f   : > { %v4303_v39 = vadd.f32 %v5781_v17, %v9786_v26  ;;  %6997 = vtanh.f32 %v4300_v22 }
 0x681   : > { %6999 = vtanh.f32 %v4303_v39  ;;  %v5782_v49 = vpop.f32.mrb[24].mxu1  ;;  %v6994_v63 = vpop.eup %6993 }
 0x682   : > { %v5783_v25 = vpop.f32.mrb[25].mxu1 }
 0x683   : > { %v6996_v33 = vpop.eup %6995  ;;  %v5784_v47 = vadd.f32 %v5783_v25, %v5782_v49  ;;  %v5785_v62 = vpop.f32.mrb[26].mxu1 }
 0x684   : > { %v5786_v10 = vpop.f32.mrb[27].mxu1  ;;  %v9802_v44 = vpack.c.bf16 %v6996_v33, %v6994_v63 }
 0x685   : > { %v4308_v9 = vadd.f32 %v5784_v47, %v9798_v4  ;;  %v5787_v29 = vadd.f32 %v5786_v10, %v5785_v62 }
 0x687   : > { %v4311_v43 = vadd.f32 %v5787_v29, %v9800_v11  ;;  %7001 = vtanh.f32 %v4308_v9 }
 0x689   : > { %7003 = vtanh.f32 %v4311_v43  ;;  %v5788_v27 = vpop.f32.mrb[28].mxu1  ;;  %v6998_v16 = vpop.eup %6997 }
 0x68a   : > { %v5789_v61 = vpop.f32.mrb[29].mxu1 }
 0x68b   : > { %v7000_v60 = vpop.eup %6999  ;;  %v5790_v59 = vadd.f32 %v5789_v61, %v5788_v27  ;;  %v5791_v56 = vpop.f32.mrb[30].mxu1 }
 0x68c   : > { %v5792_v52 = vpop.f32.mrb[31].mxu1  ;;  %v9812_v24 = vpack.c.bf16 %v7000_v60, %v6998_v16 }
 0x68d   : > { %v4316_v34 = vadd.f32 %v5790_v59, %v9810_v18  ;;  %v5793_v2 = vadd.f32 %v5792_v52, %v5791_v56 }
 0x68f   : > { %v4319_v28 = vadd.f32 %v5793_v2, %v9815_v15  ;;  %7005 = vtanh.f32 %v4316_v34 }
 0x691   : > { %7007 = vtanh.f32 %v4319_v28  ;;  %v5794_v32 = vpop.f32.mrb[32].mxu1  ;;  %v7002_v38 = vpop.eup %7001 }
 0x692   : > { %v5795_v12 = vpop.f32.mrb[33].mxu1 }
 0x693   : > { %v7004_v22 = vpop.eup %7003  ;;  %v5796_v17 = vadd.f32 %v5795_v12, %v5794_v32  ;;  %v5797_v39 = vpop.f32.mrb[34].mxu1 }
 0x694   : > { %v5798_v49 = vpop.f32.mrb[35].mxu1  ;;  %v9818_v63 = vpack.c.bf16 %v7004_v22, %v7002_v38 }
 0x695   : > { %v4324_v25 = vadd.f32 %v5796_v17, %v9709_v45  ;;  %v5799_v33 = vadd.f32 %v5798_v49, %v5797_v39 }
 0x697   : > { %v4327_v47 = vadd.f32 %v5799_v33, %v9711_v19  ;;  %7009 = vtanh.f32 %v4324_v25 }
 0x699   : > { %7011 = vtanh.f32 %v4327_v47  ;;  %v5800_v62 = vpop.f32.mrb[36].mxu1  ;;  %v7006_v10 = vpop.eup %7005 }
 0x69a   : > { %v5801_v9 = vpop.f32.mrb[37].mxu1 }
 0x69b   : > { %v7008_v29 = vpop.eup %7007  ;;  %v5802_v43 = vadd.f32 %v5801_v9, %v5800_v62  ;;  %v5803_v27 = vpop.f32.mrb[38].mxu1 }
 0x69c   : > { %v5804_v16 = vpop.f32.mrb[39].mxu1  ;;  %v9822_v61 = vpack.c.bf16 %v7008_v29, %v7006_v10 }
 0x69d   : > { %v4332_v60 = vadd.f32 %v5802_v43, %v9719_v53  ;;  %v5805_v59 = vadd.f32 %v5804_v16, %v5803_v27 }
 0x69f   : > { %v4335_v56 = vadd.f32 %v5805_v59, %v9723_v51  ;;  %7013 = vtanh.f32 %v4332_v60 }
 0x6a1   : > { %7015 = vtanh.f32 %v4335_v56  ;;  %v5806_v52 = vpop.f32.mrb[40].mxu1  ;;  %v7010_v34 = vpop.eup %7009 }
 0x6a2   : > { %v5807_v2 = vpop.f32.mrb[41].mxu1 }
 0x6a3   : > { %v7012_v28 = vpop.eup %7011  ;;  %v5808_v32 = vadd.f32 %v5807_v2, %v5806_v52  ;;  %v5809_v38 = vpop.f32.mrb[42].mxu1 }
 0x6a4   : > { %v5810_v12 = vpop.f32.mrb[43].mxu1  ;;  %v9826_v22 = vpack.c.bf16 %v7012_v28, %v7010_v34 }
 0x6a5   : > { %v4340_v17 = vadd.f32 %v5808_v32, %v9731_v48  ;;  %v5811_v39 = vadd.f32 %v5810_v12, %v5809_v38 }
 0x6a6   : > { %5982 = vmatprep.subr.bf16.mxu0 %v9826_v22 }
 0x6a7   : > { %v4343_v49 = vadd.f32 %v5811_v39, %v9733_v21  ;;  %5983 = vmatpush3.bf16.msra.mxu0 %v9761_v20  ;;  %7017 = vtanh.f32 %v4340_v17 }
 0x6a9   : > { %7019 = vtanh.f32 %v4343_v49  ;;  %v5812_v25 = vpop.f32.mrb[44].mxu1  ;;  %v7014_v33 = vpop.eup %7013 }
 0x6aa   : > { %v5813_v47 = vpop.f32.mrb[45].mxu1 }
 0x6ab   : > { %v7016_v62 = vpop.eup %7015  ;;  %v5814_v10 = vadd.f32 %v5813_v47, %v5812_v25  ;;  %v5815_v9 = vpop.f32.mrb[46].mxu1 }
 0x6ac   : > { %v5816_v29 = vpop.f32.mrb[47].mxu1  ;;  %v9832_v43 = vpack.c.bf16 %v7016_v62, %v7014_v33 }
 0x6ad   : > { %v4348_v27 = vadd.f32 %v5814_v10, %v9742_v57  ;;  %v5817_v16 = vadd.f32 %v5816_v29, %v5815_v9 }
 0x6ae   : > { %5984 = vmatprep.subr.bf16.mxu0 %v9832_v43 }
 0x6af   : > { %v4351_v60 = vadd.f32 %v5817_v16, %v9747_v5  ;;  %5985 = vmatpush3.bf16.msra.mxu0 %v9771_v54  ;;  %7021 = vtanh.f32 %v4348_v27 }
 0x6b1   : > { %7023 = vtanh.f32 %v4351_v60  ;;  %v5818_v59 = vpop.f32.mrb[48].mxu1  ;;  %v7018_v56 = vpop.eup %7017 }
 0x6b2   : > { %v5819_v52 = vpop.f32.mrb[49].mxu1 }
 0x6b3   : > { %v7020_v34 = vpop.eup %7019  ;;  %v5820_v2 = vadd.f32 %v5819_v52, %v5818_v59  ;;  %v5821_v28 = vpop.f32.mrb[50].mxu1 }
 0x6b4   : > { %v5822_v32 = vpop.f32.mrb[51].mxu1  ;;  %v9838_v38 = vpack.c.bf16 %v7020_v34, %v7018_v56 }
 0x6b5   : > { %v4356_v12 = vadd.f32 %v5820_v2, %v9757_v3  ;;  %v5823_v17 = vadd.f32 %v5822_v32, %v5821_v28 }
 0x6b6   : > { %5986 = vmatprep.subr.bf16.mxu0 %v9838_v38 }
 0x6b7   : > { %v4359_v39 = vadd.f32 %v5823_v17, %v9759_v35  ;;  %5987 = vmatpush3.bf16.msra.mxu0 %v9783_v14  ;;  %7025 = vtanh.f32 %v4356_v12 }
 0x6b9   : > { %7027 = vtanh.f32 %v4359_v39  ;;  %v5824_v49 = vpop.f32.mrb[52].mxu1  ;;  %v7022_v25 = vpop.eup %7021 }
 0x6ba   : > { %v5825_v33 = vpop.f32.mrb[53].mxu1 }
 0x6bb   : > { %v7024_v47 = vpop.eup %7023  ;;  %v5826_v62 = vadd.f32 %v5825_v33, %v5824_v49  ;;  %v5827_v10 = vpop.f32.mrb[54].mxu1 }
 0x6bc   : > { %v5828_v9 = vpop.f32.mrb[55].mxu1  ;;  %v9844_v29 = vpack.c.bf16 %v7024_v47, %v7022_v25 }
 0x6bd   : > { %v4364_v27 = vadd.f32 %v5826_v62, %v9774_v42  ;;  %v5829_v16 = vadd.f32 %v5828_v9, %v5827_v10 }
 0x6be   : > { %5988 = vmatprep.subr.bf16.mxu0 %v9844_v29 }
 0x6bf   : > { %v4367_v60 = vadd.f32 %v5829_v16, %v9779_v36  ;;  %5989 = vmatpush3.bf16.msra.mxu0 %v9794_v13  ;;  %7029 = vtanh.f32 %v4364_v27 }
 0x6c1   : > { %7031 = vtanh.f32 %v4367_v60  ;;  %v5830_v59 = vpop.f32.mrb[56].mxu1  ;;  %v7026_v56 = vpop.eup %7025 }
 0x6c2   : > { %v5831_v52 = vpop.f32.mrb[57].mxu1 }
 0x6c3   : > { %v7028_v34 = vpop.eup %7027  ;;  %v5832_v2 = vadd.f32 %v5831_v52, %v5830_v59  ;;  %v5833_v28 = vpop.f32.mrb[58].mxu1 }
 0x6c4   : > { %v5834_v32 = vpop.f32.mrb[59].mxu1  ;;  %v9850_v12 = vpack.c.bf16 %v7028_v34, %v7026_v56 }
 0x6c5   : > { %v4372_v17 = vadd.f32 %v5832_v2, %v9790_v8  ;;  %v5835_v39 = vadd.f32 %v5834_v32, %v5833_v28 }
 0x6c6   : > { %5990 = vmatprep.subr.bf16.mxu0 %v9850_v12 }
 0x6c7   : > { %v4375_v49 = vadd.f32 %v5835_v39, %v9792_v30  ;;  %5991 = vmatpush3.bf16.msra.mxu0 %v9802_v44  ;;  %7033 = vtanh.f32 %v4372_v17 }
 0x6c9   : > { %7035 = vtanh.f32 %v4375_v49  ;;  %v5836_v25 = vpop.f32.mrb[60].mxu1  ;;  %v7030_v33 = vpop.eup %7029 }
 0x6ca   : > { %v5837_v47 = vpop.f32.mrb[61].mxu1 }
 0x6cb   : > { %v7032_v62 = vpop.eup %7031  ;;  %v5838_v10 = vadd.f32 %v5837_v47, %v5836_v25  ;;  %v5839_v9 = vpop.f32.mrb[62].mxu1 }
 0x6cc   : > { %v5840_v27 = vpop.f32.mrb[63].mxu1  ;;  %v9856_v16 = vpack.c.bf16 %v7032_v62, %v7030_v33 }
 0x6cd   : > { %v4380_v60 = vadd.f32 %v5838_v10, %v9805_v31  ;;  %v5841_v59 = vadd.f32 %v5840_v27, %v5839_v9 }
 0x6ce   : > { %5992 = vmatprep.subr.bf16.mxu0 %v9856_v16 }
 0x6cf   : > { %v4383_v56 = vadd.f32 %v5841_v59, %v9808_v37  ;;  %5993 = vmatpush3.bf16.msra.mxu0 %v9812_v24  ;;  %7037 = vtanh.f32 %v4380_v60 }
 0x6d1   : > { %7039 = vtanh.f32 %v4383_v56  ;;  %v5858_v52 = vpop.f32.mrb[128].mxu0  ;;  %v7034_v34 = vpop.eup %7033 }
 0x6d2   : > { %v5859_v2 = vpop.f32.mrb[129].mxu0 }
 0x6d3   : > { %v7036_v28 = vpop.eup %7035  ;;  %v5860_v32 = vadd.f32 %v5859_v2, %v5858_v52  ;;  %v5861_v17 = vpop.f32.mrb[130].mxu0  ;;  %v6583_v2 = vld [vmem:[%s10034_s3 + $0xc] ss:$16 sps:$4 sm:$0xff]  }
 0x6d4   : > { %v5862_v39 = vpop.f32.mrb[131].mxu0  ;;  %v9862_v49 = vpack.c.bf16 %v7036_v28, %v7034_v34  ;;  %v6586_v28 = vld [vmem:[%s10034_s3 + $0x4] ss:$16 sps:$4 sm:$0xff]   ;;  %4703 = vmatprep.mubr.bf16.mxu1 %v6583_v2 }
 0x6d5   : > { %v4469_v25 = vadd.f32 %v5860_v32, %v9715_v46  ;;  %v5863_v33 = vadd.f32 %v5862_v39, %v5861_v17  ;;  %4772 = vmatprep.mubr.bf16.mxu0 %v6586_v28 }
 0x6d6   : > { %5994 = vmatprep.subr.bf16.mxu0 %v9862_v49 }
 0x6d7   : > { %v4472_v47 = vadd.f32 %v5863_v33, %v9717_v41  ;;  %5995 = vmatpush3.bf16.msra.mxu0 %v9818_v63  ;;  %7041 = vtanh.f32 %v4469_v25 }
 0x6d9   : > { %7043 = vtanh.f32 %v4472_v47  ;;  %v5864_v62 = vpop.f32.mrb[132].mxu0  ;;  %v7038_v10 = vpop.eup %7037 }
 0x6da   : > { %v5865_v9 = vpop.f32.mrb[133].mxu0 }
 0x6db   : > { %v7040_v27 = vpop.eup %7039  ;;  %v5866_v60 = vadd.f32 %v5865_v9, %v5864_v62  ;;  %v5867_v59 = vpop.f32.mrb[134].mxu0 }
 0x6dc   : > { %v5868_v56 = vpop.f32.mrb[135].mxu0  ;;  %v9868_v52 = vpack.c.bf16 %v7040_v27, %v7038_v10 }
 0x6dd   : > { %v4477_v46 = vadd.f32 %v5866_v60, %v9725_v55  ;;  %v5869_v34 = vadd.f32 %v5868_v56, %v5867_v59  ;;  %v6584_v55 = vld [vmem:[%s10034_s3] ss:$16 sps:$4 sm:$0xff]  }
 0x6de   : > { %5996 = vmatprep.subr.bf16.mxu0 %v9868_v52 }
 0x6df   : > { %v4480_v41 = vadd.f32 %v5869_v34, %v9727_v0  ;;  %5997 = vmatpush3.bf16.msra.mxu0 %v9822_v61  ;;  %7045 = vtanh.f32 %v4477_v46 }
 0x6e1   : > { %7047 = vtanh.f32 %v4480_v41  ;;  %v5870_v32 = vpop.f32.mrb[136].mxu0  ;;  %v9883_v0 = vpop.eup %7041 }
 0x6e2   : > { %v5871_v17 = vpop.f32.mrb[137].mxu0  ;;  %4773 = vmatmul.mubr.bf16.vlgmr.msra.gmra.mrb[192].mxu0 %v6584_v55 }
 0x6e3   : > { %v9885_v39 = vpop.eup %7043  ;;  %v5872_v25 = vadd.f32 %v5871_v17, %v5870_v32  ;;  %v5873_v33 = vpop.f32.mrb[138].mxu0 }
 0x6e4   : > { %v5874_v47 = vpop.f32.mrb[139].mxu0  ;;  %v4627_v62 = vpack.c.bf16 %v9885_v39, %v9883_v0 }
 0x6e5   : > { %v4485_v10 = vadd.f32 %v5872_v25, %v9737_v1  ;;  %v5875_v9 = vadd.f32 %v5874_v47, %v5873_v33 }
 0x6e7   : > { %v4488_v27 = vadd.f32 %v5875_v9, %v9739_v6  ;;  %7049 = vtanh.f32 %v4485_v10 }
 0x6e9   : > { %7051 = vtanh.f32 %v4488_v27  ;;  %v5876_v60 = vpop.f32.mrb[140].mxu0  ;;  %v9891_v59 = vpop.eup %7045 }
 0x6ea   : > { %v5877_v56 = vpop.f32.mrb[141].mxu0 }
 0x6eb   : > { %v9893_v46 = vpop.eup %7047  ;;  %v5878_v34 = vadd.f32 %v5877_v56, %v5876_v60  ;;  %v5879_v41 = vpop.f32.mrb[142].mxu0 }
 0x6ec   : > { %v5880_v2 = vpop.f32.mrb[143].mxu0  ;;  %v10109_v0 = vpack.c.bf16 %v9893_v46, %v9891_v59 }
 0x6ed   : > { %v4493_v55 = vadd.f32 %v5878_v34, %v9749_v7  ;;  %v5881_v1 = vadd.f32 %v5880_v2, %v5879_v41 }
 0x6ef   : > { %v4496_v32 = vadd.f32 %v5881_v1, %v9752_v58  ;;  %7053 = vtanh.f32 %v4493_v55 }
 0x6f1   : > { %7055 = vtanh.f32 %v4496_v32  ;;  %v5882_v6 = vpop.f32.mrb[144].mxu0  ;;  %v9899_v17 = vpop.eup %7049 }
 0x6f2   : > { %v5883_v25 = vpop.f32.mrb[145].mxu0 }
 0x6f3   : > { %v9901_v33 = vpop.eup %7051  ;;  %v5884_v47 = vadd.f32 %v5883_v25, %v5882_v6  ;;  %v5885_v10 = vpop.f32.mrb[146].mxu0 }
 0x6f4   : > { %v5886_v9 = vpop.f32.mrb[147].mxu0  ;;  %v10110_v59 = vpack.c.bf16 %v9901_v33, %v9899_v17 }
 0x6f5   : > { %v4501_v60 = vadd.f32 %v5884_v47, %v9767_v40  ;;  %v5887_v7 = vadd.f32 %v5886_v9, %v5885_v10 }
 0x6f7   : > { %v4504_v56 = vadd.f32 %v5887_v7, %v9769_v50  ;;  %7057 = vtanh.f32 %v4501_v60 }
 0x6f9   : > { %7059 = vtanh.f32 %v4504_v56  ;;  %v5888_v58 = vpop.f32.mrb[148].mxu0  ;;  %v9907_v34 = vpop.eup %7053 }
 0x6fa   : > { %v5889_v41 = vpop.f32.mrb[149].mxu0 }
 0x6fb   : > { %v9909_v2 = vpop.eup %7055  ;;  %v5890_v55 = vadd.f32 %v5889_v41, %v5888_v58  ;;  %v5891_v1 = vpop.f32.mrb[150].mxu0 }
 0x6fc   : > { %v5892_v32 = vpop.f32.mrb[151].mxu0  ;;  %v10111_v17 = vpack.c.bf16 %v9909_v2, %v9907_v34 }
 0x6fd   : > { %v4509_v25 = vadd.f32 %v5890_v55, %v9781_v23  ;;  %v5893_v40 = vadd.f32 %v5892_v32, %v5891_v1 }
 0x6ff   : > { %v4512_v47 = vadd.f32 %v5893_v40, %v9786_v26  ;;  %7061 = vtanh.f32 %v4509_v25 }
 0x701   : > { %7063 = vtanh.f32 %v4512_v47  ;;  %v5894_v50 = vpop.f32.mrb[152].mxu0  ;;  %v9915_v10 = vpop.eup %7057 }
 0x702   : > { %v5895_v9 = vpop.f32.mrb[153].mxu0 }
 0x703   : > { %v9917_v60 = vpop.eup %7059  ;;  %v5896_v7 = vadd.f32 %v5895_v9, %v5894_v50  ;;  %v5897_v56 = vpop.f32.mrb[154].mxu0 }
 0x704   : > { %v5898_v58 = vpop.f32.mrb[155].mxu0  ;;  %v10112_v34 = vpack.c.bf16 %v9917_v60, %v9915_v10 }
 0x705   : > { %v4517_v6 = vadd.f32 %v5896_v7, %v9798_v4  ;;  %v5899_v23 = vadd.f32 %v5898_v58, %v5897_v56 }
 0x707   : > { %v4520_v55 = vadd.f32 %v5899_v23, %v9800_v11  ;;  %7065 = vtanh.f32 %v4517_v6 }
 0x709   : > { %7067 = vtanh.f32 %v4520_v55  ;;  %v5900_v26 = vpop.f32.mrb[156].mxu0  ;;  %v9923_v1 = vpop.eup %7061 }
 0x70a   : > { %v5901_v32 = vpop.f32.mrb[157].mxu0 }
 0x70b   : > { %v9925_v25 = vpop.eup %7063  ;;  %v5902_v40 = vadd.f32 %v5901_v32, %v5900_v26  ;;  %v5903_v47 = vpop.f32.mrb[158].mxu0 }
 0x70c   : > { %v5904_v50 = vpop.f32.mrb[159].mxu0  ;;  %v10113_v10 = vpack.c.bf16 %v9925_v25, %v9923_v1  ;;  %v6589_v25 = vld [vmem:[%s10034_s3 + $0x2c] ss:$16 sps:$4 sm:$0xff]  }
 0x70d   : > { %v4525_v41 = vadd.f32 %v5902_v40, %v9810_v18  ;;  %v5905_v4 = vadd.f32 %v5904_v50, %v5903_v47 }
 0x70f   : > { %v4528_v7 = vadd.f32 %v5905_v4, %v9815_v15  ;;  %7069 = vtanh.f32 %v4525_v41 }
 0x711   : > { %7071 = vtanh.f32 %v4528_v7  ;;  %v5906_v11 = vpop.f32.mrb[160].mxu0  ;;  %v9931_v6 = vpop.eup %7065 }
 0x712   : > { %v5907_v56 = vpop.f32.mrb[161].mxu0 }
 0x713   : > { %v9933_v58 = vpop.eup %7067  ;;  %v5908_v23 = vadd.f32 %v5907_v56, %v5906_v11  ;;  %v5909_v55 = vpop.f32.mrb[162].mxu0 }
 0x714   : > { %v5910_v26 = vpop.f32.mrb[163].mxu0 }
 0x715   : > { %v4533_v9 = vadd.f32 %v5908_v23, %v9709_v45  ;;  %v5911_v18 = vadd.f32 %v5910_v26, %v5909_v55 }
 0x717   : > { %v4536_v40 = vadd.f32 %v5911_v18, %v9711_v19  ;;  %7073 = vtanh.f32 %v4533_v9 }
 0x719   : > { %7075 = vtanh.f32 %v4536_v40  ;;  %v5912_v15 = vpop.f32.mrb[164].mxu0  ;;  %v9939_v41 = vpop.eup %7069 }
 0x71a   : > { %v5913_v47 = vpop.f32.mrb[165].mxu0 }
 0x71b   : > { %v9941_v50 = vpop.eup %7071  ;;  %v5914_v4 = vadd.f32 %v5913_v47, %v5912_v15  ;;  %v5915_v7 = vpop.f32.mrb[166].mxu0 }
 0x71c   : > { %v5916_v11 = vpop.f32.mrb[167].mxu0  ;;  %v10115_v1 = vpack.c.bf16 %v9941_v50, %v9939_v41 }
 0x71d   : > { %v4541_v32 = vadd.f32 %v5914_v4, %v9719_v53  ;;  %v5917_v45 = vadd.f32 %v5916_v11, %v5915_v7 }
 0x71f   : > { %v4544_v23 = vadd.f32 %v5917_v45, %v9723_v51  ;;  %7077 = vtanh.f32 %v4541_v32 }
 0x721   : > { %7079 = vtanh.f32 %v4544_v23  ;;  %v5918_v19 = vpop.f32.mrb[168].mxu0  ;;  %v7074_v9 = vpop.eup %7073 }
 0x722   : > { %v5919_v55 = vpop.f32.mrb[169].mxu0 }
 0x723   : > { %v7076_v26 = vpop.eup %7075  ;;  %v5920_v18 = vadd.f32 %v5919_v55, %v5918_v19  ;;  %v5921_v40 = vpop.f32.mrb[170].mxu0 }
 0x724   : > { %v5922_v27 = vpop.f32.mrb[171].mxu0  ;;  %v4635_v15 = vpack.c.bf16 %v7076_v26, %v7074_v9 }
 0x725   : > { %v4549_v47 = vadd.f32 %v5920_v18, %v9731_v48  ;;  %v5923_v28 = vadd.f32 %v5922_v27, %v5921_v40 }
 0x726   : > { %5954 = vmatprep.subr.bf16.mxu1 %v4635_v15 }
 0x727   : > { %v4552_v56 = vadd.f32 %v5923_v28, %v9733_v21  ;;  %5955 = vmatpush3.bf16.msra.mxu1 %v4627_v62  ;;  %7081 = vtanh.f32 %v4549_v47 }
 0x729   : > { %7083 = vtanh.f32 %v4552_v56  ;;  %v5924_v53 = vpop.f32.mrb[172].mxu0  ;;  %v7078_v51 = vpop.eup %7077 }
 0x72a   : > { %v5925_v32 = vpop.f32.mrb[173].mxu0 }
 0x72b   : > { %v7080_v4 = vpop.eup %7079  ;;  %v5926_v7 = vadd.f32 %v5925_v32, %v5924_v53  ;;  %v5927_v11 = vpop.f32.mrb[174].mxu0 }
 0x72c   : > { %v5928_v45 = vpop.f32.mrb[175].mxu0  ;;  %v4636_v23 = vpack.c.bf16 %v7080_v4, %v7078_v51 }
 0x72d   : > { %v4557_v48 = vadd.f32 %v5926_v7, %v9742_v57  ;;  %v5929_v27 = vadd.f32 %v5928_v45, %v5927_v11 }
 0x72e   : > { %5956 = vmatprep.subr.bf16.mxu1 %v4636_v23 }
 0x72f   : > { %v4560_v21 = vadd.f32 %v5929_v27, %v9747_v5  ;;  %5957 = vmatpush3.bf16.msra.mxu1 %v10109_v0  ;;  %7085 = vtanh.f32 %v4557_v48 }
 0x731   : > { %7087 = vtanh.f32 %v4560_v21  ;;  %v5930_v39 = vpop.f32.mrb[176].mxu0  ;;  %v7082_v62 = vpop.eup %7081 }
 0x732   : > { %v5931_v28 = vpop.f32.mrb[177].mxu0 }
 0x733   : > { %v7084_v56 = vpop.eup %7083  ;;  %v5932_v19 = vadd.f32 %v5931_v28, %v5930_v39  ;;  %v5933_v9 = vpop.f32.mrb[178].mxu0 }
 0x734   : > { %v5934_v55 = vpop.f32.mrb[179].mxu0  ;;  %v4637_v26 = vpack.c.bf16 %v7084_v56, %v7082_v62 }
 0x735   : > { %v4565_v57 = vadd.f32 %v5932_v19, %v9757_v3  ;;  %v5935_v18 = vadd.f32 %v5934_v55, %v5933_v9 }
 0x736   : > { %5958 = vmatprep.subr.bf16.mxu1 %v4637_v26 }
 0x737   : > { %v4568_v5 = vadd.f32 %v5935_v18, %v9759_v35  ;;  %5959 = vmatpush3.bf16.msra.mxu1 %v10110_v59  ;;  %7089 = vtanh.f32 %v4565_v57  ;;  %v10114_v59 = vpack.c.bf16 %v9933_v58, %v9931_v6  ;;  %v6587_v6 = vld [vmem:[%s10034_s3 + $0x28] ss:$16 sps:$4 sm:$0xff]   ;;  %v6592_v58 = vld [vmem:[%s10034_s3 + $0x24] ss:$16 sps:$4 sm:$0xff]  }
 0x739   : > { %7091 = vtanh.f32 %v4568_v5  ;;  %v5936_v46 = vpop.f32.mrb[180].mxu0  ;;  %v7086_v40 = vpop.eup %7085 }
 0x73a   : > { %v5937_v15 = vpop.f32.mrb[181].mxu0 }
 0x73b   : > { %v7088_v47 = vpop.eup %7087  ;;  %v5938_v53 = vadd.f32 %v5937_v15, %v5936_v46  ;;  %v5939_v51 = vpop.f32.mrb[182].mxu0 }
 0x73c   : > { %v5940_v32 = vpop.f32.mrb[183].mxu0  ;;  %v4638_v4 = vpack.c.bf16 %v7088_v47, %v7086_v40  ;;  %v4801_v15 = vpop.permute.xlu1 %4800 }
 0x73d   : > { %v4573_v3 = vadd.f32 %v5938_v53, %v9774_v42  ;;  %v5941_v7 = vadd.f32 %v5940_v32, %v5939_v51 }
 0x73e   : > { %5960 = vmatprep.subr.bf16.mxu1 %v4638_v4 }
 0x73f   : > { %v4576_v35 = vadd.f32 %v5941_v7, %v9779_v36  ;;  %5961 = vmatpush3.bf16.msra.mxu1 %v10111_v17  ;;  %7093 = vtanh.f32 %v4573_v3 }
 0x741   : > { %7095 = vtanh.f32 %v4576_v35  ;;  %v5942_v33 = vpop.f32.mrb[184].mxu0  ;;  %v7090_v11 = vpop.eup %7089 }
 0x742   : > { %v5943_v45 = vpop.f32.mrb[185].mxu0 }
 0x743   : > { %v7092_v23 = vpop.eup %7091  ;;  %v5944_v48 = vadd.f32 %v5943_v45, %v5942_v33  ;;  %v5945_v27 = vpop.f32.mrb[186].mxu0 }
 0x744   : > { %v5946_v21 = vpop.f32.mrb[187].mxu0  ;;  %v4639_v0 = vpack.c.bf16 %v7092_v23, %v7090_v11 }
 0x745   : > { %v4581_v42 = vadd.f32 %v5944_v48, %v9790_v8  ;;  %v5947_v39 = vadd.f32 %v5946_v21, %v5945_v27 }
 0x746   : > { %5962 = vmatprep.subr.bf16.mxu1 %v4639_v0 }
 0x747   : > { %v4584_v36 = vadd.f32 %v5947_v39, %v9792_v30  ;;  %5963 = vmatpush3.bf16.msra.mxu1 %v10112_v34  ;;  %7097 = vtanh.f32 %v4581_v42  ;;  %v4811_v39 = vpop.permute.xlu1 %4810 }
 0x749   : > { %7099 = vtanh.f32 %v4584_v36  ;;  %v5948_v2 = vpop.f32.mrb[188].mxu0  ;;  %v7094_v62 = vpop.eup %7093 }
 0x74a   : > { %v5949_v28 = vpop.f32.mrb[189].mxu0 }
 0x74b   : > { %v7096_v56 = vpop.eup %7095  ;;  %v5950_v19 = vadd.f32 %v5949_v28, %v5948_v2  ;;  %v5951_v9 = vpop.f32.mrb[190].mxu0 }
 0x74c   : > { %v5952_v55 = vpop.f32.mrb[191].mxu0  ;;  %v4640_v26 = vpack.c.bf16 %v7096_v56, %v7094_v62 }
 0x74d   : > { %v4589_v8 = vadd.f32 %v5950_v19, %v9805_v31  ;;  %v5953_v57 = vadd.f32 %v5952_v55, %v5951_v9 }
 0x74e   : > { %5964 = vmatprep.subr.bf16.mxu1 %v4640_v26 }
 0x74f   : > { %v4592_v30 = vadd.f32 %v5953_v57, %v9808_v37  ;;  %5965 = vmatpush3.bf16.msra.mxu1 %v10113_v10  ;;  %7101 = vtanh.f32 %v4589_v8  ;;  %v6581_v37 = vld [vmem:[%s10034_s3 + $0x8] ss:$16 sps:$4 sm:$0xff]  }
 0x751   : > { %7103 = vtanh.f32 %v4592_v30  ;;  %v7098_v60 = vpop.eup %7097 }
 0x753   : > { %v7100_v18 = vpop.eup %7099 }
 0x754   : > { %v4641_v5 = vpack.c.bf16 %v7100_v18, %v7098_v60 }
 0x756   : > { %5966 = vmatprep.subr.bf16.mxu1 %v4641_v5 }
 0x757   : > { %5967 = vmatpush3.bf16.msra.mxu1 %v10114_v59 }
 0x759   : > { %v7102_v46 = vpop.eup %7101 }
 0x75b   : > { %v7104_v31 = vpop.eup %7103 }
 0x75c   : > { %v4642_v40 = vpack.c.bf16 %v7104_v31, %v7102_v46 }
 0x75e   : > { %5968 = vmatprep.subr.bf16.mxu1 %v4642_v40 }
 0x75f   : > { %5969 = vmatpush3.bf16.msra.mxu1 %v10115_v1 }
 0x760   : > { %6010 = vmatprep.subr.bf16.mxu1 %v9826_v22 }
 0x762   : > { %4704 = vmatmul.mubr.bf16.vlgmr.msra.gmra.mrb[64].mxu1 %v6581_v37 }
 0x763   : > { %6018 = vmatpush3.bf16.msra.mxu1 %v9761_v20  ;;  %4711 = vmatprep.mubr.bf16.mxu1 %v6589_v25  ;;  %v6590_v20 = vld [vmem:[%s10034_s3 + $0x20] ss:$16 sps:$4 sm:$0xff]  }
 0x764   : > { %6011 = vmatprep.subr.bf16.mxu1 %v9832_v43 }
 0x767   : > { %6019 = vmatpush3.bf16.msra.mxu1 %v9771_v54 }
 0x768   : > { %6012 = vmatprep.subr.bf16.mxu1 %v9838_v38 }
 0x76a   : > { %4712 = vmatmul.mubr.bf16.gmra.mrb[68].mxu1 %v6587_v6 }
 0x76b   : > { %6020 = vmatpush3.bf16.msra.mxu1 %v9783_v14  ;;  %4780 = vmatprep.mubr.bf16.mxu1 %v6592_v58 }
 0x76c   : > { %6013 = vmatprep.subr.bf16.mxu1 %v9844_v29 }
 0x76f   : > { %6021 = vmatpush3.bf16.msra.mxu1 %v9794_v13 }
 0x770   : > { %6014 = vmatprep.subr.bf16.mxu1 %v9850_v12 }
 0x773   : > { %6022 = vmatpush3.bf16.msra.mxu1 %v9802_v44 }
 0x774   : > { %6015 = vmatprep.subr.bf16.mxu1 %v9856_v16 }
 0x777   : > { %6023 = vmatpush3.bf16.msra.mxu1 %v9812_v24 }
 0x778   : > { %6016 = vmatprep.subr.bf16.mxu1 %v9862_v49 }
 0x77b   : > { %6024 = vmatpush3.bf16.msra.mxu1 %v9818_v63 }
 0x77c   : > { %6017 = vmatprep.subr.bf16.mxu1 %v9868_v52  ;;  %v4796_v52 = vpop.permute.xlu0 %4795 }
 0x77f   : > { %6025 = vmatpush3.bf16.msra.mxu1 %v9822_v61 }
 0x780   : > { %v4806_v21 = vpop.permute.xlu0 %4805 }
 0x782   : > { %4781 = vmatmul.mubr.bf16.vlgmr.msra.gmra.mrb[72].mxu1 %v6590_v20 }
 0x7b5   : > { %v5998_v54 = vpop.f32.mrb[192].mxu0 }
 0x7b6   : > { %v5999_v14 = vpop.f32.mrb[193].mxu0 }
 0x7b7   : > { %v6000_v13 = vadd.f32 %v5999_v14, %v5998_v54  ;;  %v6001_v44 = vpop.f32.mrb[194].mxu0 }
 0x7b8   : > { %v6002_v22 = vpop.f32.mrb[195].mxu0 }
 0x7b9   : > { %v6003_v43 = vadd.f32 %v6002_v22, %v6001_v44 }
 0x835   : > { %v5970_v24 = vpop.f32.mrb[64].mxu1 }
 0x836   : > { %v5971_v38 = vpop.f32.mrb[65].mxu1 }
 0x837   : > { %v5972_v29 = vadd.f32 %v5971_v38, %v5970_v24  ;;  %v5973_v12 = vpop.f32.mrb[66].mxu1 }
 0x838   : > { %v5974_v63 = vpop.f32.mrb[67].mxu1 }
 0x839   : > { %v4775_v16 = vadd.f32 %v6000_v13, %v5972_v29  ;;  %v5975_v49 = vadd.f32 %v5974_v63, %v5973_v12 }
 0x83b   : > { %v4813_v41 = vadd.f32 %v4796_v52, %v4775_v16  ;;  %v4778_v50 = vadd.f32 %v6003_v43, %v5975_v49 }
 0x83d   : > { %7105 = vtanh.f32 %v4813_v41  ;;  %v4814_v61 = vadd.f32 %v4801_v15, %v4778_v50  ;;  %v5976_v47 = vpop.f32.mrb[68].mxu1 }
 0x83e   : > { %v5977_v53 = vpop.f32.mrb[69].mxu1 }
 0x83f   : > { %7107 = vtanh.f32 %v4814_v61  ;;  %v5978_v51 = vadd.f32 %v5977_v53, %v5976_v47  ;;  %v5979_v32 = vpop.f32.mrb[70].mxu1 }
 0x840   : > { %v5980_v4 = vpop.f32.mrb[71].mxu1 }
 0x841   : > { %v5981_v3 = vadd.f32 %v5980_v4, %v5979_v32 }
 0x847   : > { %v7106_v7 = vpop.eup %7105 }
 0x848   : > { %4822 = vst.msk [vmem:[%s309_s10] sm:$0xff] %vm4821_vm0, %v7106_v7 }
 0x849   : > { %v7108_v35 = vpop.eup %7107 }
 0x84a   : > { %4823 = vst.msk [vmem:[%s309_s10 + $0x8] sm:$0xff] %vm4821_vm0, %v7108_v35 }
 0x855   : > { %v6004_v17 = vpop.f32.mrb[72].mxu1 }
 0x856   : > { %v6005_v33 = vpop.f32.mrb[73].mxu1 }
 0x857   : > { %v6006_v11 = vadd.f32 %v6005_v33, %v6004_v17  ;;  %v6007_v45 = vpop.f32.mrb[74].mxu1 }
 0x858   : > { %v6008_v23 = vpop.f32.mrb[75].mxu1 }
 0x859   : > { %v4783_v48 = vadd.f32 %v6006_v11, %v5978_v51  ;;  %v6009_v27 = vadd.f32 %v6008_v23, %v6007_v45 }
 0x85b   : > { %v4815_v0 = vadd.f32 %v4806_v21, %v4783_v48  ;;  %v4786_v42 = vadd.f32 %v6009_v27, %v5981_v3 }
 0x85d   : > { %7109 = vtanh.f32 %v4815_v0  ;;  %v4816_v36 = vadd.f32 %v4811_v39, %v4786_v42 }
 0x85f   : > { %7111 = vtanh.f32 %v4816_v36 }
 0x867   : > { %v7110_v34 = vpop.eup %7109 }
 0x868   : > { %4824 = vst.msk [vmem:[%s309_s10 + $0x10] sm:$0xff] %vm4821_vm0, %v7110_v34 }
 0x869   : > { %v7112_v2 = vpop.eup %7111 }
 0x86a   : > { %4825 = vst.msk [vmem:[%s309_s10 + $0x18] sm:$0xff] %vm4821_vm0, %v7112_v2 }
 0x86b PF: > { %s17_s26 = sadd.s32 1, %s7135_s26   ;;  %s10116_s24 = smov %s7131_s25 }
 0x86c   : > { %p14_p5 = scmp.ge.s32.totalorder %s17_s26, 4   ;;  %s10117_s25 = smov %s10119_s27 }
 0x86e   :  { %16 = sbr.rel (!%p14_p5) target bundleno = 2 (0x2), region = 82 }

</bundles_post_ra>
